<compile_context>
chip_gen: v7x
topology: tpu7x:2x2x1
jax: 0.10.0
libtpu: 0.0.40
codegen_flags: <defaults>
</compile_context>

<pallas_src>
import jax
import jax.numpy as jnp
import numpy as np
from jax.experimental import pallas as pl
from jax.experimental.pallas import tpu as pltpu

EPS = 1e-5


def basic_block_kernel(xp_ref, w1_ref, s1_ref, b1_ref,
                       w2_ref, s2_ref, b2_ref, o_ref, mid_ref):
    """Fused BasicBlock for `nb` images (one grid step).

    xp_ref : (nb, H+2, W+2, Cp) bf16  input, zero-padded by 1 spatially and
                                      zero-padded to Cp channels (mult. of 128)
    w1_ref : (3, 3*Cp, Cp)      bf16  conv1 weights, [ky][kx*Cp + cin, cout]
    s1_ref : (1, Cp)            f32   folded BN1 scale = gamma / sqrt(var+eps)
    b1_ref : (1, Cp)            f32   folded BN1 bias  = beta - mean * scale
    w2_ref : (3, 3*Cp, Cp)      bf16  conv2 weights
    s2_ref : (1, Cp)            f32   folded BN2 scale
    b2_ref : (1, Cp)            f32   folded BN2 bias
    o_ref  : (nb, H, W, Cp)     f32   output
    mid_ref: (nb, H+2, W+2, Cp) bf16  VMEM scratch: relu(bn1(conv1)); its
                                      1-pixel ring is conv2's zero padding.
    """
    nb, Hp, Wp, Cp = xp_ref.shape
    H, W = Hp - 2, Wp - 2
    M = nb * H * W
    K3 = 3 * Cp

    def conv3x3(slab_fn, w_ref):
        # slab_fn(ky) -> (nb, H, W+2, Cp) bf16 row slab.
        # kx-im2col: concat the 3 kx shifts along lanes -> one K=3*Cp matmul
        # per ky (3 deep dots per conv instead of 9 shallow K=Cp dots).
        acc = None
        for ky in range(3):
            slab = slab_fn(ky)
            patch = jnp.concatenate(
                [slab[:, :, 0:W, :],
                 slab[:, :, 1:1 + W, :],
                 slab[:, :, 2:2 + W, :]], axis=-1).reshape(M, K3)
            part = jnp.dot(patch, w_ref[ky],
                           preferred_element_type=jnp.float32)
            acc = part if acc is None else acc + part   # init with first dot
        return acc                                      # (M, Cp) f32

    # ---- conv1 (interior only: no wasted halo-ring MXU flops) + bn1 + relu --
    acc1 = conv3x3(lambda ky: xp_ref[:, ky:ky + H, :, :], w1_ref)
    h1 = jnp.maximum(acc1 * s1_ref[...] + b1_ref[...], 0.0)

    # conv2's implicit zero padding = the scratch's 1-pixel ring.  Re-zero it
    # every step (one cheap dense bf16 vst pass; no first-step pl.when that
    # would break under megacore batch splitting), then write the interior.
    mid_ref[...] = jnp.zeros_like(mid_ref)
    mid_ref[:, 1:1 + H, 1:1 + W, :] = h1.astype(jnp.bfloat16).reshape(nb, H, W, Cp)

    # ---- conv2 + bn2 + residual + relu --------------------------------------
    acc2 = conv3x3(lambda ky: mid_ref[:, ky:ky + H, :, :], w2_ref)
    identity = xp_ref[:, 1:1 + H, 1:1 + W, :].astype(jnp.float32).reshape(M, Cp)
    out = jnp.maximum(acc2 * s2_ref[...] + b2_ref[...] + identity, 0.0)
    o_ref[...] = out.reshape(nb, H, W, Cp)


def _round_up(n, m):
    return ((n + m - 1) // m) * m


def _vmem_limit_bytes():
    """48 MiB cap (safe on v7x's 64 MiB VMEM); raised on 128 MiB chips."""
    try:
        kind = jax.devices()[0].device_kind.lower()
    except Exception:
        return 48 * 1024 * 1024
    if ("v5 lite" in kind) or ("v5e" in kind) or ("v6" in kind):
        return 100 * 1024 * 1024
    return 48 * 1024 * 1024


def basic_block_pallas_nhwc(x_nhwc, params, *, images_per_step=1,
                            return_padded=False):
    """Fused BasicBlock on an NHWC input. Returns NHWC f32.

    With return_padded=True the (B, H, W, Cp) channel-padded result is
    returned as-is (padded channels are exactly zero because the folded BN
    scale/bias are zero there), so chained blocks can skip the [..., :C]
    slice and the NCHW<->NHWC transposes entirely.
    """
    B, H, W, C = x_nhwc.shape
    inplanes, planes = params["w1"].shape[2], params["w1"].shape[-1]
    assert C == inplanes == planes, \
        "default BasicBlock: downsample=None => inplanes == planes, stride == 1"
    nb = images_per_step
    assert B % nb == 0, "images_per_step must divide the batch"

    # Lane-dense channels (multiple of 128).  The 1-pixel conv1 halo pad is
    # fused into the same jnp.pad, and the input is shipped as bf16 (halves
    # input HBM DMA; the MXU consumes bf16 anyway).
    Cp = max(128, _round_up(C, 128))
    pc = Cp - C
    xp = jnp.pad(x_nhwc.astype(jnp.bfloat16),
                 ((0, 0), (1, 1), (1, 1), (0, pc)))

    def prep_w(w):
        wp = jnp.pad(w, ((0, 0), (0, 0), (0, pc), (0, pc)))
        # (3, 3, Cp, Cp) HWIO -> (3, 3*Cp, Cp): rows of w[ky] are kx*Cp + cin,
        # matching the kernel's kx-im2col lane-concatenation order.
        return wp.reshape(3, 3 * Cp, Cp).astype(jnp.bfloat16)

    w1 = prep_w(params["w1"])
    w2 = prep_w(params["w2"])

    def fold_bn(g, b, m, v):
        s = g / jnp.sqrt(v + EPS)
        t = b - m * s
        s = jnp.pad(s, (0, pc)).reshape(1, Cp).astype(jnp.float32)
        t = jnp.pad(t, (0, pc)).reshape(1, Cp).astype(jnp.float32)
        return s, t

    s1, b1 = fold_bn(params["g1"], params["b1"], params["m1"], params["v1"])
    s2, b2 = fold_bn(params["g2"], params["b2"], params["m2"], params["v2"])

    in_img_spec = pl.BlockSpec((nb, H + 2, W + 2, Cp), lambda b: (b, 0, 0, 0))
    out_img_spec = pl.BlockSpec((nb, H, W, Cp), lambda b: (b, 0, 0, 0))
    # TODO(synk): grid-invariant weight/BN blocks are still double-buffered by
    #             the default pipeline; at Cp>=512 single-buffer them
    #             (pipeline_mode=pl.Buffered(1)) to recover ~9 MiB on v7x.
    w_spec = pl.BlockSpec((3, 3 * Cp, Cp), lambda b: (0, 0, 0))
    vec_spec = pl.BlockSpec((1, Cp), lambda b: (0, 0))

    flops = 2 * (2 * 9 * B * H * W * Cp * Cp)            # two 3x3 convs
    bytes_accessed = (xp.size * 2 + B * H * W * Cp * 4 +
                      (w1.size + w2.size) * 2 + 4 * Cp * 4)

    out_padded = pl.pallas_call(
        basic_block_kernel,
        out_shape=jax.ShapeDtypeStruct((B, H, W, Cp), jnp.float32),
        grid=(B // nb,),
        in_specs=[in_img_spec, w_spec, vec_spec, vec_spec,
                  w_spec, vec_spec, vec_spec],
        out_specs=out_img_spec,
        scratch_shapes=[pltpu.VMEM((nb, H + 2, W + 2, Cp), jnp.bfloat16)],
        compiler_params=pltpu.CompilerParams(
            dimension_semantics=("parallel",),
            vmem_limit_bytes=_vmem_limit_bytes(),
        ),
        cost_estimate=pl.CostEstimate(
            flops=flops, transcendentals=0, bytes_accessed=bytes_accessed),
    )(xp, w1, s1, b1, w2, s2, b2)

    if return_padded:
        return out_padded
    return out_padded[..., :C]


def basic_block_pallas(x_nchw, params, *, images_per_step=1):
    """PyTorch-layout wrapper: (B, C, H, W) f32 in, (B, C, H, W) f32 out."""
    x = jnp.transpose(x_nchw, (0, 2, 3, 1))               # NCHW -> NHWC
    out = basic_block_pallas_nhwc(x, params, images_per_step=images_per_step)
    return jnp.transpose(out, (0, 3, 1, 2))               # NHWC -> NCHW


def basic_block_reference(x_nchw, params):
    """Pure-JAX f32 reference (inference-mode BN) for correctness checking."""
    x = jnp.transpose(x_nchw, (0, 2, 3, 1)).astype(jnp.float32)

    def conv(v, w):
        return jax.lax.conv_general_dilated(
            v, w, window_strides=(1, 1), padding="SAME",
            dimension_numbers=("NHWC", "HWIO", "NHWC"))

    def bn(v, g, b, m, v_):
        return (v - m) / jnp.sqrt(v_ + EPS) * g + b

    out = jax.nn.relu(bn(conv(x, params["w1"]),
                         params["g1"], params["b1"], params["m1"], params["v1"]))
    out = bn(conv(out, params["w2"]),
             params["g2"], params["b2"], params["m2"], params["v2"])
    out = jax.nn.relu(out + x)
    return jnp.transpose(out, (0, 3, 1, 2))


def make_params(key, inplanes, planes):
    ks = jax.random.split(key, 8)
    w1 = 0.1 * jax.random.normal(ks[0], (3, 3, inplanes, planes), jnp.float32)
    w2 = 0.1 * jax.random.normal(ks[1], (3, 3, planes, planes), jnp.float32)
    g1 = 1.0 + 0.1 * jax.random.normal(ks[2], (planes,), jnp.float32)
    b1 = 0.1 * jax.random.normal(ks[3], (planes,), jnp.float32)
    g2 = 1.0 + 0.1 * jax.random.normal(ks[4], (planes,), jnp.float32)
    b2 = 0.1 * jax.random.normal(ks[5], (planes,), jnp.float32)
    m1 = 0.05 * jnp.arange(planes, dtype=jnp.float32)
    v1 = 1.0 + 0.1 * jnp.arange(planes, dtype=jnp.float32)
    m2 = -0.03 * jnp.arange(planes, dtype=jnp.float32)
    v2 = 1.0 + 0.05 * jnp.arange(planes, dtype=jnp.float32)
    return dict(w1=w1, w2=w2, g1=g1, b1=b1, m1=m1, v1=v1,
                g2=g2, b2=b2, m2=m2, v2=v2)


if __name__ == "__main__":
    key = jax.random.PRNGKey(0)
    k_x, k_p = jax.random.split(key)

    B, C, H, W = 2, 4, 16, 16            # inplanes = planes = 4, stride = 1
    x = jax.random.normal(k_x, (B, C, H, W), jnp.float32)
    params = make_params(k_p, C, C)

    ref = jax.block_until_ready(basic_block_reference(x, params))

    # One image per grid step (batch axis is "parallel": megacore splits it).
    out = jax.block_until_ready(basic_block_pallas(x, params))
    # Tolerance dominated by the bf16 MXU inputs (reference is pure f32).
    np.testing.assert_allclose(np.asarray(out), np.asarray(ref),
                               rtol=5e-2, atol=5e-2)

    # Larger block: 2 images per grid step (v5e/v6e small-spatial-stage path).
    x_nhwc = jnp.transpose(x, (0, 2, 3, 1))
    ref_nhwc = jnp.transpose(ref, (0, 2, 3, 1))
    out2 = jax.block_until_ready(
        basic_block_pallas_nhwc(x_nhwc, params, images_per_step=2))
    np.testing.assert_allclose(np.asarray(out2), np.asarray(ref_nhwc),
                               rtol=5e-2, atol=5e-2)

    print("KERNEL_OK")
</pallas_src>

<mosaic_0001>
module attributes {stable_mosaic.version = 11 : i64} {
  func.func @basic_block_kernel(%arg0: i32, %arg1: memref<1x18x18x128xbf16, #tpu.memory_space<vmem>>, %arg2: memref<3x384x128xbf16, #tpu.memory_space<vmem>>, %arg3: memref<1x128xf32, #tpu.memory_space<vmem>>, %arg4: memref<1x128xf32, #tpu.memory_space<vmem>>, %arg5: memref<3x384x128xbf16, #tpu.memory_space<vmem>>, %arg6: memref<1x128xf32, #tpu.memory_space<vmem>>, %arg7: memref<1x128xf32, #tpu.memory_space<vmem>>, %arg8: memref<1x16x16x128xf32, #tpu.memory_space<vmem>>, %arg9: memref<1x18x18x128xbf16, #tpu.memory_space<vmem>>) attributes {dimension_semantics = [#tpu.dimension_semantics<parallel>], iteration_bounds = array<i64: 2>, scalar_prefetch = 0 : i64, scratch_operands = 1 : i64, tpu.core_type = #tpu.core_type<tc>, window_params = [{transform_indices = @transform_0, window_bounds = array<i64: 1, 18, 18, 128>}, {pipeline_mode = #tpu.pipeline_mode<synchronous>, transform_indices = @transform_1, window_bounds = array<i64: 3, 384, 128>}, {pipeline_mode = #tpu.pipeline_mode<synchronous>, transform_indices = @transform_2, window_bounds = array<i64: 1, 128>}, {pipeline_mode = #tpu.pipeline_mode<synchronous>, transform_indices = @transform_3, window_bounds = array<i64: 1, 128>}, {pipeline_mode = #tpu.pipeline_mode<synchronous>, transform_indices = @transform_4, window_bounds = array<i64: 3, 384, 128>}, {pipeline_mode = #tpu.pipeline_mode<synchronous>, transform_indices = @transform_5, window_bounds = array<i64: 1, 128>}, {pipeline_mode = #tpu.pipeline_mode<synchronous>, transform_indices = @transform_6, window_bounds = array<i64: 1, 128>}, {transform_indices = @transform_7, window_bounds = array<i64: 1, 16, 16, 128>}]} {
    %c0 = arith.constant 0 : index
    %c0_0 = arith.constant 0 : index
    %c0_1 = arith.constant 0 : index
    %c0_2 = arith.constant 0 : index
    %0 = vector.load %arg1[%c0, %c0_0, %c0_1, %c0_2] : memref<1x18x18x128xbf16, #tpu.memory_space<vmem>>, vector<1x16x18x128xbf16>
    %1 = vector.extract_strided_slice %0 {offsets = [0, 0, 0, 0], sizes = [1, 16, 16, 128], strides = [1, 1, 1, 1]} : vector<1x16x18x128xbf16> to vector<1x16x16x128xbf16>
    %2 = vector.extract_strided_slice %0 {offsets = [0, 0, 1, 0], sizes = [1, 16, 16, 128], strides = [1, 1, 1, 1]} : vector<1x16x18x128xbf16> to vector<1x16x16x128xbf16>
    %3 = vector.extract_strided_slice %0 {offsets = [0, 0, 2, 0], sizes = [1, 16, 16, 128], strides = [1, 1, 1, 1]} : vector<1x16x18x128xbf16> to vector<1x16x16x128xbf16>
    %4 = tpu.concatenate %1, %2, %3 in 3 : vector<1x16x16x128xbf16>, vector<1x16x16x128xbf16>, vector<1x16x16x128xbf16> -> vector<1x16x16x384xbf16>
    %5 = vector.shape_cast %4 : vector<1x16x16x384xbf16> to vector<256x384xbf16>
    %c0_3 = arith.constant 0 : index
    %c0_4 = arith.constant 0 : index
    %c0_5 = arith.constant 0 : index
    %6 = vector.load %arg2[%c0_3, %c0_4, %c0_5] : memref<3x384x128xbf16, #tpu.memory_space<vmem>>, vector<1x384x128xbf16>
    %7 = vector.shape_cast %6 : vector<1x384x128xbf16> to vector<384x128xbf16>
    %cst = arith.constant dense<0.000000e+00> : vector<256x128xf32>
    %8 = tpu.matmul %5, %7, %cst {dimension_numbers = #tpu.dot_dimension_numbers<[1], [0], [0], [1], [0, 0, 1, 1], [], []>} : vector<256x384xbf16>, vector<384x128xbf16>, vector<256x128xf32> -> vector<256x128xf32>
    %c0_6 = arith.constant 0 : index
    %c1 = arith.constant 1 : index
    %c0_7 = arith.constant 0 : index
    %c0_8 = arith.constant 0 : index
    %9 = vector.load %arg1[%c0_6, %c1, %c0_7, %c0_8] : memref<1x18x18x128xbf16, #tpu.memory_space<vmem>>, vector<1x16x18x128xbf16>
    %10 = vector.extract_strided_slice %9 {offsets = [0, 0, 0, 0], sizes = [1, 16, 16, 128], strides = [1, 1, 1, 1]} : vector<1x16x18x128xbf16> to vector<1x16x16x128xbf16>
    %11 = vector.extract_strided_slice %9 {offsets = [0, 0, 1, 0], sizes = [1, 16, 16, 128], strides = [1, 1, 1, 1]} : vector<1x16x18x128xbf16> to vector<1x16x16x128xbf16>
    %12 = vector.extract_strided_slice %9 {offsets = [0, 0, 2, 0], sizes = [1, 16, 16, 128], strides = [1, 1, 1, 1]} : vector<1x16x18x128xbf16> to vector<1x16x16x128xbf16>
    %13 = tpu.concatenate %10, %11, %12 in 3 : vector<1x16x16x128xbf16>, vector<1x16x16x128xbf16>, vector<1x16x16x128xbf16> -> vector<1x16x16x384xbf16>
    %14 = vector.shape_cast %13 : vector<1x16x16x384xbf16> to vector<256x384xbf16>
    %c1_9 = arith.constant 1 : index
    %c0_10 = arith.constant 0 : index
    %c0_11 = arith.constant 0 : index
    %15 = vector.load %arg2[%c1_9, %c0_10, %c0_11] : memref<3x384x128xbf16, #tpu.memory_space<vmem>>, vector<1x384x128xbf16>
    %16 = vector.shape_cast %15 : vector<1x384x128xbf16> to vector<384x128xbf16>
    %cst_12 = arith.constant dense<0.000000e+00> : vector<256x128xf32>
    %17 = tpu.matmul %14, %16, %cst_12 {dimension_numbers = #tpu.dot_dimension_numbers<[1], [0], [0], [1], [0, 0, 1, 1], [], []>} : vector<256x384xbf16>, vector<384x128xbf16>, vector<256x128xf32> -> vector<256x128xf32>
    %18 = arith.addf %8, %17 : vector<256x128xf32>
    %c0_13 = arith.constant 0 : index
    %c2 = arith.constant 2 : index
    %c0_14 = arith.constant 0 : index
    %c0_15 = arith.constant 0 : index
    %19 = vector.load %arg1[%c0_13, %c2, %c0_14, %c0_15] : memref<1x18x18x128xbf16, #tpu.memory_space<vmem>>, vector<1x16x18x128xbf16>
    %20 = vector.extract_strided_slice %19 {offsets = [0, 0, 0, 0], sizes = [1, 16, 16, 128], strides = [1, 1, 1, 1]} : vector<1x16x18x128xbf16> to vector<1x16x16x128xbf16>
    %21 = vector.extract_strided_slice %19 {offsets = [0, 0, 1, 0], sizes = [1, 16, 16, 128], strides = [1, 1, 1, 1]} : vector<1x16x18x128xbf16> to vector<1x16x16x128xbf16>
    %22 = vector.extract_strided_slice %19 {offsets = [0, 0, 2, 0], sizes = [1, 16, 16, 128], strides = [1, 1, 1, 1]} : vector<1x16x18x128xbf16> to vector<1x16x16x128xbf16>
    %23 = tpu.concatenate %20, %21, %22 in 3 : vector<1x16x16x128xbf16>, vector<1x16x16x128xbf16>, vector<1x16x16x128xbf16> -> vector<1x16x16x384xbf16>
    %24 = vector.shape_cast %23 : vector<1x16x16x384xbf16> to vector<256x384xbf16>
    %c2_16 = arith.constant 2 : index
    %c0_17 = arith.constant 0 : index
    %c0_18 = arith.constant 0 : index
    %25 = vector.load %arg2[%c2_16, %c0_17, %c0_18] : memref<3x384x128xbf16, #tpu.memory_space<vmem>>, vector<1x384x128xbf16>
    %26 = vector.shape_cast %25 : vector<1x384x128xbf16> to vector<384x128xbf16>
    %cst_19 = arith.constant dense<0.000000e+00> : vector<256x128xf32>
    %27 = tpu.matmul %24, %26, %cst_19 {dimension_numbers = #tpu.dot_dimension_numbers<[1], [0], [0], [1], [0, 0, 1, 1], [], []>} : vector<256x384xbf16>, vector<384x128xbf16>, vector<256x128xf32> -> vector<256x128xf32>
    %28 = arith.addf %18, %27 : vector<256x128xf32>
    %c0_20 = arith.constant 0 : index
    %c0_21 = arith.constant 0 : index
    %29 = vector.load %arg3[%c0_20, %c0_21] : memref<1x128xf32, #tpu.memory_space<vmem>>, vector<1x128xf32>
    %30 = vector.broadcast %29 : vector<1x128xf32> to vector<256x128xf32>
    %31 = arith.mulf %28, %30 : vector<256x128xf32>
    %c0_22 = arith.constant 0 : index
    %c0_23 = arith.constant 0 : index
    %32 = vector.load %arg4[%c0_22, %c0_23] : memref<1x128xf32, #tpu.memory_space<vmem>>, vector<1x128xf32>
    %33 = vector.broadcast %32 : vector<1x128xf32> to vector<256x128xf32>
    %34 = arith.addf %31, %33 : vector<256x128xf32>
    %cst_24 = arith.constant 0.000000e+00 : f32
    %35 = vector.broadcast %cst_24 : f32 to vector<256x128xf32>
    %36 = arith.maximumf %34, %35 : vector<256x128xf32>
    %cst_25 = arith.constant 0.000000e+00 : bf16
    %37 = vector.broadcast %cst_25 : bf16 to vector<1x18x18x128xbf16>
    %c0_26 = arith.constant 0 : index
    %c0_27 = arith.constant 0 : index
    %c0_28 = arith.constant 0 : index
    %c0_29 = arith.constant 0 : index
    %38 = vector.load %arg9[%c0_26, %c0_27, %c0_28, %c0_29] : memref<1x18x18x128xbf16, #tpu.memory_space<vmem>>, vector<1x18x18x128xbf16>
    tpu.vector_store %arg9[%c0_26, %c0_27, %c0_28, %c0_29], %37 {strides = array<i32>} : memref<1x18x18x128xbf16, #tpu.memory_space<vmem>>, vector<1x18x18x128xbf16>,
    %39 = arith.truncf %36 : vector<256x128xf32> to vector<256x128xbf16>
    %40 = vector.shape_cast %39 : vector<256x128xbf16> to vector<1x16x16x128xbf16>
    %c0_30 = arith.constant 0 : index
    %c1_31 = arith.constant 1 : index
    %c1_32 = arith.constant 1 : index
    %c0_33 = arith.constant 0 : index
    %41 = vector.load %arg9[%c0_30, %c1_31, %c1_32, %c0_33] : memref<1x18x18x128xbf16, #tpu.memory_space<vmem>>, vector<1x16x16x128xbf16>
    tpu.vector_store %arg9[%c0_30, %c1_31, %c1_32, %c0_33], %40 {strides = array<i32>} : memref<1x18x18x128xbf16, #tpu.memory_space<vmem>>, vector<1x16x16x128xbf16>,
    %c0_34 = arith.constant 0 : index
    %c0_35 = arith.constant 0 : index
    %c0_36 = arith.constant 0 : index
    %c0_37 = arith.constant 0 : index
    %42 = vector.load %arg9[%c0_34, %c0_35, %c0_36, %c0_37] : memref<1x18x18x128xbf16, #tpu.memory_space<vmem>>, vector<1x16x18x128xbf16>
    %43 = vector.extract_strided_slice %42 {offsets = [0, 0, 0, 0], sizes = [1, 16, 16, 128], strides = [1, 1, 1, 1]} : vector<1x16x18x128xbf16> to vector<1x16x16x128xbf16>
    %44 = vector.extract_strided_slice %42 {offsets = [0, 0, 1, 0], sizes = [1, 16, 16, 128], strides = [1, 1, 1, 1]} : vector<1x16x18x128xbf16> to vector<1x16x16x128xbf16>
    %45 = vector.extract_strided_slice %42 {offsets = [0, 0, 2, 0], sizes = [1, 16, 16, 128], strides = [1, 1, 1, 1]} : vector<1x16x18x128xbf16> to vector<1x16x16x128xbf16>
    %46 = tpu.concatenate %43, %44, %45 in 3 : vector<1x16x16x128xbf16>, vector<1x16x16x128xbf16>, vector<1x16x16x128xbf16> -> vector<1x16x16x384xbf16>
    %47 = vector.shape_cast %46 : vector<1x16x16x384xbf16> to vector<256x384xbf16>
    %c0_38 = arith.constant 0 : index
    %c0_39 = arith.constant 0 : index
    %c0_40 = arith.constant 0 : index
    %48 = vector.load %arg5[%c0_38, %c0_39, %c0_40] : memref<3x384x128xbf16, #tpu.memory_space<vmem>>, vector<1x384x128xbf16>
    %49 = vector.shape_cast %48 : vector<1x384x128xbf16> to vector<384x128xbf16>
    %cst_41 = arith.constant dense<0.000000e+00> : vector<256x128xf32>
    %50 = tpu.matmul %47, %49, %cst_41 {dimension_numbers = #tpu.dot_dimension_numbers<[1], [0], [0], [1], [0, 0, 1, 1], [], []>} : vector<256x384xbf16>, vector<384x128xbf16>, vector<256x128xf32> -> vector<256x128xf32>
    %c0_42 = arith.constant 0 : index
    %c1_43 = arith.constant 1 : index
    %c0_44 = arith.constant 0 : index
    %c0_45 = arith.constant 0 : index
    %51 = vector.load %arg9[%c0_42, %c1_43, %c0_44, %c0_45] : memref<1x18x18x128xbf16, #tpu.memory_space<vmem>>, vector<1x16x18x128xbf16>
    %52 = vector.extract_strided_slice %51 {offsets = [0, 0, 0, 0], sizes = [1, 16, 16, 128], strides = [1, 1, 1, 1]} : vector<1x16x18x128xbf16> to vector<1x16x16x128xbf16>
    %53 = vector.extract_strided_slice %51 {offsets = [0, 0, 1, 0], sizes = [1, 16, 16, 128], strides = [1, 1, 1, 1]} : vector<1x16x18x128xbf16> to vector<1x16x16x128xbf16>
    %54 = vector.extract_strided_slice %51 {offsets = [0, 0, 2, 0], sizes = [1, 16, 16, 128], strides = [1, 1, 1, 1]} : vector<1x16x18x128xbf16> to vector<1x16x16x128xbf16>
    %55 = tpu.concatenate %52, %53, %54 in 3 : vector<1x16x16x128xbf16>, vector<1x16x16x128xbf16>, vector<1x16x16x128xbf16> -> vector<1x16x16x384xbf16>
    %56 = vector.shape_cast %55 : vector<1x16x16x384xbf16> to vector<256x384xbf16>
    %c1_46 = arith.constant 1 : index
    %c0_47 = arith.constant 0 : index
    %c0_48 = arith.constant 0 : index
    %57 = vector.load %arg5[%c1_46, %c0_47, %c0_48] : memref<3x384x128xbf16, #tpu.memory_space<vmem>>, vector<1x384x128xbf16>
    %58 = vector.shape_cast %57 : vector<1x384x128xbf16> to vector<384x128xbf16>
    %cst_49 = arith.constant dense<0.000000e+00> : vector<256x128xf32>
    %59 = tpu.matmul %56, %58, %cst_49 {dimension_numbers = #tpu.dot_dimension_numbers<[1], [0], [0], [1], [0, 0, 1, 1], [], []>} : vector<256x384xbf16>, vector<384x128xbf16>, vector<256x128xf32> -> vector<256x128xf32>
    %60 = arith.addf %50, %59 : vector<256x128xf32>
    %c0_50 = arith.constant 0 : index
    %c2_51 = arith.constant 2 : index
    %c0_52 = arith.constant 0 : index
    %c0_53 = arith.constant 0 : index
    %61 = vector.load %arg9[%c0_50, %c2_51, %c0_52, %c0_53] : memref<1x18x18x128xbf16, #tpu.memory_space<vmem>>, vector<1x16x18x128xbf16>
    %62 = vector.extract_strided_slice %61 {offsets = [0, 0, 0, 0], sizes = [1, 16, 16, 128], strides = [1, 1, 1, 1]} : vector<1x16x18x128xbf16> to vector<1x16x16x128xbf16>
    %63 = vector.extract_strided_slice %61 {offsets = [0, 0, 1, 0], sizes = [1, 16, 16, 128], strides = [1, 1, 1, 1]} : vector<1x16x18x128xbf16> to vector<1x16x16x128xbf16>
    %64 = vector.extract_strided_slice %61 {offsets = [0, 0, 2, 0], sizes = [1, 16, 16, 128], strides = [1, 1, 1, 1]} : vector<1x16x18x128xbf16> to vector<1x16x16x128xbf16>
    %65 = tpu.concatenate %62, %63, %64 in 3 : vector<1x16x16x128xbf16>, vector<1x16x16x128xbf16>, vector<1x16x16x128xbf16> -> vector<1x16x16x384xbf16>
    %66 = vector.shape_cast %65 : vector<1x16x16x384xbf16> to vector<256x384xbf16>
    %c2_54 = arith.constant 2 : index
    %c0_55 = arith.constant 0 : index
    %c0_56 = arith.constant 0 : index
    %67 = vector.load %arg5[%c2_54, %c0_55, %c0_56] : memref<3x384x128xbf16, #tpu.memory_space<vmem>>, vector<1x384x128xbf16>
    %68 = vector.shape_cast %67 : vector<1x384x128xbf16> to vector<384x128xbf16>
    %cst_57 = arith.constant dense<0.000000e+00> : vector<256x128xf32>
    %69 = tpu.matmul %66, %68, %cst_57 {dimension_numbers = #tpu.dot_dimension_numbers<[1], [0], [0], [1], [0, 0, 1, 1], [], []>} : vector<256x384xbf16>, vector<384x128xbf16>, vector<256x128xf32> -> vector<256x128xf32>
    %70 = arith.addf %60, %69 : vector<256x128xf32>
    %c0_58 = arith.constant 0 : index
    %c1_59 = arith.constant 1 : index
    %c1_60 = arith.constant 1 : index
    %c0_61 = arith.constant 0 : index
    %71 = vector.load %arg1[%c0_58, %c1_59, %c1_60, %c0_61] : memref<1x18x18x128xbf16, #tpu.memory_space<vmem>>, vector<1x16x16x128xbf16>
    %72 = arith.extf %71 : vector<1x16x16x128xbf16> to vector<1x16x16x128xf32>
    %73 = vector.shape_cast %72 : vector<1x16x16x128xf32> to vector<256x128xf32>
    %c0_62 = arith.constant 0 : index
    %c0_63 = arith.constant 0 : index
    %74 = vector.load %arg6[%c0_62, %c0_63] : memref<1x128xf32, #tpu.memory_space<vmem>>, vector<1x128xf32>
    %75 = vector.broadcast %74 : vector<1x128xf32> to vector<256x128xf32>
    %76 = arith.mulf %70, %75 : vector<256x128xf32>
    %c0_64 = arith.constant 0 : index
    %c0_65 = arith.constant 0 : index
    %77 = vector.load %arg7[%c0_64, %c0_65] : memref<1x128xf32, #tpu.memory_space<vmem>>, vector<1x128xf32>
    %78 = vector.broadcast %77 : vector<1x128xf32> to vector<256x128xf32>
    %79 = arith.addf %76, %78 : vector<256x128xf32>
    %80 = arith.addf %79, %73 : vector<256x128xf32>
    %cst_66 = arith.constant 0.000000e+00 : f32
    %81 = vector.broadcast %cst_66 : f32 to vector<256x128xf32>
    %82 = arith.maximumf %80, %81 : vector<256x128xf32>
    %83 = vector.shape_cast %82 : vector<256x128xf32> to vector<1x16x16x128xf32>
    %c0_67 = arith.constant 0 : index
    %c0_68 = arith.constant 0 : index
    %c0_69 = arith.constant 0 : index
    %c0_70 = arith.constant 0 : index
    %84 = vector.load %arg8[%c0_67, %c0_68, %c0_69, %c0_70] : memref<1x16x16x128xf32, #tpu.memory_space<vmem>>, vector<1x16x16x128xf32>
    tpu.vector_store %arg8[%c0_67, %c0_68, %c0_69, %c0_70], %83 {strides = array<i32>} : memref<1x16x16x128xf32, #tpu.memory_space<vmem>>, vector<1x16x16x128xf32>,
    return
  }
  func.func @transform_0(%arg0: i32) -> (i32, i32, i32, i32) {
    %c0_i32 = arith.constant 0 : i32
    %c0_i32_0 = arith.constant 0 : i32
    %c0_i32_1 = arith.constant 0 : i32
    %c0_i32_2 = arith.constant 0 : i32
    return %arg0, %c0_i32, %c0_i32_0, %c0_i32_1 : i32, i32, i32, i32
  }
  func.func @transform_1(%arg0: i32) -> (i32, i32, i32) {
    %c0_i32 = arith.constant 0 : i32
    %c0_i32_0 = arith.constant 0 : i32
    %c0_i32_1 = arith.constant 0 : i32
    %c0_i32_2 = arith.constant 0 : i32
    return %c0_i32, %c0_i32_0, %c0_i32_1 : i32, i32, i32
  }
  func.func @transform_2(%arg0: i32) -> (i32, i32) {
    %c0_i32 = arith.constant 0 : i32
    %c0_i32_0 = arith.constant 0 : i32
    %c0_i32_1 = arith.constant 0 : i32
    return %c0_i32, %c0_i32_0 : i32, i32
  }
  func.func @transform_3(%arg0: i32) -> (i32, i32) {
    %c0_i32 = arith.constant 0 : i32
    %c0_i32_0 = arith.constant 0 : i32
    %c0_i32_1 = arith.constant 0 : i32
    return %c0_i32, %c0_i32_0 : i32, i32
  }
  func.func @transform_4(%arg0: i32) -> (i32, i32, i32) {
    %c0_i32 = arith.constant 0 : i32
    %c0_i32_0 = arith.constant 0 : i32
    %c0_i32_1 = arith.constant 0 : i32
    %c0_i32_2 = arith.constant 0 : i32
    return %c0_i32, %c0_i32_0, %c0_i32_1 : i32, i32, i32
  }
  func.func @transform_5(%arg0: i32) -> (i32, i32) {
    %c0_i32 = arith.constant 0 : i32
    %c0_i32_0 = arith.constant 0 : i32
    %c0_i32_1 = arith.constant 0 : i32
    return %c0_i32, %c0_i32_0 : i32, i32
  }
  func.func @transform_6(%arg0: i32) -> (i32, i32) {
    %c0_i32 = arith.constant 0 : i32
    %c0_i32_0 = arith.constant 0 : i32
    %c0_i32_1 = arith.constant 0 : i32
    return %c0_i32, %c0_i32_0 : i32, i32
  }
  func.func @transform_7(%arg0: i32) -> (i32, i32, i32, i32) {
    %c0_i32 = arith.constant 0 : i32
    %c0_i32_0 = arith.constant 0 : i32
    %c0_i32_1 = arith.constant 0 : i32
    %c0_i32_2 = arith.constant 0 : i32
    return %arg0, %c0_i32, %c0_i32_0, %c0_i32_1 : i32, i32, i32, i32
  }
}

</mosaic_0001>

<bundles_post_ra>
// kernel: tpu_custom_call.1
= control target key start
LH: loop header
LB: loop body
LE: loop exit
PB: predicated region body
PF: predicated region fallthrough
CT: control target
= control target key end

     0   :  { %12 = vsyncpa [#allocation4], 0  ;;  %s12842_s0 = inlined_call_operand.vmem [shape: bf16[2,18,18,128], index: 0, kind: input, shape index: {}]   ;;  %s12843_s1 = inlined_call_operand.vmem [shape: bf16[3,384,128], index: 1, kind: input, shape index: {}]   ;;  %s12844_s2 = inlined_call_operand.vmem [shape: f32[1,128], index: 2, kind: input, shape index: {}]   ;;  %s12845_s3 = inlined_call_operand.vmem [shape: f32[1,128], index: 3, kind: input, shape index: {}]   ;;  %s12846_s4 = inlined_call_operand.hbm [shape: bf16[3,384,128], index: 4, kind: input, shape index: {}]   ;;  %s12847_s5 = inlined_call_operand.vmem [shape: f32[1,128], index: 5, kind: input, shape index: {}]   ;;  %s12848_s6 = inlined_call_operand.vmem [shape: f32[1,128], index: 6, kind: input, shape index: {}]   ;;  %s12849_s7 = inlined_call_operand.hbm [shape: f32[2,16,16,128], index: 7, kind: output, shape index: {}]  }
   0x1   :  { %13 = vsyncpa [#allocation5], 0 }
   0x2   :  { %15 = vsyncpa [#allocation5 + $0x1], 0  ;;  %s10141_s24 = smov 0   ;;  %s10143_s25 = smov 0  }
   0x3   :  { %s10145_s26 = smov 0   ;;  %s10147_s27 = smov 0  }
   0x4 LB: > { %s10162_s28 = sadd.s32 4294967295, %s10092_s27   ;;  %s7454_s29 = sadd.s32 4294967294, %s10092_s27   ;;  %s10092_s27 = sphi %s10147_s27, %s12925_s27   ;;  %s10088_s26 = sphi %s10145_s26, %s12924_s26   ;;  %s10084_s25 = sphi %s10143_s25, %s12923_s25   ;;  %s10080_s24 = sphi %s10141_s24, %s12922_s24  }
   0x5   : > { %s10166_s30 = sadd.s32 1, %s10092_s27   ;;  %s180_s8 = sadd.s32 1, %s10088_s26 }
   0x6   : > { %s177_s9 = ssub.s32 %s10092_s27, %s10166_s30  ;;  %p190_p0 = scmp.ne.s32.totalorder %s10088_s26, %s10084_s25 }
   0x7   : > { %p178_p1 = scmp.eq.s32.totalorder %s177_s9, 0  ;;  %p191_p2 = scmp.eq.s32.totalorder %s10162_s28, 1 }
   0x8   : > { %p196_p3 = scmp.ne.s32.totalorder %s10084_s25, %s10080_s24  ;;  %p197_p4 = scmp.eq.s32.totalorder %s7454_s29, 1 }
   0x9   : > { %s10177_s10 = scalar_select %p178_p1, %s10088_s26, %s180_s8  }
   0xa   : > { %p10179_p5 = por %p191_p2, %p190_p0  ;;  %p10183_p6 = por %p197_p4, %p196_p3 }
   0xb   : > { %p7455_p7 = scmp.ge.s32.totalorder %s10092_s27, 1  ;;  %p204_p8 = scmp.lt.s32.totalorder %s10092_s27, 3 }
   0xc   : > { %s12853_s11 = scalar_select %p10179_p5, 1, 0 }
   0xd   : > { %s12854_s12 = scalar_select %p10183_p6, 1, 0 }
   0xe   : > { %p12850_p9 = scmp.eq.s32.totalorder %s10162_s28, 0  ;;  %p10190_p10 = pnand %p7455_p7, %p204_p8 }
   0xf   : > { %s10094_s14 = smov [#allocation3]   ;;  %s9998_s19 = scalar_lea.hbm %s12846_s4, 9216 }
  0x10   : > { %s12855_s13 = scalar_select %p10190_p10, 1, 0 }
  0x11   : > { %s225_s15 = sshll.u32 %s10094_s14, 4  ;;  %p9583_p11 = pneg %p10190_p10  ;;  %s226_s15 = int_to_ptr.vmem [resolvable:$true] %s225_s15 }
  0x12   : > { %p9999_p13 = scmp.ne.s32.totalorder %s12846_s4, %s9998_s19  ;;  %p10005_p3 = scmp.lt.u32.totalorder %s9998_s19, %s12846_s4 }
  0x13   : > { %p10198_p12 = pnand %p12850_p9, %p9583_p11 }
  0x15   : > { %p10000_p0 = pneg %p10198_p12 }
  0x17   : > { %p10001_p1 = pnand %p10000_p0, %p9999_p13 }
  0x19   : > { %p10002_p2 = pneg %p10001_p1 }
  0x1b   : > { %p10007_p4 = pnand %p10005_p3, %p10002_p2 }
  0x1d   : > { %10010 = shalt.err (!%p10007_p4)
}
  0x1e   : > { %s10011_s29 = scalar_lea.vmem %s226_s15, 9216  ;;  %p10019_p9 = scmp.lt.s32.totalorder %s226_s15, %s226_s15 }
  0x1f   : > { %p10012_p7 = scmp.ne.s32.totalorder %s226_s15, %s10011_s29  ;;  %p10020_p6 = scmp.lt.s32.totalorder %s10011_s29, %s10011_s29 }
  0x21   : > { %p10014_p8 = pnand %p10012_p7, %p10000_p0  ;;  %p10021_p5 = por %p10020_p6, %p10019_p9 }
  0x23   : > { %p10015_p11 = pneg %p10014_p8 }
  0x25   : > { %p10022_p10 = pnand %p10021_p5, %p10015_p11 }
  0x27   : > { %10025 = shalt.err (!%p10022_p10)
}
  0x28   : > { %s10095_s8 = smov 64   ;;  %s10096_s9 = smov 4  }
  0x29   : > { %9586 = dma.hbm_to_vmem [thread:$0]  (!%p10198_p12), %s12846_s4, 9216, %s226_s15, [#allocation4], %s10095_s8, %s10095_s8, %s10096_s9  }
  0x2a   : > { %p12857_p13 = scmp.ne.s32.totalorder %s12855_s13, 0 }
  0x2c   : > { %255 = sbr.rel (%p12857_p13) target bundleno = 1158 (0x486), region = 48 }
  0x33   : > { %p12858_p1 = scmp.eq.s32.totalorder %s10162_s28, 0 }
  0x35   : > { %10071 = dma.done.wait (%p12858_p1), [#allocation4], 9216   ;;  %p12859_p0 = pmov %p12858_p1 }
  0x36   : > { %v9632_v0 = vld [vmem:[%s12843_s1 + $0x100] sm:$0xff]   ;;  %v9636_v4 = vld [vmem:[%s12843_s1 + $0x108] sm:$0xff]   ;;  %v9640_v8 = vld [vmem:[%s12843_s1 + $0x110] sm:$0xff]   ;;  %p287_p5 = scmp.lt.s32.totalorder %s10162_s28, 1  ;;  %vm485_vm0 = vsmask.f32 7424 }
  0x37   : > { %10073 = vsyncadd (%p12859_p0), [#allocation4], 4294958080  ;;  %v9633_v1 = vld [vmem:[%s12843_s1 + $0xc0] sm:$0xff]   ;;  %8152 = vmatprep.subr.bf16.mxu0 %v9632_v0  ;;  %v9637_v5 = vld [vmem:[%s12843_s1 + $0xc8] sm:$0xff]   ;;  %vm694_vm1 = vcmask 1046528   ;;  %vm3849_vm2 = vcmask 1043456  }
  0x38   : > { %v9634_v2 = vld [vmem:[%s12843_s1 + $0x40] sm:$0xff]   ;;  %8153 = vmatpush3.bf16.msra.mxu0 %v9633_v1  ;;  %v9638_v6 = vld [vmem:[%s12843_s1 + $0x48] sm:$0xff]   ;;  %v9641_v9 = vld [vmem:[%s12843_s1 + $0xd0] sm:$0xff]   ;;  %s288_s16 = scalar_select %p287_p5, %s10162_s28, 1  ;;  %vm3850_vm3 = vsmask.f32 7938 }
  0x39   : > { %v9635_v3 = vld [vmem:[%s12843_s1] sm:$0xff]   ;;  %8288 = vmatprep.subr.bf16.mxu1 %v9634_v2  ;;  %8154 = vmatprep.subr.bf16.mxu0 %v9636_v4  ;;  %v9639_v7 = vld [vmem:[%s12843_s1 + $0x8] sm:$0xff]   ;;  %v9642_v10 = vld [vmem:[%s12843_s1 + $0x50] sm:$0xff]   ;;  %vm3525_vm4 = vsmask.f32 256  ;;  %vm3856_vm6 = vcmask 1040384  }
  0x3a   : > { %8289 = vmatpush3.bf16.msra.mxu1 %v9635_v3  ;;  %v9643_v11 = vld [vmem:[%s12843_s1 + $0x10] sm:$0xff]   ;;  %v9644_v12 = vld [vmem:[%s12843_s1 + $0x118] sm:$0xff]   ;;  %v9648_v16 = vld [vmem:[%s12843_s1 + $0x120] sm:$0xff]   ;;  %s9576_s17 = smul.u32 216, %s288_s16  ;;  %vm3526_vm5 = vsmask.f32 4368 }
  0x3b   : > { %8290 = vmatprep.subr.bf16.mxu1 %v9638_v6  ;;  %v9645_v13 = vld [vmem:[%s12843_s1 + $0xd8] sm:$0xff]   ;;  %v9649_v17 = vld [vmem:[%s12843_s1 + $0xe0] sm:$0xff]   ;;  %v9652_v20 = vld [vmem:[%s12843_s1 + $0x128] sm:$0xff]   ;;  %s284_s14 = sand.u32 1, %s10084_s25   ;;  %p12920_p9 = scmp.ne.s32.totalorder %s12853_s11, 0 }
  0x3c   : > { %8155 = vmatpush3.bf16.msra.mxu0 %v9637_v5  ;;  %v9646_v14 = vld [vmem:[%s12843_s1 + $0x58] sm:$0xff]   ;;  %v9650_v18 = vld [vmem:[%s12843_s1 + $0x60] sm:$0xff]   ;;  %v9653_v21 = vld [vmem:[%s12843_s1 + $0xe8] sm:$0xff]   ;;  %s10322_s8 = scalar_lea.vmem %s12842_s0, %s9576_s17  ;;  %s12582_s17 = sshll.u32 %s284_s14, 8 }
  0x3d   : > { %8156 = vmatprep.subr.bf16.mxu0 %v9640_v8  ;;  %v9647_v15 = vld [vmem:[%s12843_s1 + $0x18] sm:$0xff]   ;;  %v9651_v19 = vld [vmem:[%s12843_s1 + $0x20] sm:$0xff]   ;;  %v9654_v22 = vld [vmem:[%s12843_s1 + $0x68] sm:$0xff]   ;;  %s12612_s20 = scalar_lea.vmem [#allocation6], %s12582_s17  ;;  %s10098_s16 = smov [#allocation6]  }
  0x3e   : > { %8291 = vmatpush3.bf16.msra.mxu1 %v9639_v7  ;;  %v9655_v23 = vld [vmem:[%s12843_s1 + $0x28] sm:$0xff]   ;;  %v9656_v24 = vld [vmem:[%s12843_s1 + $0x130] sm:$0xff]   ;;  %v9660_v28 = vld [vmem:[%s12843_s1 + $0x138] sm:$0xff]   ;;  %s7380_s21 = sshll.u32 %s12612_s20, 4  ;;  %s10030_s29 = sshll.u32 %s10098_s16, 4  ;;  %s12794_s21 = int_to_ptr.vmem [resolvable:$true] %s7380_s21  ;;  %s10031_s29 = int_to_ptr.vmem [resolvable:$false] %s10030_s29 }
  0x3f   : > { %8292 = vmatprep.subr.bf16.mxu1 %v9642_v10  ;;  %v9657_v25 = vld [vmem:[%s12843_s1 + $0xf0] sm:$0xff]   ;;  %v9661_v29 = vld [vmem:[%s12843_s1 + $0xf8] sm:$0xff]   ;;  %v9666_v34 = vld [vmem:[%s12843_s1 + $0x140] sm:$0xff]   ;;  %s10026_s23 = scalar_lea.vmem %s12794_s21, 4096  ;;  %s10032_s9 = scalar_lea.vmem %s10031_s29, 8192 }
  0x40   : > { %8157 = vmatpush3.bf16.msra.mxu0 %v9641_v9  ;;  %v9658_v26 = vld [vmem:[%s12843_s1 + $0x70] sm:$0xff]   ;;  %v9662_v30 = vld [vmem:[%s12843_s1 + $0x78] sm:$0xff]   ;;  %v9667_v38 = vld [vmem:[%s10322_s8] sm:$0xff]   ;;  %p10027_p6 = scmp.ne.s32.totalorder %s12794_s21, %s10026_s23  ;;  %p10033_p2 = scmp.lt.s32.totalorder %s12794_s21, %s10031_s29 }
  0x41   : > { %8158 = vmatprep.subr.bf16.mxu0 %v9644_v12  ;;  %v9659_v27 = vld [vmem:[%s12843_s1 + $0x30] sm:$0xff]   ;;  %v9663_v31 = vld [vmem:[%s12843_s1 + $0x38] sm:$0xff]   ;;  %v9668_v39 = vld [vmem:[%s10322_s8 + $0x8] ss:$0 sps:$4 sm:$0x11]   ;;  %v487_v43 = vshrl.u32 %v9667_v38, 16  ;;  %p10034_p3 = scmp.lt.s32.totalorder %s10032_s9, %s10026_s23 }
  0x42   : > { %8293 = vmatpush3.bf16.msra.mxu1 %v9643_v11  ;;  %v9664_v32 = vld [vmem:[%s10322_s8 + $0xc] sm:$0xff]   ;;  %v9665_v33 = vld [vmem:[%s10322_s8 + $0x14] ss:$0 sps:$4 sm:$0x11]   ;;  %v9669_v40 = vld [vmem:[%s10322_s8 + $0x18] sm:$0xff]   ;;  %v489_v44 = vshll.u32 %v9667_v38, 16  ;;  %p10028_p10 = pnand %p10027_p6, %p12920_p9 }
  0x43   : > { %8294 = vmatprep.subr.bf16.mxu1 %v9646_v14  ;;  %v1001_v35 = vshrl.u32 %v9664_v32, 16  ;;  %v1003_v36 = vshll.u32 %v9664_v32, 16  ;;  %v1008_v37 = vshll.u32 %v9665_v33, 16  ;;  %v494_v45 = vshll.u32 %v9668_v39, 16  ;;  %v9671_v51 = vld [vmem:[%s10322_s8 + $0xc] sm:$0xff]   ;;  %v10338_v53 = vld [vmem:[%s10322_s8 + $0x24] sm:$0xff]   ;;  %vm11396_vm7 = vmand %vm3849_vm2, %vm3850_vm3  ;;  %p10035_p4 = por %p10034_p3, %p10033_p2 }
  0x44   : > { %8159 = vmatpush3.bf16.msra.mxu0 %v9645_v13  ;;  %v1013_v46 = vshrl.u32 %v9669_v40, 16  ;;  %v491_v48 = vrot.slane %v489_v44, 1  ;;  %v9670_v49 = vld [vmem:[%s10322_s8 + $0x20] ss:$0 sps:$4 sm:$0x11]   ;;  %v1015_v50 = vshll.u32 %v9669_v40, 16  ;;  %vm11405_vm8 = vmor %vm3525_vm4, %vm3526_vm5  ;;  %p10029_p12 = pneg %p10028_p10 }
  0x45   : > { %8160 = vmatprep.subr.bf16.mxu0 %v9648_v16  ;;  %v1005_v41 = vrot.slane %v1003_v36, 1  ;;  %v1010_v42 = vrot.slane %v1008_v37, 1  ;;  %v496_v52 = vrot.slane %v494_v45, 1  ;;  %v1020_v57 = vshll.u32 %v9670_v49, 16  ;;  %v9675_v5 = vld [vmem:[%s12843_s1 + $0x148] sm:$0xff]   ;;  %v9676_v8 = vld [vmem:[%s10322_s8 + $0x18] sm:$0xff]   ;;  %vm11413_vm9 = vmand %vm3856_vm6, %vm3525_vm4 }
  0x46   : > { %8295 = vmatpush3.bf16.msra.mxu1 %v9647_v15  ;;  %v492_v55 = vor.u32 %v491_v48, %v487_v43  ;;  %v1017_v56 = vrot.slane %v1015_v50, 1  ;;  %v9672_v58 = vld [vmem:[%s10322_s8 + $0x14] ss:$0 sps:$4 sm:$0x11]   ;;  %v499_v59 = vshrl.u32 %v9671_v51, 16  ;;  %v501_v60 = vshll.u32 %v9671_v51, 16  ;;  %p10036_p7 = pnand %p10035_p4, %p10029_p12 }
  0x47   : > { %8296 = vmatprep.subr.bf16.mxu1 %v9650_v18  ;;  %v1006_v47 = vor.u32 %v1005_v41, %v1001_v35  ;;  %v1025_v61 = vshrl.u32 %v10338_v53, 16  ;;  %v1022_v0 = vrot.slane %v1020_v57, 1  ;;  %v1027_v1 = vshll.u32 %v10338_v53, 16  ;;  %v9674_v4 = vld [vmem:[%s10322_s8 + $0x2c] ss:$0 sps:$4 sm:$0x11]  }
  0x48   : > { %8161 = vmatpush3.bf16.msra.mxu0 %v9649_v17  ;;  %v497_v62 = vsel %vm485_vm0, %v492_v55, %v496_v52  ;;  %v1018_v63 = vor.u32 %v1017_v56, %v1013_v46  ;;  %v503_v2 = vrot.slane %v501_v60, 1  ;;  %v506_v3 = vshll.u32 %v9672_v58, 16  ;;  %v9677_v13 = vld [vmem:[%s10322_s8 + $0x20] ss:$0 sps:$4 sm:$0x11]   ;;  %v9684_v43 = vld [vmem:[%s12843_s1 + $0x150] sm:$0xff]  }
  0x49   : > { %8162 = vmatprep.subr.bf16.mxu0 %v9652_v20  ;;  %v1011_v54 = vsel %vm485_vm0, %v1006_v47, %v1010_v42  ;;  %1963 = vmatprep.mubr.bf16.mxu1 %v497_v62  ;;  %v1029_v7 = vrot.slane %v1027_v1, 1  ;;  %v1032_v11 = vshll.u32 %v9674_v4, 16  ;;  %v511_v14 = vshrl.u32 %v9676_v8, 16  ;;  %v10363_v33 = vld [vmem:[%s10322_s8 + $0x3c] sm:$0xff]   ;;  %v9685_v48 = vld [vmem:[%s10322_s8 + $0x30] sm:$0xff]  }
  0x4a   : > { %8297 = vmatpush3.bf16.msra.mxu1 %v9651_v19  ;;  %1497 = vmatprep.mubr.bf16.mxu0 %v1011_v54  ;;  %v1023_v6 = vsel %vm485_vm0, %v1018_v63, %v1022_v0  ;;  %v504_v9 = vor.u32 %v503_v2, %v499_v59  ;;  %v508_v10 = vrot.slane %v506_v3, 1  ;;  %v513_v17 = vshll.u32 %v9676_v8, 16  ;;  %v10354_v19 = vld [vmem:[%s10322_s8 + $0x30] sm:$0xff]   ;;  %v9683_v39 = vld [vmem:[%s10322_s8 + $0x44] ss:$0 sps:$4 sm:$0x11]  }
  0x4b   : > { %8298 = vmatprep.subr.bf16.mxu1 %v9654_v22  ;;  %v1030_v12 = vor.u32 %v1029_v7, %v1025_v61  ;;  %v1034_v16 = vrot.slane %v1032_v11, 1  ;;  %v518_v18 = vshll.u32 %v9677_v13, 16  ;;  %v9679_v22 = vld [vmem:[%s10322_s8 + $0x38] ss:$0 sps:$4 sm:$0x11]   ;;  %v1051_v41 = vshll.u32 %v10363_v33, 16 }
  0x4c   : > { %8163 = vmatpush3.bf16.msra.mxu0 %v9653_v21  ;;  %v509_v15 = vsel %vm485_vm0, %v504_v9, %v508_v10  ;;  %v515_v21 = vrot.slane %v513_v17, 1  ;;  %v1056_v47 = vshll.u32 %v9683_v39, 16  ;;  %v9686_v49 = vld [vmem:[%s10322_s8 + $0x38] ss:$0 sps:$4 sm:$0x11]   ;;  %v535_v52 = vshrl.u32 %v9685_v48, 16 }
  0x4d   : > { %8164 = vmatprep.subr.bf16.mxu0 %v9656_v24  ;;  %v1035_v20 = vsel %vm485_vm0, %v1030_v12, %v1034_v16  ;;  %v1037_v24 = vshrl.u32 %v10354_v19, 16  ;;  %v1053_v46 = vrot.slane %v1051_v41, 1  ;;  %v537_v54 = vshll.u32 %v9685_v48, 16  ;;  %v9688_v56 = vld [vmem:[%s10322_s8 + $0x50] ss:$0 sps:$4 sm:$0x11]  }
  0x4e   : > { %8299 = vmatpush3.bf16.msra.mxu1 %v9655_v23  ;;  %v520_v23 = vrot.slane %v518_v18, 1  ;;  %v542_v55 = vshll.u32 %v9686_v49, 16  ;;  %v1058_v58 = vrot.slane %v1056_v47, 1  ;;  %v10383_v60 = vld [vmem:[%s10322_s8 + $0x3c] sm:$0xff]   ;;  %v1068_v4 = vshll.u32 %v9688_v56, 16  ;;  %v10400_v12 = vld [vmem:[%s10322_s8 + $0x48] sm:$0xff]  }
  0x4f   : > { %8300 = vmatprep.subr.bf16.mxu1 %v9658_v26  ;;  %v9680_v26 = vld [vmem:[%s10322_s8 + $0x24] sm:$0xff]   ;;  %v549_v1 = vshll.u32 %v10383_v60, 16  ;;  %v9692_v7 = vld [vmem:[%s10322_s8 + $0x5c] ss:$0 sps:$4 sm:$0x11]  }
  0x50   : > { %8165 = vmatpush3.bf16.msra.mxu0 %v9657_v25  ;;  %v1039_v25 = vshll.u32 %v10354_v19, 16  ;;  %v544_v61 = vrot.slane %v542_v55, 1  ;;  %v9690_v62 = vld [vmem:[%s10322_s8 + $0x44] ss:$0 sps:$4 sm:$0x11]   ;;  %v1080_v16 = vshll.u32 %v9692_v7, 16 }
  0x51   : > { %8166 = vmatprep.subr.bf16.mxu0 %v9660_v28  ;;  %v1044_v28 = vshll.u32 %v9679_v22, 16  ;;  %v551_v10 = vrot.slane %v549_v1, 1  ;;  %v554_v11 = vshll.u32 %v9690_v62, 16  ;;  %v10441_v49 = vld [vmem:[%s10322_s8 + $0x74] ss:$0 sps:$4 sm:$0x11]  }
  0x52   : > { %8301 = vmatpush3.bf16.msra.mxu1 %v9659_v27  ;;  %v516_v27 = vor.u32 %v515_v21, %v511_v14  ;;  %v1070_v14 = vrot.slane %v1068_v4, 1  ;;  %v10455_v62 = vld [vmem:[%s10322_s8 + $0x78] sm:$0xff]   ;;  %v9715_v7 = vld [vmem:[%s12843_s1 + $0x88] sm:$0xff]  }
  0x53   : > { %8302 = vmatprep.subr.bf16.mxu1 %v9662_v30  ;;  %v1041_v30 = vrot.slane %v1039_v25, 1  ;;  %v1046_v35 = vrot.slane %v1044_v28, 1  ;;  %v556_v18 = vrot.slane %v554_v11, 1  ;;  %v1082_v25 = vrot.slane %v1080_v16, 1 }
  0x54   : > { %8167 = vmatpush3.bf16.msra.mxu0 %v9661_v29  ;;  %v9681_v29 = vld [vmem:[%s10322_s8 + $0x2c] ss:$0 sps:$4 sm:$0x11]   ;;  %v1109_v16 = vshrl.u32 %v10455_v62, 16 }
  0x55   : > { %8968 = vmatprep.subr.bf16.mxu0 %v9666_v34  ;;  %v530_v36 = vshll.u32 %v9681_v29, 16  ;;  %v1042_v37 = vor.u32 %v1041_v30, %v1037_v24  ;;  %v10408_v24 = vld [vmem:[%s10322_s8 + $0x60] sm:$0xff]  }
  0x56   : > { %8303 = vmatpush3.bf16.msra.mxu1 %v9663_v31  ;;  %v523_v31 = vshrl.u32 %v9680_v26, 16  ;;  %v1085_v39 = vshrl.u32 %v10408_v24, 16 }
  0x57   : > { %1498 = vmatmul.mubr.bf16.vlgmr.msra.gmra.mrb[0].mxu0 %v9664_v32  ;;  %v525_v32 = vshll.u32 %v9680_v26, 16  ;;  %v532_v42 = vrot.slane %v530_v36, 1  ;;  %v1047_v44 = vsel %vm485_vm0, %v1042_v37, %v1046_v35  ;;  %v1087_v35 = vshll.u32 %v10408_v24, 16  ;;  %v10424_v36 = vld [vmem:[%s10322_s8 + $0x5c] ss:$0 sps:$4 sm:$0x11]  }
  0x58   : > { %8969 = vmatpush3.bf16.msra.mxu0 %v9666_v34  ;;  %1505 = vmatprep.mubr.bf16.mxu0 %v1023_v6  ;;  %v521_v34 = vsel %vm485_vm0, %v516_v27, %v520_v23  ;;  %v10391_v6 = vld [vmem:[%s10322_s8 + $0x54] sm:$0xff]   ;;  %v578_v47 = vshll.u32 %v10424_v36, 16 }
  0x59   : > { %1964 = vmatmul.mubr.bf16.vlgmr.msra.gmra.mrb[0].mxu1 %v9667_v38  ;;  %8970 = vmatprep.subr.bf16.mxu0 %v9675_v5  ;;  %v527_v38 = vrot.slane %v525_v32, 1  ;;  %v1073_v22 = vshrl.u32 %v10391_v6, 16  ;;  %v10412_v27 = vld [vmem:[%s10322_s8 + $0x54] sm:$0xff]   ;;  %v9702_v32 = vld [vmem:[%s12843_s1 + $0x160] sm:$0xff]  }
  0x5a   : > { %1971 = vmatprep.mubr.bf16.mxu1 %v509_v15  ;;  %v1075_v15 = vshll.u32 %v10391_v6, 16  ;;  %v571_v41 = vshrl.u32 %v10412_v27, 16  ;;  %v580_v56 = vrot.slane %v578_v47, 1 }
  0x5b   : > { %v528_v45 = vor.u32 %v527_v38, %v523_v31  ;;  %v10417_v31 = vld [vmem:[%s10322_s8 + $0x68] ss:$0 sps:$4 sm:$0x11]  }
  0x5c   : > { %8971 = vmatpush3.bf16.msra.mxu0 %v9675_v5  ;;  %v547_v5 = vshrl.u32 %v10383_v60, 16  ;;  %v1077_v23 = vrot.slane %v1075_v15, 1 }
  0x5d   : > { %8972 = vmatprep.subr.bf16.mxu0 %v9684_v43  ;;  %v533_v50 = vsel %vm485_vm0, %v528_v45, %v532_v42  ;;  %v10431_v42 = vld [vmem:[%s10322_s8 + $0x6c] sm:$0xff]   ;;  %v9705_v45 = vld [vmem:[%s12843_s1 + $0x80] sm:$0xff]  }
  0x5e   : > { %v552_v17 = vor.u32 %v551_v10, %v547_v5  ;;  %9016 = vmatprep.subr.bf16.mxu1 %v9705_v45  ;;  %v10469_v5 = vld [vmem:[%s10322_s8 + $0x6c] sm:$0xff]  }
  0x5f   : > { %1506 = vmatmul.mubr.bf16.gmra.mrb[4].mxu0 %v9669_v40  ;;  %v1049_v40 = vshrl.u32 %v10363_v33, 16  ;;  %9017 = vmatpush3.bf16.msra.mxu1 %v9705_v45  ;;  %v597_v15 = vshll.u32 %v10469_v5, 16 }
  0x60   : > { %1513 = vmatprep.mubr.bf16.mxu0 %v1035_v20  ;;  %8973 = vmatpush3.bf16.msra.mxu0 %v9684_v43  ;;  %v561_v20 = vshll.u32 %v10400_v12, 16  ;;  %v557_v28 = vsel %vm485_vm0, %v552_v17, %v556_v18  ;;  %v595_v18 = vshrl.u32 %v10469_v5, 16 }
  0x61   : > { %1972 = vmatmul.mubr.bf16.gmra.mrb[4].mxu1 %v9671_v51  ;;  %v10378_v51 = vld [vmem:[%s10322_s8 + $0x48] sm:$0xff]   ;;  %v1054_v57 = vor.u32 %v1053_v46, %v1049_v40  ;;  %v1092_v40 = vshll.u32 %v10417_v31, 16  ;;  %9018 = vmatprep.subr.bf16.mxu1 %v9715_v7 }
  0x62   : > { %1979 = vmatprep.mubr.bf16.mxu1 %v521_v34  ;;  %v1063_v59 = vshll.u32 %v10378_v51, 16  ;;  %v1061_v0 = vshrl.u32 %v10378_v51, 16  ;;  %v563_v29 = vrot.slane %v561_v20, 1  ;;  %v1078_v34 = vor.u32 %v1077_v23, %v1073_v22 }
  0x63   : > { %v1059_v2 = vsel %vm485_vm0, %v1054_v57, %v1058_v58  ;;  %v1094_v55 = vrot.slane %v1092_v40, 1  ;;  %v10449_v57 = vld [vmem:[%s10322_s8 + $0x68] ss:$0 sps:$4 sm:$0x11]   ;;  %9019 = vmatpush3.bf16.msra.mxu1 %v9715_v7  ;;  %v599_v23 = vrot.slane %v597_v15, 1  ;;  %v10541_v7 = vld [vmem:[%s10322_s8 + $0x90] sm:$0xff]  }
  0x64   : > { %v1065_v3 = vrot.slane %v1063_v59, 1  ;;  %v1083_v43 = vsel %vm485_vm0, %v1078_v34, %v1082_v25  ;;  %v1097_v59 = vshrl.u32 %v10431_v42, 16  ;;  %v590_v4 = vshll.u32 %v10449_v57, 16  ;;  %v10554_v15 = vld [vmem:[%s10322_s8 + $0x98] ss:$0 sps:$4 sm:$0x11]  }
  0x66   : > { %v1066_v13 = vor.u32 %v1065_v3, %v1061_v0  ;;  %v9712_v0 = vld [vmem:[%s12843_s1 + $0x168] sm:$0xff]  }
  0x67   : > { %1514 = vmatmul.mubr.bf16.gmra.mrb[8].mxu0 %v10338_v53  ;;  %v539_v53 = vrot.slane %v537_v54, 1 }
  0x68   : > { %1521 = vmatprep.mubr.bf16.mxu0 %v1047_v44  ;;  %v1071_v21 = vsel %vm485_vm0, %v1066_v13, %v1070_v14  ;;  %v1089_v44 = vrot.slane %v1087_v35, 1  ;;  %v592_v13 = vrot.slane %v590_v4, 1  ;;  %v10478_v14 = vld [vmem:[%s10322_s8 + $0x74] ss:$0 sps:$4 sm:$0x11]   ;;  %v600_v35 = vor.u32 %v599_v23, %v595_v18  ;;  %v9736_v18 = vld [vmem:[%s12843_s1 + $0xa0] sm:$0xff]  }
  0x69   : > { %1980 = vmatmul.mubr.bf16.gmra.mrb[8].mxu1 %v9676_v8  ;;  %v540_v63 = vor.u32 %v539_v53, %v535_v52  ;;  %v9693_v8 = vld [vmem:[%s12843_s1 + $0x158] sm:$0xff]   ;;  %v1099_v52 = vshll.u32 %v10431_v42, 16  ;;  %v602_v25 = vshll.u32 %v10478_v14, 16  ;;  %v633_v23 = vshll.u32 %v10541_v7, 16 }
  0x6a   : > { %1987 = vmatprep.mubr.bf16.mxu1 %v533_v50  ;;  %8974 = vmatprep.subr.bf16.mxu0 %v9693_v8  ;;  %v10444_v50 = vld [vmem:[%s10322_s8 + $0x60] sm:$0xff]   ;;  %v1090_v54 = vor.u32 %v1089_v44, %v1085_v39 }
  0x6b   : > { %v545_v9 = vsel %vm485_vm0, %v540_v63, %v544_v61  ;;  %8975 = vmatpush3.bf16.msra.mxu0 %v9693_v8  ;;  %v585_v58 = vshll.u32 %v10444_v50, 16  ;;  %v1101_v53 = vrot.slane %v1099_v52, 1  ;;  %v1104_v61 = vshll.u32 %v10441_v49, 16  ;;  %v10522_v52 = vld [vmem:[%s10322_s8 + $0x84] sm:$0xff]  }
  0x6c   : > { %8976 = vmatprep.subr.bf16.mxu0 %v9702_v32  ;;  %v1095_v63 = vsel %vm485_vm0, %v1090_v54, %v1094_v55  ;;  %v619_v4 = vshrl.u32 %v10522_v52, 16 }
  0x6d   : > { %v587_v3 = vrot.slane %v585_v58, 1  ;;  %v1106_v8 = vrot.slane %v1104_v61, 1  ;;  %v9730_v58 = vld [vmem:[%s12843_s1 + $0x98] sm:$0xff]   ;;  %v621_v61 = vshll.u32 %v10522_v52, 16 }
  0x6f   : > { %1522 = vmatmul.mubr.bf16.gmra.mrb[12].mxu0 %v10354_v19  ;;  %v9695_v19 = vld [vmem:[%s10322_s8 + $0x50] ss:$0 sps:$4 sm:$0x11]  }
  0x70   : > { %1529 = vmatprep.mubr.bf16.mxu0 %v1059_v2  ;;  %v566_v30 = vshll.u32 %v9695_v19, 16  ;;  %8977 = vmatpush3.bf16.msra.mxu0 %v9702_v32  ;;  %v583_v2 = vshrl.u32 %v10444_v50, 16  ;;  %v10485_v19 = vld [vmem:[%s10322_s8 + $0x84] sm:$0xff]   ;;  %v9722_v32 = vld [vmem:[%s12843_s1 + $0x170] sm:$0xff]  }
  0x71   : > { %1988 = vmatmul.mubr.bf16.gmra.mrb[12].mxu1 %v9680_v26  ;;  %v559_v26 = vshrl.u32 %v10400_v12, 16  ;;  %8978 = vmatprep.subr.bf16.mxu0 %v9712_v0  ;;  %v1121_v40 = vshrl.u32 %v10485_v19, 16 }
  0x72   : > { %1995 = vmatprep.mubr.bf16.mxu1 %v545_v9  ;;  %v568_v38 = vrot.slane %v566_v30, 1  ;;  %v1111_v9 = vshll.u32 %v10455_v62, 16  ;;  %v588_v11 = vor.u32 %v587_v3, %v583_v2  ;;  %v1123_v30 = vshll.u32 %v10485_v19, 16 }
  0x73   : > { %v564_v37 = vor.u32 %v563_v29, %v559_v26  ;;  %v10494_v26 = vld [vmem:[%s10322_s8 + $0x8c] ss:$0 sps:$4 sm:$0x11]  }
  0x74   : > { %8979 = vmatpush3.bf16.msra.mxu0 %v9712_v0  ;;  %v1113_v17 = vrot.slane %v1111_v9, 1  ;;  %v593_v22 = vsel %vm485_vm0, %v588_v11, %v592_v13  ;;  %v9733_v9 = vld [vmem:[%s12843_s1 + $0x178] sm:$0xff]   ;;  %v623_v11 = vrot.slane %v621_v61, 1  ;;  %v9744_v61 = vld [vmem:[%s12843_s1 + $0x1c0] sm:$0xff]  }
  0x75   : > { %8980 = vmatprep.subr.bf16.mxu0 %v9722_v32 }
  0x76   : > { %v1114_v29 = vor.u32 %v1113_v17, %v1109_v16 }
  0x77   : > { %1530 = vmatmul.mubr.bf16.gmra.mrb[16].mxu0 %v10363_v33  ;;  %v573_v33 = vshll.u32 %v10412_v27, 16 }
  0x78   : > { %1537 = vmatprep.mubr.bf16.mxu0 %v1071_v21  ;;  %v10488_v21 = vld [vmem:[%s10322_s8 + $0x78] sm:$0xff]   ;;  %8981 = vmatpush3.bf16.msra.mxu0 %v9722_v32 }
  0x79   : > { %1996 = vmatmul.mubr.bf16.gmra.mrb[16].mxu1 %v9685_v48  ;;  %v575_v46 = vrot.slane %v573_v33, 1  ;;  %v569_v48 = vsel %vm485_vm0, %v564_v37, %v568_v38  ;;  %v609_v34 = vshll.u32 %v10488_v21, 16  ;;  %v604_v33 = vrot.slane %v602_v25, 1  ;;  %v10506_v37 = vld [vmem:[%s10322_s8 + $0x90] sm:$0xff]   ;;  %8982 = vmatprep.subr.bf16.mxu0 %v9733_v9 }
  0x7a   : > { %2003 = vmatprep.mubr.bf16.mxu1 %v557_v28  ;;  %v10497_v28 = vld [vmem:[%s10322_s8 + $0x80] ss:$0 sps:$4 sm:$0x11]   ;;  %v9725_v38 = vld [vmem:[%s12843_s1 + $0x90] sm:$0xff]   ;;  %v607_v44 = vshrl.u32 %v10488_v21, 16  ;;  %v1135_v54 = vshll.u32 %v10506_v37, 16  ;;  %v624_v25 = vor.u32 %v623_v11, %v619_v4 }
  0x7b   : > { %v611_v45 = vrot.slane %v609_v34, 1  ;;  %9020 = vmatprep.subr.bf16.mxu1 %v9725_v38  ;;  %v605_v47 = vsel %vm485_vm0, %v600_v35, %v604_v33  ;;  %v1133_v0 = vshrl.u32 %v10506_v37, 16  ;;  %v631_v34 = vshrl.u32 %v10541_v7, 16  ;;  %v10571_v35 = vld [vmem:[%s10322_s8 + $0xb0] ss:$0 sps:$4 sm:$0x11]  }
  0x7c   : > { %9021 = vmatpush3.bf16.msra.mxu1 %v9725_v38  ;;  %8983 = vmatpush3.bf16.msra.mxu0 %v9733_v9  ;;  %v10574_v33 = vld [vmem:[%s10322_s8 + $0x9c] sm:$0xff]  }
  0x7d   : > { %9022 = vmatprep.subr.bf16.mxu1 %v9730_v58  ;;  %v643_v9 = vshrl.u32 %v10574_v33, 16  ;;  %8424 = vmatprep.subr.bf16.mxu0 %v9744_v61 }
  0x7f   : > { %1538 = vmatmul.mubr.bf16.gmra.mrb[20].mxu0 %v10378_v51  ;;  %v576_v51 = vor.u32 %v575_v46, %v571_v41  ;;  %v1125_v41 = vrot.slane %v1123_v30, 1  ;;  %v614_v46 = vshll.u32 %v10497_v28, 16  ;;  %v10566_v30 = vld [vmem:[%s10322_s8 + $0xa8] sm:$0xff]  }
  0x80   : > { %1545 = vmatprep.mubr.bf16.mxu0 %v1083_v43  ;;  %v1128_v43 = vshll.u32 %v10494_v26, 16  ;;  %9023 = vmatpush3.bf16.msra.mxu1 %v9730_v58 }
  0x81   : > { %2004 = vmatmul.mubr.bf16.gmra.mrb[20].mxu1 %v10383_v60  ;;  %v10459_v60 = vld [vmem:[%s10322_s8 + $0x80] ss:$0 sps:$4 sm:$0x11]   ;;  %v581_v1 = vsel %vm485_vm0, %v576_v51, %v580_v56  ;;  %v1126_v55 = vor.u32 %v1125_v41, %v1121_v40  ;;  %v10527_v51 = vld [vmem:[%s10322_s8 + $0x8c] ss:$0 sps:$4 sm:$0x11]   ;;  %9024 = vmatprep.subr.bf16.mxu1 %v9736_v18 }
  0x82   : > { %2011 = vmatprep.mubr.bf16.mxu1 %v569_v48  ;;  %v1116_v10 = vshll.u32 %v10459_v60, 16  ;;  %v10519_v48 = vld [vmem:[%s10322_s8 + $0x98] ss:$0 sps:$4 sm:$0x11]   ;;  %v1130_v56 = vrot.slane %v1128_v43, 1  ;;  %v638_v40 = vshll.u32 %v10554_v15, 16 }
  0x83   : > { %v1140_v2 = vshll.u32 %v10519_v48, 16  ;;  %v10579_v41 = vld [vmem:[%s10322_s8 + $0xa4] ss:$0 sps:$4 sm:$0x11]   ;;  %v10582_v43 = vld [vmem:[%s10322_s8 + $0xb4] sm:$0xff]  }
  0x84   : > { %v1118_v20 = vrot.slane %v1116_v10, 1  ;;  %v1131_v3 = vsel %vm485_vm0, %v1126_v55, %v1130_v56  ;;  %9025 = vmatpush3.bf16.msra.mxu1 %v9736_v18  ;;  %v10595_v55 = vld [vmem:[%s10322_s8 + $0xa8] sm:$0xff]   ;;  %v650_v11 = vshll.u32 %v10579_v41, 16 }
  0x85   : > { %v1142_v16 = vrot.slane %v1140_v2, 1  ;;  %v1164_v2 = vshll.u32 %v10571_v35, 16 }
  0x86   : > { %v1119_v39 = vsel %vm485_vm0, %v1114_v29, %v1118_v20  ;;  %v9737_v20 = vld [vmem:[%s12843_s1 + $0xa8] sm:$0xff]  }
  0x87   : > { %1546 = vmatmul.mubr.bf16.gmra.mrb[24].mxu0 %v10391_v6  ;;  %v1102_v6 = vor.u32 %v1101_v53, %v1097_v59  ;;  %v616_v59 = vrot.slane %v614_v46, 1  ;;  %v612_v53 = vor.u32 %v611_v45, %v607_v44  ;;  %9026 = vmatprep.subr.bf16.mxu1 %v9737_v20  ;;  %v10585_v44 = vld [vmem:[%s10322_s8 + $0xbc] ss:$0 sps:$4 sm:$0x11]   ;;  %v1159_v46 = vshll.u32 %v10566_v30, 16 }
  0x88   : > { %1553 = vmatprep.mubr.bf16.mxu0 %v1095_v63  ;;  %v10534_v63 = vld [vmem:[%s10322_s8 + $0x9c] sm:$0xff]   ;;  %9027 = vmatpush3.bf16.msra.mxu1 %v9737_v20  ;;  %v10620_v20 = vld [vmem:[%s10322_s8 + $0xc8] ss:$0 sps:$4 sm:$0x11]  }
  0x89   : > { %2012 = vmatmul.mubr.bf16.gmra.mrb[24].mxu1 %v10400_v12  ;;  %v1107_v12 = vsel %vm485_vm0, %v1102_v6, %v1106_v8  ;;  %v626_v6 = vshll.u32 %v10527_v51, 16  ;;  %v10545_v8 = vld [vmem:[%s10322_s8 + $0xa4] ss:$0 sps:$4 sm:$0x11]   ;;  %v617_v10 = vsel %vm485_vm0, %v612_v53, %v616_v59  ;;  %v1147_v13 = vshll.u32 %v10534_v63, 16  ;;  %v9743_v53 = vld [vmem:[%s12843_s1 + $0xb8] sm:$0xff]  }
  0x8a   : > { %2019 = vmatprep.mubr.bf16.mxu1 %v581_v1  ;;  %v1137_v1 = vrot.slane %v1135_v54, 1  ;;  %v1145_v17 = vshrl.u32 %v10534_v63, 16  ;;  %v1152_v32 = vshll.u32 %v10545_v8, 16  ;;  %v645_v54 = vshll.u32 %v10574_v33, 16 }
  0x8b   : > { %v1149_v29 = vrot.slane %v1147_v13, 1  ;;  %v10599_v59 = vld [vmem:[%s10322_s8 + $0xb0] ss:$0 sps:$4 sm:$0x11]   ;;  %v1171_v13 = vshll.u32 %v10582_v43, 16 }
  0x8c   : > { %v1154_v58 = vrot.slane %v1152_v32, 1  ;;  %v662_v18 = vshll.u32 %v10599_v59, 16  ;;  %v10626_v32 = vld [vmem:[%s10322_s8 + $0xbc] ss:$0 sps:$4 sm:$0x11]  }
  0x8d   : > { %v1150_v56 = vor.u32 %v1149_v29, %v1145_v17  ;;  %v657_v17 = vshll.u32 %v10595_v55, 16  ;;  %v1166_v29 = vrot.slane %v1164_v2, 1  ;;  %v1229_v2 = vrot.slane %v10408_v24, 1 }
  0x8f   : > { %1554 = vmatmul.mubr.bf16.gmra.mrb[28].mxu0 %v10408_v24  ;;  %v1233_v24 = vrot.slane %v10441_v49, 1  ;;  %v722_v49 = vrot.slane %v10469_v5, 1 }
  0x90   : > { %1561 = vmatprep.mubr.bf16.mxu0 %v1107_v12  ;;  %v1138_v12 = vor.u32 %v1137_v1, %v1133_v0  ;;  %v640_v0 = vrot.slane %v638_v40, 1  ;;  %v1157_v1 = vshrl.u32 %v10566_v30, 16  ;;  %v652_v40 = vrot.slane %v650_v11, 1 }
  0x91   : > { %2020 = vmatmul.mubr.bf16.gmra.mrb[28].mxu1 %v10412_v27  ;;  %v717_v11 = vrot.slane %v10424_v36, 1  ;;  %v719_v36 = vrot.slane %v10444_v50, 1 }
  0x92   : > { %2027 = vmatprep.mubr.bf16.mxu1 %v593_v22  ;;  %v628_v22 = vrot.slane %v626_v6, 1  ;;  %v1143_v38 = vsel %vm485_vm0, %v1138_v12, %v1142_v16  ;;  %v1161_v6 = vrot.slane %v1159_v46, 1  ;;  %v1176_v12 = vshll.u32 %v10585_v44, 16 }
  0x93   : > { %v1155_v16 = vsel %vm485_vm0, %v1150_v56, %v1154_v58  ;;  %v664_v56 = vrot.slane %v662_v18, 1 }
  0x94   : > { %v629_v45 = vsel %vm485_vm0, %v624_v25, %v628_v22  ;;  %v1162_v25 = vor.u32 %v1161_v6, %v1157_v1  ;;  %v1178_v46 = vrot.slane %v1176_v12, 1  ;;  %v1188_v1 = vshll.u32 %v10620_v20, 16 }
  0x95   : > { %v674_v6 = vshll.u32 %v10626_v32, 16 }
  0x97   : > { %1562 = vmatmul.mubr.bf16.gmra.mrb[32].mxu0 %v10431_v42 }
  0x98   : > { %1569 = vmatprep.mubr.bf16.mxu0 %v1119_v39  ;;  %v635_v39 = vrot.slane %v633_v23, 1 }
  0x99   : > { %2028 = vmatmul.mubr.bf16.gmra.mrb[32].mxu1 %v10444_v50  ;;  %v10673_v50 = vld [vmem:[%s12843_s1 + $0x200] sm:$0xff]  }
  0x9a   : > { %2035 = vmatprep.mubr.bf16.mxu1 %v605_v47  ;;  %v9742_v47 = vld [vmem:[%s12843_s1 + $0xb0] sm:$0xff]   ;;  %v636_v4 = vor.u32 %v635_v39, %v631_v34 }
  0x9b   : > { %9028 = vmatprep.subr.bf16.mxu1 %v9742_v47  ;;  %v10630_v39 = vld [vmem:[%s10322_s8 + $0xb4] sm:$0xff]  }
  0x9c   : > { %9029 = vmatpush3.bf16.msra.mxu1 %v9742_v47  ;;  %v641_v23 = vsel %vm485_vm0, %v636_v4, %v640_v0  ;;  %v655_v47 = vshrl.u32 %v10595_v55, 16  ;;  %v1167_v0 = vsel %vm485_vm0, %v1162_v25, %v1166_v29  ;;  %v669_v4 = vshll.u32 %v10630_v39, 16 }
  0x9d   : > { %9030 = vmatprep.subr.bf16.mxu1 %v9743_v53  ;;  %v1241_v29 = vrot.slane %v10506_v37, 1 }
  0x9f   : > { %1570 = vmatmul.mubr.bf16.gmra.mrb[36].mxu0 %v10455_v62 }
  0xa0   : > { %1577 = vmatprep.mubr.bf16.mxu0 %v1131_v3  ;;  %v10610_v3 = vld [vmem:[%s10322_s8 + $0xc0] sm:$0xff]   ;;  %9031 = vmatpush3.bf16.msra.mxu1 %v9743_v53  ;;  %v667_v53 = vshrl.u32 %v10630_v39, 16 }
  0xa1   : > { %2036 = vmatmul.mubr.bf16.gmra.mrb[36].mxu1 %v10469_v5  ;;  %v1183_v22 = vshll.u32 %v10610_v3, 16  ;;  %v1181_v58 = vshrl.u32 %v10610_v3, 16  ;;  %9064 = vmatprep.subr.bf16.mxu1 %v10673_v50 }
  0xa2   : > { %2043 = vmatprep.mubr.bf16.mxu1 %v617_v10  ;;  %v647_v10 = vrot.slane %v645_v54, 1  ;;  %v659_v54 = vrot.slane %v657_v17, 1  ;;  %v1235_v17 = vrot.slane %v10455_v62, 1  ;;  %v723_v62 = vrot.slane %v10478_v14, 1 }
  0xa3   : > { %v1185_v61 = vrot.slane %v1183_v22, 1  ;;  %v1239_v14 = vrot.slane %v10494_v26, 1  ;;  %v729_v26 = vrot.slane %v10527_v51, 1  ;;  %v1248_v51 = vrot.slane %v10571_v35, 1 }
  0xa4   : > { %v648_v34 = vor.u32 %v647_v10, %v643_v9  ;;  %v1230_v9 = vrot.slane %v10417_v31, 1  ;;  %v716_v10 = vrot.slane %v10412_v27, 1  ;;  %v1236_v27 = vrot.slane %v10459_v60, 1 }
  0xa5   : > { %v10677_v5 = vsel %vm694_vm1, %v722_v49, %v723_v62  ;;  %v1250_v35 = vrot.slane %v10582_v43, 1 }
  0xa6   : > { %v653_v12 = vsel %vm485_vm0, %v648_v34, %v652_v40  ;;  %v10653_v31 = vsel %vm694_vm1, %v716_v10, %v717_v11  ;;  %v10665_v25 = vsel %vm694_vm1, %v1235_v17, %v1236_v27  ;;  %v1242_v34 = vrot.slane %v10519_v48, 1  ;;  %v9968_v27 = vld [vmem:[%s10322_s8 + $0xc] sm:$0xff]  }
  0xa7   : > { %1578 = vmatmul.mubr.bf16.gmra.mrb[40].mxu0 %v10485_v19  ;;  %v726_v40 = vrot.slane %v10497_v28, 1  ;;  %v1190_v10 = vrot.slane %v1188_v1, 1  ;;  %v1253_v1 = vrot.slane %v10610_v3, 1  ;;  %v737_v11 = vrot.slane %v10595_v55, 1 }
  0xa8   : > { %1585 = vmatprep.mubr.bf16.mxu0 %v1143_v38  ;;  %v1169_v38 = vshrl.u32 %v10582_v43, 16 }
  0xa9   : > { %2044 = vmatmul.mubr.bf16.gmra.mrb[40].mxu1 %v10488_v21 }
  0xaa   : > { %2051 = vmatprep.mubr.bf16.mxu1 %v629_v45  ;;  %v1173_v45 = vrot.slane %v1171_v13, 1  ;;  %v1232_v13 = vrot.slane %v10431_v42, 1  ;;  %v720_v42 = vrot.slane %v10449_v57, 1  ;;  %v1238_v57 = vrot.slane %v10485_v19, 1 }
  0xab   : > { %v10689_v19 = vsel %vm694_vm1, %v1241_v29, %v1242_v34  ;;  %v9973_v29 = vld [vmem:[%s10322_s8 + $0x20] ss:$0 sps:$4 sm:$0x11]  }
  0xac   : > { %v1174_v18 = vor.u32 %v1173_v45, %v1169_v38  ;;  %v10659_v22 = vsel %vm694_vm1, %v1232_v13, %v1233_v24  ;;  %v10668_v60 = vsel %vm694_vm1, %v719_v36, %v720_v42  ;;  %v725_v38 = vrot.slane %v10488_v21, 1  ;;  %v9969_v36 = vld [vmem:[%s10322_s8 + $0x14] ss:$0 sps:$4 sm:$0x11]  }
  0xad   : > { %v10686_v45 = vsel %vm694_vm1, %v1238_v57, %v1239_v14  ;;  %v671_v21 = vrot.slane %v669_v4, 1  ;;  %v734_v4 = vrot.slane %v10574_v33, 1  ;;  %v738_v13 = vrot.slane %v10599_v59, 1  ;;  %v9972_v57 = vld [vmem:[%s10322_s8 + $0x18] sm:$0xff]  }
  0xae   : > { %v10695_v48 = vsel %vm694_vm1, %v725_v38, %v726_v40  ;;  %v1209_v42 = vrot.slane %v9969_v36, 1  ;;  %v1211_v14 = vrot.slane %v9972_v57, 1  ;;  %v1212_v34 = vrot.slane %v9973_v29, 1  ;;  %v9974_v38 = vld [vmem:[%s10322_s8 + $0x24] sm:$0xff]   ;;  %v9986_v36 = vld [vmem:[%s10322_s8 + $0x30] sm:$0xff]  }
  0xaf   : > { %1586 = vmatmul.mubr.bf16.gmra.mrb[44].mxu0 %v10506_v37  ;;  %v1179_v37 = vsel %vm485_vm0, %v1174_v18, %v1178_v46  ;;  %v731_v46 = vrot.slane %v10541_v7, 1  ;;  %v9970_v18 = vld [vmem:[%s10322_s8] sm:$0xff]   ;;  %v1214_v40 = vrot.slane %v9974_v38, 1 }
  0xb0   : > { %1593 = vmatprep.mubr.bf16.mxu0 %v1155_v16  ;;  %v10647_v16 = vsel %vm694_vm1, %v1229_v2, %v1230_v9  ;;  %v1245_v2 = vrot.slane %v10545_v8, 1  ;;  %v1186_v9 = vor.u32 %v1185_v61, %v1181_v58  ;;  %v676_v58 = vrot.slane %v674_v6, 1 }
  0xb1   : > { %2052 = vmatmul.mubr.bf16.gmra.mrb[44].mxu1 %v10522_v52  ;;  %v1251_v61 = vrot.slane %v10585_v44, 1  ;;  %v740_v6 = vrot.slane %v10630_v39, 1  ;;  %v741_v44 = vrot.slane %v10626_v32, 1  ;;  %v1208_v32 = vrot.slane %v9968_v27, 1 }
  0xb2   : > { %2059 = vmatprep.mubr.bf16.mxu1 %v641_v23  ;;  %v660_v23 = vor.u32 %v659_v54, %v655_v47  ;;  %v728_v47 = vrot.slane %v10522_v52, 1  ;;  %v1247_v52 = vrot.slane %v10566_v30, 1  ;;  %v695_v49 = vrot.slane %v9970_v18, 1  ;;  %v9985_v27 = vld [vmem:[%s10322_s8 + $0x2c] ss:$0 sps:$4 sm:$0x11]  }
  0xb3   : > { %v10746_v17 = vsel %vm694_vm1, %v740_v6, %v741_v44  ;;  %v9748_v6 = vld [vmem:[%s12843_s1 + $0x1d0] sm:$0xff]   ;;  %v9984_v44 = vld [vmem:[%s10322_s8 + $0x24] sm:$0xff]   ;;  %v9987_v18 = vld [vmem:[%s10322_s8 + $0x38] ss:$0 sps:$4 sm:$0x11]  }
  0xb4   : > { %v665_v54 = vsel %vm485_vm0, %v660_v23, %v664_v56  ;;  %v10699_v28 = vsel %vm694_vm1, %v728_v47, %v729_v26  ;;  %v732_v56 = vrot.slane %v10554_v15, 1  ;;  %v10714_v8 = vsel %vm694_vm1, %v1247_v52, %v1248_v51  ;;  %v9975_v47 = vld [vmem:[%s10322_s8 + $0x2c] ss:$0 sps:$4 sm:$0x11]  }
  0xb5   : > { %v672_v15 = vor.u32 %v671_v21, %v667_v53  ;;  %v10733_v53 = vsel %vm694_vm1, %v1250_v35, %v1251_v61  ;;  %v1210_v23 = vsel %vm694_vm1, %v1208_v32, %v1209_v42  ;;  %v1215_v26 = vrot.slane %v9975_v47, 1  ;;  %v9979_v52 = vld [vmem:[%s10322_s8 + $0x20] ss:$0 sps:$4 sm:$0x11]  }
  0xb6   : > { %v702_v51 = vrot.slane %v9979_v52, 1  ;;  %v705_v32 = vrot.slane %v9985_v27, 1  ;;  %v707_v42 = vrot.slane %v9986_v36, 1  ;;  %v10858_v27 = vld [vmem:[%s10322_s8 + $0x20] ss:$0 sps:$4 sm:$0x11]  }
  0xb7   : > { %1594 = vmatmul.mubr.bf16.gmra.mrb[48].mxu0 %v10534_v63  ;;  %v677_v59 = vsel %vm485_vm0, %v672_v15, %v676_v58  ;;  %v9755_v15 = vld [vmem:[%s12843_s1 + $0x208] sm:$0xff]   ;;  %v9981_v58 = vld [vmem:[%s10322_s8 + $0x38] ss:$0 sps:$4 sm:$0x11]  }
  0xb8   : > { %1601 = vmatprep.mubr.bf16.mxu0 %v1167_v0  ;;  %v1244_v0 = vrot.slane %v10534_v63, 1  ;;  %v1218_v61 = vrot.slane %v9981_v58, 1  ;;  %v9756_v58 = vld [vmem:[%s12843_s1 + $0x1e8] sm:$0xff]  }
  0xb9   : > { %2060 = vmatmul.mubr.bf16.gmra.mrb[48].mxu1 %v10541_v7  ;;  %v10718_v7 = vsel %vm694_vm1, %v731_v46, %v732_v56  ;;  %v1213_v46 = vsel %vm694_vm1, %v1211_v14, %v1212_v34  ;;  %v9746_v56 = vld [vmem:[%s12843_s1 + $0x1c8] sm:$0xff]   ;;  %v9759_v14 = vld [vmem:[%s12843_s1 + $0x218] sm:$0xff]  }
  0xba   : > { %2067 = vmatprep.mubr.bf16.mxu1 %v653_v12  ;;  %v10711_v63 = vsel %vm694_vm1, %v1244_v0, %v1245_v2  ;;  %v1191_v12 = vsel %vm485_vm0, %v1186_v9, %v1190_v10  ;;  %v9978_v0 = vld [vmem:[%s10322_s8 + $0x18] sm:$0xff]   ;;  %v1216_v9 = vsel %vm694_vm1, %v1214_v40, %v1215_v26  ;;  %v9980_v10 = vld [vmem:[%s10322_s8 + $0x30] sm:$0xff]   ;;  %v9988_v34 = vld [vmem:[%s10322_s8 + $0x48] sm:$0xff]  }
  0xbb   : > { %v701_v2 = vrot.slane %v9978_v0, 1  ;;  %v1223_v38 = vrot.slane %v9988_v34, 1  ;;  %v9989_v40 = vld [vmem:[%s10322_s8 + $0x50] ss:$0 sps:$4 sm:$0x11]   ;;  %v9990_v26 = vld [vmem:[%s10322_s8 + $0x54] sm:$0xff]  }
  0xbc   : > { %v1224_v47 = vrot.slane %v9989_v40, 1  ;;  %v9752_v0 = vld [vmem:[%s12843_s1 + $0x1e0] sm:$0xff]  }
  0xbd   : > { %v703_v35 = vsel %vm694_vm1, %v701_v2, %v702_v51  ;;  %v9992_v2 = vld [vmem:[%s10322_s8 + $0x3c] sm:$0xff]   ;;  %v9993_v51 = vld [vmem:[%s10322_s8 + $0x44] ss:$0 sps:$4 sm:$0x11]  }
  0xbe   : > { %v710_v52 = vrot.slane %v9992_v2, 1  ;;  %v10865_v36 = vld [vmem:[%s10322_s8 + $0x24] sm:$0xff]  }
  0xbf   : > { %1602 = vmatmul.mubr.bf16.gmra.mrb[52].mxu0 %v10566_v30  ;;  %v735_v30 = vrot.slane %v10579_v41, 1  ;;  %v1254_v41 = vrot.slane %v10620_v20, 1  ;;  %v10741_v20 = vsel %vm694_vm1, %v737_v11, %v738_v13  ;;  %v9983_v13 = vld [vmem:[%s10322_s8 + $0x44] ss:$0 sps:$4 sm:$0x11]  }
  0xc0   : > { %1609 = vmatprep.mubr.bf16.mxu0 %v1179_v37  ;;  %v9976_v37 = vld [vmem:[%s10322_s8 + $0xc] sm:$0xff]  }
  0xc1   : > { %2068 = vmatmul.mubr.bf16.gmra.mrb[52].mxu1 %v10574_v33  ;;  %v10724_v33 = vsel %vm694_vm1, %v734_v4, %v735_v30  ;;  %v10738_v24 = vsel %vm694_vm1, %v1253_v1, %v1254_v41  ;;  %v1217_v30 = vrot.slane %v9980_v10, 1  ;;  %v9747_v1 = vld [vmem:[%s12843_s1 + $0x188] sm:$0xff]   ;;  %v9982_v41 = vld [vmem:[%s10322_s8 + $0x3c] sm:$0xff]  }
  0xc2   : > { %2075 = vmatprep.mubr.bf16.mxu1 %v665_v54  ;;  %v698_v54 = vrot.slane %v9976_v37, 1  ;;  %v1220_v11 = vrot.slane %v9982_v41, 1  ;;  %v1226_v37 = vrot.slane %v9990_v26, 1  ;;  %v9762_v10 = vld [vmem:[%s12843_s1 + $0x220] sm:$0xff]   ;;  %v9763_v41 = vld [vmem:[%s12843_s1 + $0x228] sm:$0xff]  }
  0xc3   : > { %v10897_v26 = vld [vmem:[%s10322_s8 + $0x48] sm:$0xff]  }
  0xc7   : > { %1610 = vmatmul.mubr.bf16.gmra.mrb[56].mxu0 %v10582_v43  ;;  %v9971_v43 = vld [vmem:[%s10322_s8 + $0x8] ss:$0 sps:$4 sm:$0x11]  }
  0xc8   : > { %1617 = vmatprep.mubr.bf16.mxu0 %v1191_v12  ;;  %v696_v62 = vrot.slane %v9971_v43, 1  ;;  %v1221_v12 = vrot.slane %v9983_v13, 1  ;;  %v9758_v43 = vld [vmem:[%s12843_s1 + $0x210] sm:$0xff]  }
  0xc9   : > { %2076 = vmatmul.mubr.bf16.gmra.mrb[56].mxu1 %v10595_v55  ;;  %v9760_v13 = vld [vmem:[%s12843_s1 + $0x1f0] sm:$0xff]  }
  0xca   : > { %2083 = vmatprep.mubr.bf16.mxu1 %v677_v59  ;;  %v697_v55 = vsel %vm694_vm1, %v695_v49, %v696_v62  ;;  %v704_v59 = vrot.slane %v9984_v44, 1  ;;  %v708_v49 = vrot.slane %v9987_v18, 1  ;;  %v1219_v62 = vsel %vm694_vm1, %v1217_v30, %v1218_v61  ;;  %v10852_v44 = vld [vmem:[%s10322_s8 + $0x18] sm:$0xff]  }
  0xcb   : > { %v1225_v30 = vsel %vm694_vm1, %v1223_v38, %v1224_v47  ;;  %v2449_v18 = vshll.u32 %v10852_v44, 16  ;;  %v9773_v38 = vld [vmem:[%s10322_s8 + $0x38] ss:$0 sps:$4 sm:$0x11]  }
  0xcc   : > { %v706_v57 = vsel %vm694_vm1, %v704_v59, %v705_v32  ;;  %v709_v29 = vsel %vm694_vm1, %v707_v42, %v708_v49  ;;  %v9764_v59 = vld [vmem:[%s12843_s1 + $0x1f8] sm:$0xff]   ;;  %v2447_v49 = vshrl.u32 %v10852_v44, 16  ;;  %v9775_v47 = vld [vmem:[%s10322_s8 + $0x44] ss:$0 sps:$4 sm:$0x11]   ;;  %v2478_v2 = vshll.u32 %v9773_v38, 16 }
  0xcd   : > { %v9767_v32 = vld [vmem:[%s12843_s1 + $0x238] sm:$0xff]  }
  0xce   : > { %v9765_v42 = vld [vmem:[%s12843_s1 + $0x1b8] sm:$0xff]  }
  0xcf   : > { %1618 = vmatmul.mubr.bf16.gmra.mrb[60].mxu0 %v10610_v3  ;;  %v9977_v3 = vld [vmem:[%s10322_s8 + $0x14] ss:$0 sps:$4 sm:$0x11]  }
  0xd0   : > { %8984 = vmatprep.mubr.bf16.mxu0 %v1210_v23  ;;  %v699_v21 = vrot.slane %v9977_v3, 1  ;;  %v9749_v23 = vld [vmem:[%s12843_s1 + $0x190] sm:$0xff]   ;;  %v9991_v3 = vld [vmem:[%s10322_s8 + $0x5c] ss:$0 sps:$4 sm:$0x11]  }
  0xd1   : > { %2084 = vmatmul.mubr.bf16.gmra.mrb[60].mxu1 %v10630_v39  ;;  %v9745_v39 = vld [vmem:[%s12843_s1 + $0x180] sm:$0xff]  }
  0xd2   : > { %9032 = vmatprep.mubr.bf16.mxu1 %v697_v55  ;;  %v700_v4 = vsel %vm694_vm1, %v698_v54, %v699_v21  ;;  %v9750_v55 = vld [vmem:[%s12843_s1 + $0x1d8] sm:$0xff]   ;;  %v1227_v21 = vrot.slane %v9991_v3, 1 }
  0xd3   : > { %v9751_v54 = vld [vmem:[%s12843_s1 + $0x198] sm:$0xff]  }
  0xd7   : > { %8985 = vmatmul.mubr.bf16.vlgmr.msra.gmra.mrb[64].mxu0 %v1213_v46  ;;  %v711_v46 = vrot.slane %v9993_v51, 1  ;;  %v10907_v51 = vld [vmem:[%s10322_s8 + $0x54] sm:$0xff]  }
  0xd8   : > { %8425 = vmatpush3.bf16.msra.mxu0 %v9745_v39  ;;  %8988 = vmatprep.mubr.bf16.mxu0 %v1216_v9  ;;  %v9994_v39 = vld [vmem:[%s10322_s8 + $0x48] sm:$0xff]  }
  0xd9   : > { %9033 = vmatmul.mubr.bf16.vlgmr.msra.gmra.mrb[64].mxu1 %v700_v4  ;;  %8426 = vmatprep.subr.bf16.mxu0 %v9746_v56  ;;  %v713_v9 = vrot.slane %v9994_v39, 1  ;;  %v9995_v56 = vld [vmem:[%s10322_s8 + $0x50] ss:$0 sps:$4 sm:$0x11]   ;;  %v712_v61 = vsel %vm694_vm1, %v710_v52, %v711_v46  ;;  %v2666_v52 = vrot.slane %v10897_v26, 1 }
  0xda   : > { %9036 = vmatprep.mubr.bf16.mxu1 %v703_v35  ;;  %9065 = vmatpush3.bf16.msra.mxu1 %v10673_v50  ;;  %v1222_v50 = vsel %vm694_vm1, %v1220_v11, %v1221_v12  ;;  %v714_v4 = vrot.slane %v9995_v56, 1  ;;  %v9753_v35 = vld [vmem:[%s12843_s1 + $0x1a0] sm:$0xff]   ;;  %v9757_v11 = vld [vmem:[%s12843_s1 + $0x1a8] sm:$0xff]   ;;  %v9761_v12 = vld [vmem:[%s12843_s1 + $0x1b0] sm:$0xff]  }
  0xdb   : > { %9066 = vmatprep.subr.bf16.mxu1 %v9755_v15  ;;  %v9777_v39 = vld [vmem:[%s10322_s8 + $0x50] ss:$0 sps:$4 sm:$0x11]  }
  0xdc   : > { %8427 = vmatpush3.bf16.msra.mxu0 %v9747_v1  ;;  %v715_v1 = vsel %vm694_vm1, %v713_v9, %v714_v4  ;;  %v2669_v9 = vrot.slane %v10907_v51, 1  ;;  %v2667_v56 = vrot.slane %v9777_v39, 1 }
  0xdd   : > { %8428 = vmatprep.subr.bf16.mxu0 %v9748_v6  ;;  %v9766_v6 = vld [vmem:[%s12843_s1 + $0x230] sm:$0xff]  }
  0xde   : > { %9067 = vmatpush3.bf16.msra.mxu1 %v9755_v15  ;;  %v1228_v15 = vsel %vm694_vm1, %v1226_v37, %v1227_v21 }
  0xdf   : > { %8989 = vmatmul.mubr.bf16.gmra.mrb[68].mxu0 %v1219_v62  ;;  %9068 = vmatprep.subr.bf16.mxu1 %v9758_v43  ;;  %v2655_v62 = vrot.slane %v10858_v27, 1 }
  0xe0   : > { %8992 = vmatprep.mubr.bf16.mxu0 %v1222_v50  ;;  %8429 = vmatpush3.bf16.msra.mxu0 %v9749_v23  ;;  %v2657_v23 = vrot.slane %v10865_v36, 1  ;;  %v2451_v50 = vrot.slane %v2449_v18, 1 }
  0xe1   : > { %9037 = vmatmul.mubr.bf16.gmra.mrb[68].mxu1 %v706_v57  ;;  %8430 = vmatprep.subr.bf16.mxu0 %v9750_v55  ;;  %v2461_v55 = vshll.u32 %v10865_v36, 16  ;;  %v10888_v57 = vld [vmem:[%s10322_s8 + $0x3c] sm:$0xff]  }
  0xe2   : > { %9040 = vmatprep.mubr.bf16.mxu1 %v709_v29  ;;  %9069 = vmatpush3.bf16.msra.mxu1 %v9758_v43  ;;  %v2654_v43 = vrot.slane %v10852_v44, 1  ;;  %v2483_v4 = vshrl.u32 %v10888_v57, 16 }
  0xe3   : > { %9070 = vmatprep.subr.bf16.mxu1 %v9759_v14  ;;  %v2463_v37 = vrot.slane %v2461_v55, 1 }
  0xe4   : > { %8431 = vmatpush3.bf16.msra.mxu0 %v9751_v54  ;;  %v2663_v54 = vrot.slane %v10888_v57, 1 }
  0xe5   : > { %8432 = vmatprep.subr.bf16.mxu0 %v9752_v0 }
  0xe6   : > { %9071 = vmatpush3.bf16.msra.mxu1 %v9759_v14 }
  0xe7   : > { %8993 = vmatmul.mubr.bf16.gmra.mrb[72].mxu0 %v1225_v30  ;;  %9072 = vmatprep.subr.bf16.mxu1 %v9762_v10  ;;  %v2490_v30 = vshll.u32 %v9775_v47, 16 }
  0xe8   : > { %8996 = vmatprep.mubr.bf16.mxu0 %v1228_v15  ;;  %8433 = vmatpush3.bf16.msra.mxu0 %v9753_v35  ;;  %v10925_v15 = vld [vmem:[%s10322_s8 + $0x68] ss:$0 sps:$4 sm:$0x11]  }
  0xe9   : > { %9041 = vmatmul.mubr.bf16.gmra.mrb[72].mxu1 %v712_v61  ;;  %8434 = vmatprep.subr.bf16.mxu0 %v9756_v58  ;;  %v2492_v58 = vrot.slane %v2490_v30, 1 }
  0xea   : > { %9044 = vmatprep.mubr.bf16.mxu1 %v715_v1  ;;  %9073 = vmatpush3.bf16.msra.mxu1 %v9762_v10  ;;  %v2485_v10 = vshll.u32 %v10888_v57, 16  ;;  %v2673_v1 = vrot.slane %v10925_v15, 1 }
  0xeb   : > { %9074 = vmatprep.subr.bf16.mxu1 %v9763_v41 }
  0xec   : > { %8435 = vmatpush3.bf16.msra.mxu0 %v9757_v11 }
  0xed   : > { %8436 = vmatprep.subr.bf16.mxu0 %v9760_v13  ;;  %v2502_v13 = vshll.u32 %v9777_v39, 16 }
  0xee   : > { %9075 = vmatpush3.bf16.msra.mxu1 %v9763_v41  ;;  %v2495_v41 = vshrl.u32 %v10897_v26, 16 }
  0xef   : > { %8997 = vmatmul.mubr.bf16.gmra.mrb[76].mxu0 %v10647_v16  ;;  %9076 = vmatprep.subr.bf16.mxu1 %v9766_v6  ;;  %v10874_v16 = vld [vmem:[%s10322_s8 + $0x30] sm:$0xff]  }
  0xf0   : > { %9000 = vmatprep.mubr.bf16.mxu0 %v10659_v22  ;;  %8437 = vmatpush3.bf16.msra.mxu0 %v9761_v12  ;;  %v2454_v22 = vshll.u32 %v10858_v27, 16  ;;  %v2660_v29 = vrot.slane %v10874_v16, 1  ;;  %v2473_v21 = vshll.u32 %v10874_v16, 16  ;;  %v2471_v0 = vshrl.u32 %v10874_v16, 16 }
  0xf1   : > { %9045 = vmatmul.mubr.bf16.gmra.mrb[76].mxu1 %v10653_v31  ;;  %8438 = vmatprep.subr.bf16.mxu0 %v9764_v59  ;;  %v10882_v31 = vld [vmem:[%s10322_s8 + $0x2c] ss:$0 sps:$4 sm:$0x11]   ;;  %v2668_v27 = vsel %vm694_vm1, %v2666_v52, %v2667_v56  ;;  %v10996_v56 = vld [vmem:[%s10322_s8 + $0x98] ss:$0 sps:$4 sm:$0x11]  }
  0xf2   : > { %9048 = vmatprep.mubr.bf16.mxu1 %v10668_v60  ;;  %9077 = vmatpush3.bf16.msra.mxu1 %v9766_v6  ;;  %v2459_v60 = vshrl.u32 %v10865_v36, 16  ;;  %v2466_v14 = vshll.u32 %v10882_v31, 16  ;;  %v2456_v34 = vrot.slane %v2454_v22, 1  ;;  %v2658_v40 = vrot.slane %v10882_v31, 1 }
  0xf3   : > { %9078 = vmatprep.subr.bf16.mxu1 %v9767_v32  ;;  %v2475_v46 = vrot.slane %v2473_v21, 1  ;;  %v10964_v22 = vld [vmem:[%s10322_s8 + $0x80] ss:$0 sps:$4 sm:$0x11]   ;;  %v2504_v31 = vrot.slane %v2502_v13, 1 }
  0xf4   : > { %8439 = vmatpush3.bf16.msra.mxu0 %v9765_v42  ;;  %v2468_v3 = vrot.slane %v2466_v14, 1  ;;  %v2659_v12 = vsel %vm694_vm1, %v2657_v23, %v2658_v40  ;;  %v10957_v42 = vld [vmem:[%s10322_s8 + $0x74] ss:$0 sps:$4 sm:$0x11]   ;;  %v2509_v23 = vshll.u32 %v10907_v51, 16 }
  0xf5   : > { %v2476_v6 = vor.u32 %v2475_v46, %v2471_v0  ;;  %v2676_v55 = vrot.slane %v10957_v42, 1  ;;  %v10984_v52 = vld [vmem:[%s10322_s8 + $0x8c] ss:$0 sps:$4 sm:$0x11]  }
  0xf6   : > { %9079 = vmatpush3.bf16.msra.mxu1 %v9767_v32 }
  0xf7   : > { %9001 = vmatmul.mubr.bf16.gmra.mrb[80].mxu0 %v10665_v25  ;;  %v2661_v25 = vrot.slane %v9773_v38, 1 }
  0xf8   : > { %9004 = vmatprep.mubr.bf16.mxu0 %v10686_v45  ;;  %v2664_v45 = vrot.slane %v9775_v47, 1 }
  0xf9   : > { %9049 = vmatmul.mubr.bf16.gmra.mrb[80].mxu1 %v10677_v5  ;;  %v10912_v5 = vld [vmem:[%s10322_s8 + $0x5c] ss:$0 sps:$4 sm:$0x11]  }
  0xfa   : > { %9052 = vmatprep.mubr.bf16.mxu1 %v10695_v48  ;;  %v2480_v48 = vrot.slane %v2478_v2, 1  ;;  %v2670_v35 = vrot.slane %v10912_v5, 1  ;;  %v2665_v59 = vsel %vm694_vm1, %v2663_v54, %v2664_v45  ;;  %v2507_v54 = vshrl.u32 %v10907_v51, 16  ;;  %v10981_v2 = vld [vmem:[%s10322_s8 + $0x84] sm:$0xff]  }
  0xfb   : > { %v2514_v21 = vshll.u32 %v10912_v5, 16 }
  0xfd   : > { %v2516_v30 = vrot.slane %v2514_v21, 1 }
  0xff   : > { %9005 = vmatmul.mubr.bf16.gmra.mrb[84].mxu0 %v10689_v19  ;;  %v10922_v19 = vld [vmem:[%s10322_s8 + $0x60] sm:$0xff]  }
 0x100   : > { %9008 = vmatprep.mubr.bf16.mxu0 %v10711_v63  ;;  %v2487_v63 = vrot.slane %v2485_v10, 1  ;;  %v2672_v61 = vrot.slane %v10922_v19, 1 }
 0x101   : > { %9053 = vmatmul.mubr.bf16.gmra.mrb[84].mxu1 %v10699_v28  ;;  %v2452_v28 = vor.u32 %v2451_v50, %v2447_v49  ;;  %v10961_v49 = vld [vmem:[%s10322_s8 + $0x78] sm:$0xff]  }
 0x102   : > { %9056 = vmatprep.mubr.bf16.mxu1 %v10718_v7  ;;  %v2497_v7 = vshll.u32 %v10897_v26, 16  ;;  %v2488_v32 = vor.u32 %v2487_v63, %v2483_v4  ;;  %v2682_v63 = vrot.slane %v10984_v52, 1 }
 0x103   : > { %v2457_v11 = vsel %vm485_vm0, %v2452_v28, %v2456_v34 }
 0x104   : > { %v2493_v18 = vsel %vm485_vm0, %v2488_v32, %v2492_v58 }
 0x107   : > { %9009 = vmatmul.mubr.bf16.gmra.mrb[88].mxu0 %v10714_v8  ;;  %v2499_v8 = vrot.slane %v2497_v7, 1 }
 0x108   : > { %9012 = vmatprep.mubr.bf16.mxu0 %v10733_v53  ;;  %v2464_v53 = vor.u32 %v2463_v37, %v2459_v60 }
 0x109   : > { %9057 = vmatmul.mubr.bf16.gmra.mrb[88].mxu1 %v10724_v33  ;;  %v2656_v33 = vsel %vm694_vm1, %v2654_v43, %v2655_v62  ;;  %v2671_v43 = vsel %vm694_vm1, %v2669_v9, %v2670_v35  ;;  %v2500_v62 = vor.u32 %v2499_v8, %v2495_v41  ;;  %v10993_v9 = vld [vmem:[%s10322_s8 + $0x90] sm:$0xff]   ;;  %v2521_v35 = vshll.u32 %v10922_v19, 16 }
 0x10a   : > { %9060 = vmatprep.mubr.bf16.mxu1 %v10741_v20  ;;  %v2469_v20 = vsel %vm485_vm0, %v2464_v53, %v2468_v3  ;;  %v2511_v3 = vrot.slane %v2509_v23, 1  ;;  %v2684_v58 = vrot.slane %v10993_v9, 1 }
 0x10b   : > { %v2505_v37 = vsel %vm485_vm0, %v2500_v62, %v2504_v31  ;;  %v2523_v53 = vrot.slane %v2521_v35, 1 }
 0x10c   : > { %v2512_v10 = vor.u32 %v2511_v3, %v2507_v54 }
 0x10e   : > { %v2517_v13 = vsel %vm485_vm0, %v2512_v10, %v2516_v30 }
 0x10f   : > { %9013 = vmatmul.mubr.bf16.gmra.mrb[92].mxu0 %v10738_v24  ;;  %v2662_v24 = vsel %vm694_vm1, %v2660_v29, %v2661_v25  ;;  %v2678_v29 = vrot.slane %v10961_v49, 1 }
 0x110   : > { %2943 = vmatprep.mubr.bf16.mxu0 %v2457_v11 }
 0x111   : > { %9061 = vmatmul.mubr.bf16.gmra.mrb[92].mxu1 %v10746_v17  ;;  %v2481_v17 = vsel %vm485_vm0, %v2476_v6, %v2480_v48  ;;  %v11012_v6 = vld [vmem:[%s10322_s8 + $0x9c] sm:$0xff]  }
 0x112   : > { %9080 = vmatprep.mubr.bf16.mxu1 %v2656_v33  ;;  %v2519_v33 = vshrl.u32 %v10922_v19, 16 }
 0x114   : > { %v2524_v31 = vor.u32 %v2523_v53, %v2519_v33 }
 0x117   : > { %2944 = vmatmul.mubr.bf16.vlgmr.msra.gmra.mrb[96].mxu0 %v10852_v44  ;;  %v10954_v44 = vld [vmem:[%s10322_s8 + $0x6c] sm:$0xff]  }
 0x118   : > { %2951 = vmatprep.mubr.bf16.mxu0 %v2469_v20  ;;  %v2675_v60 = vrot.slane %v10954_v44, 1  ;;  %v2526_v20 = vshll.u32 %v10925_v15, 16  ;;  %v2531_v3 = vshrl.u32 %v10954_v44, 16 }
 0x119   : > { %9081 = vmatmul.mubr.bf16.vlgmr.msra.gmra.mrb[64].mxu1 %v2659_v12 }
 0x11a   : > { %9084 = vmatprep.mubr.bf16.mxu1 %v2662_v24  ;;  %v2677_v0 = vsel %vm694_vm1, %v2675_v60, %v2676_v55  ;;  %v2528_v23 = vrot.slane %v2526_v20, 1 }
 0x11c   : > { %v2529_v54 = vsel %vm485_vm0, %v2524_v31, %v2528_v23  ;;  %v2550_v23 = vshll.u32 %v10964_v22, 16 }
 0x11f   : > { %2952 = vmatmul.mubr.bf16.gmra.mrb[100].mxu0 %v10865_v36  ;;  %v2674_v36 = vsel %vm694_vm1, %v2672_v61, %v2673_v1  ;;  %v2685_v61 = vrot.slane %v10996_v56, 1 }
 0x120   : > { %2959 = vmatprep.mubr.bf16.mxu0 %v2481_v17  ;;  %v11015_v17 = vld [vmem:[%s10322_s8 + $0xa4] ss:$0 sps:$4 sm:$0x11]  }
 0x121   : > { %9085 = vmatmul.mubr.bf16.gmra.mrb[68].mxu1 %v2665_v59  ;;  %v2688_v55 = vrot.slane %v11015_v17, 1 }
 0x122   : > { %9088 = vmatprep.mubr.bf16.mxu1 %v2668_v27 }
 0x127   : > { %2960 = vmatmul.mubr.bf16.gmra.mrb[104].mxu0 %v10874_v16  ;;  %v2679_v16 = vrot.slane %v10964_v22, 1 }
 0x128   : > { %2967 = vmatprep.mubr.bf16.mxu0 %v2493_v18  ;;  %v2686_v18 = vsel %vm694_vm1, %v2684_v58, %v2685_v61 }
 0x129   : > { %9089 = vmatmul.mubr.bf16.gmra.mrb[72].mxu1 %v2671_v43  ;;  %v2680_v48 = vsel %vm694_vm1, %v2678_v29, %v2679_v16  ;;  %v11024_v43 = vld [vmem:[%s10322_s8 + $0xa8] sm:$0xff]  }
 0x12a   : > { %v8168_v50 = vpop.f32.mrb[0].mxu0  ;;  %9092 = vmatprep.mubr.bf16.mxu1 %v2674_v36  ;;  %v11027_v36 = vld [vmem:[%s10322_s8 + $0xb0] ss:$0 sps:$4 sm:$0x11]   ;;  %v2690_v29 = vrot.slane %v11024_v43, 1 }
 0x12b   : > { %v8169_v14 = vpop.f32.mrb[1].mxu0  ;;  %v2691_v16 = vrot.slane %v11027_v36, 1 }
 0x12c   : > { %v8171_v34 = vpop.f32.mrb[2].mxu0  ;;  %v8304_v38 = vpop.f32.mrb[0].mxu1  ;;  %v10974_v40 = vadd.f32 %v8169_v14, %v8168_v50  ;;  %v2533_v50 = vshll.u32 %v10954_v44, 16 }
 0x12d   : > { %v8172_v47 = vpop.f32.mrb[3].mxu0  ;;  %v8305_v25 = vpop.f32.mrb[1].mxu1 }
 0x12e   : > { %v10986_v45 = vadd.f32 %v8305_v25, %v8304_v38  ;;  %v8307_v46 = vpop.f32.mrb[2].mxu1  ;;  %v10988_v39 = vadd.f32 %v8172_v47, %v8171_v34  ;;  %v2535_v21 = vrot.slane %v2533_v50, 1  ;;  %v2538_v25 = vshll.u32 %v10957_v42, 16 }
 0x12f   : > { %2968 = vmatmul.mubr.bf16.gmra.mrb[108].mxu0 %v10888_v57  ;;  %v8308_v5 = vpop.f32.mrb[3].mxu1  ;;  %v2681_v57 = vrot.slane %v10981_v2, 1 }
 0x130   : > { %2975 = vmatprep.mubr.bf16.mxu0 %v2505_v37  ;;  %v10998_v4 = vadd.f32 %v8308_v5, %v8307_v46  ;;  %v11046_v5 = vld [vmem:[%s10322_s8 + $0xbc] ss:$0 sps:$4 sm:$0x11]   ;;  %v2536_v58 = vor.u32 %v2535_v21, %v2531_v3  ;;  %v2540_v61 = vrot.slane %v2538_v25, 1  ;;  %v2557_v3 = vshll.u32 %v10981_v2, 16 }
 0x131   : > { %9093 = vmatmul.mubr.bf16.gmra.mrb[76].mxu1 %v2677_v0  ;;  %v2683_v24 = vsel %vm694_vm1, %v2681_v57, %v2682_v63  ;;  %v11055_v57 = vld [vmem:[%s10322_s8 + $0xc0] sm:$0xff]   ;;  %v11058_v63 = vld [vmem:[%s10322_s8 + $0xc8] ss:$0 sps:$4 sm:$0x11]  }
 0x132   : > { %v8174_v28 = vpop.f32.mrb[4].mxu0  ;;  %9096 = vmatprep.mubr.bf16.mxu1 %v2680_v48  ;;  %v11043_v48 = vld [vmem:[%s10322_s8 + $0xb4] sm:$0xff]   ;;  %v2696_v33 = vrot.slane %v11055_v57, 1  ;;  %v2697_v53 = vrot.slane %v11058_v63, 1 }
 0x133   : > { %v8175_v7 = vpop.f32.mrb[5].mxu0 }
 0x134   : > { %v8177_v1 = vpop.f32.mrb[6].mxu0  ;;  %v8310_v41 = vpop.f32.mrb[4].mxu1  ;;  %v11005_v11 = vadd.f32 %v8175_v7, %v8174_v28  ;;  %v2692_v28 = vsel %vm694_vm1, %v2690_v29, %v2691_v16 }
 0x135   : > { %v8178_v8 = vpop.f32.mrb[7].mxu0  ;;  %v8311_v12 = vpop.f32.mrb[5].mxu1 }
 0x136   : > { %v11017_v59 = vadd.f32 %v8311_v12, %v8310_v41  ;;  %v8313_v27 = vpop.f32.mrb[6].mxu1  ;;  %v11019_v32 = vadd.f32 %v8178_v8, %v8177_v1  ;;  %v2545_v1 = vshll.u32 %v10961_v49, 16  ;;  %v2694_v8 = vrot.slane %v11046_v5, 1 }
 0x137   : > { %2976 = vmatmul.mubr.bf16.gmra.mrb[112].mxu0 %v10897_v26  ;;  %v8314_v15 = vpop.f32.mrb[7].mxu1  ;;  %v2687_v26 = vrot.slane %v11012_v6, 1 }
 0x138   : > { %2983 = vmatprep.mubr.bf16.mxu0 %v2517_v13  ;;  %v11029_v62 = vadd.f32 %v8314_v15, %v8313_v27  ;;  %v2543_v15 = vshrl.u32 %v10961_v49, 16  ;;  %v2547_v31 = vrot.slane %v2545_v1, 1  ;;  %v2559_v1 = vrot.slane %v2557_v3, 1 }
 0x139   : > { %9097 = vmatmul.mubr.bf16.gmra.mrb[80].mxu1 %v2683_v24  ;;  %v2689_v46 = vsel %vm694_vm1, %v2687_v26, %v2688_v55  ;;  %v11074_v26 = vld [vmem:[%s10322_s8 + $0xcc] sm:$0xff]   ;;  %v11077_v55 = vld [vmem:[%s10322_s8 + $0xd4] ss:$0 sps:$4 sm:$0x11]  }
 0x13a   : > { %v8180_v60 = vpop.f32.mrb[8].mxu0  ;;  %9100 = vmatprep.mubr.bf16.mxu1 %v2686_v18  ;;  %v2541_v18 = vsel %vm485_vm0, %v2536_v58, %v2540_v61  ;;  %v2548_v22 = vor.u32 %v2547_v31, %v2543_v15  ;;  %v2699_v25 = vrot.slane %v11074_v26, 1  ;;  %v2555_v61 = vshrl.u32 %v10981_v2, 16 }
 0x13b   : > { %v8181_v14 = vpop.f32.mrb[9].mxu0  ;;  %v2569_v15 = vshll.u32 %v10993_v9, 16 }
 0x13c   : > { %v8183_v34 = vpop.f32.mrb[10].mxu0  ;;  %v8316_v38 = vpop.f32.mrb[8].mxu1  ;;  %v11036_v47 = vadd.f32 %v8181_v14, %v8180_v60 }
 0x13d   : > { %v8184_v37 = vpop.f32.mrb[11].mxu0  ;;  %v8317_v0 = vpop.f32.mrb[9].mxu1 }
 0x13e   : > { %v11048_v10 = vadd.f32 %v8317_v0, %v8316_v38  ;;  %v8319_v30 = vpop.f32.mrb[10].mxu1  ;;  %v11050_v35 = vadd.f32 %v8184_v37, %v8183_v34  ;;  %v2698_v34 = vsel %vm694_vm1, %v2696_v33, %v2697_v53  ;;  %v2700_v0 = vrot.slane %v11077_v55, 1 }
 0x13f   : > { %2984 = vmatmul.mubr.bf16.gmra.mrb[116].mxu0 %v10907_v51  ;;  %v8320_v42 = vpop.f32.mrb[11].mxu1  ;;  %v2693_v51 = vrot.slane %v11043_v48, 1 }
 0x140   : > { %2991 = vmatprep.mubr.bf16.mxu0 %v2529_v54  ;;  %v11060_v7 = vadd.f32 %v8320_v42, %v8319_v30  ;;  %v2552_v54 = vrot.slane %v2550_v23, 1 }
 0x141   : > { %9101 = vmatmul.mubr.bf16.gmra.mrb[84].mxu1 %v2689_v46  ;;  %v2695_v60 = vsel %vm694_vm1, %v2693_v51, %v2694_v8  ;;  %v2701_v8 = vsel %vm694_vm1, %v2699_v25, %v2700_v0 }
 0x142   : > { %v8186_v41 = vpop.f32.mrb[12].mxu0  ;;  %9104 = vmatprep.mubr.bf16.mxu1 %v2692_v28  ;;  %v2553_v58 = vsel %vm485_vm0, %v2548_v22, %v2552_v54  ;;  %v2574_v22 = vshll.u32 %v10996_v56, 16 }
 0x143   : > { %v8187_v13 = vpop.f32.mrb[13].mxu0 }
 0x144   : > { %v8189_v20 = vpop.f32.mrb[14].mxu0  ;;  %v8322_v12 = vpop.f32.mrb[12].mxu1  ;;  %v11067_v24 = vadd.f32 %v8187_v13, %v8186_v41  ;;  %v2562_v41 = vshll.u32 %v10984_v52, 16 }
 0x145   : > { %v8190_v27 = vpop.f32.mrb[15].mxu0  ;;  %v8323_v50 = vpop.f32.mrb[13].mxu1 }
 0x146   : > { %v11079_v14 = vadd.f32 %v8323_v50, %v8322_v12  ;;  %v8325_v29 = vpop.f32.mrb[14].mxu1  ;;  %v11081_v16 = vadd.f32 %v8190_v27, %v8189_v20  ;;  %v2560_v27 = vor.u32 %v2559_v1, %v2555_v61 }
 0x147   : > { %2992 = vmatmul.mubr.bf16.gmra.mrb[120].mxu0 %v10922_v19  ;;  %v8326_v38 = vpop.f32.mrb[15].mxu1 }
 0x148   : > { %2999 = vmatprep.mubr.bf16.mxu0 %v2541_v18  ;;  %v11085_v37 = vadd.f32 %v8326_v38, %v8325_v29  ;;  %v2564_v18 = vrot.slane %v2562_v41, 1  ;;  %v2571_v38 = vrot.slane %v2569_v15, 1 }
 0x149   : > { %9105 = vmatmul.mubr.bf16.gmra.mrb[88].mxu1 %v2695_v60 }
 0x14a   : > { %v8192_v21 = vpop.f32.mrb[16].mxu0  ;;  %9108 = vmatprep.mubr.bf16.mxu1 %v2698_v34  ;;  %v2565_v34 = vsel %vm485_vm0, %v2560_v27, %v2564_v18 }
 0x14b   : > { %v8193_v46 = vpop.f32.mrb[17].mxu0 }
 0x14c   : > { %v8195_v30 = vpop.f32.mrb[18].mxu0  ;;  %v8328_v19 = vpop.f32.mrb[16].mxu1  ;;  %v11090_v28 = vadd.f32 %v8193_v46, %v8192_v21 }
 0x14d   : > { %v8196_v42 = vpop.f32.mrb[19].mxu0  ;;  %v8329_v51 = vpop.f32.mrb[17].mxu1 }
 0x14e   : > { %v11096_v13 = vadd.f32 %v8329_v51, %v8328_v19  ;;  %v8331_v33 = vpop.f32.mrb[18].mxu1  ;;  %v11098_v53 = vadd.f32 %v8196_v42, %v8195_v30  ;;  %v2576_v19 = vrot.slane %v2574_v22, 1  ;;  %v2581_v42 = vshll.u32 %v11012_v6, 16 }
 0x14f   : > { %3000 = vmatmul.mubr.bf16.gmra.mrb[124].mxu0 %v10954_v44  ;;  %v8332_v20 = vpop.f32.mrb[19].mxu1  ;;  %v2567_v44 = vshrl.u32 %v10993_v9, 16 }
 0x150   : > { %3007 = vmatprep.mubr.bf16.mxu0 %v2553_v58  ;;  %v11101_v12 = vadd.f32 %v8332_v20, %v8331_v33  ;;  %v2579_v33 = vshrl.u32 %v11012_v6, 16  ;;  %v2586_v20 = vshll.u32 %v11015_v17, 16 }
 0x151   : > { %9109 = vmatmul.mubr.bf16.gmra.mrb[92].mxu1 %v2701_v8  ;;  %v2572_v30 = vor.u32 %v2571_v38, %v2567_v44 }
 0x152   : > { %v8198_v52 = vpop.f32.mrb[20].mxu0 }
 0x153   : > { %v8199_v31 = vpop.f32.mrb[21].mxu0  ;;  %v2577_v8 = vsel %vm485_vm0, %v2572_v30, %v2576_v19  ;;  %v2591_v30 = vshrl.u32 %v11024_v43, 16  ;;  %v2598_v19 = vshll.u32 %v11027_v36, 16 }
 0x154   : > { %v8201_v23 = vpop.f32.mrb[22].mxu0  ;;  %v8334_v50 = vpop.f32.mrb[20].mxu1  ;;  %v11104_v60 = vadd.f32 %v8199_v31, %v8198_v52 }
 0x155   : > { %v8202_v29 = vpop.f32.mrb[23].mxu0  ;;  %v8335_v54 = vpop.f32.mrb[21].mxu1 }
 0x156   : > { %v11109_v3 = vadd.f32 %v8335_v54, %v8334_v50  ;;  %v8337_v21 = vpop.f32.mrb[22].mxu1  ;;  %v11111_v25 = vadd.f32 %v8202_v29, %v8201_v23  ;;  %v2588_v29 = vrot.slane %v2586_v20, 1 }
 0x157   : > { %3008 = vmatmul.mubr.bf16.gmra.mrb[128].mxu0 %v10961_v49  ;;  %v8338_v0 = vpop.f32.mrb[23].mxu1  ;;  %v2583_v49 = vrot.slane %v2581_v42, 1 }
 0x158   : > { %3015 = vmatprep.mubr.bf16.mxu0 %v2565_v34  ;;  %v11114_v46 = vadd.f32 %v8338_v0, %v8337_v21  ;;  %v2593_v34 = vshll.u32 %v11024_v43, 16 }
 0x159   : > { %v2584_v50 = vor.u32 %v2583_v49, %v2579_v33  ;;  %v2600_v33 = vrot.slane %v2598_v19, 1  ;;  %v2605_v49 = vshll.u32 %v11043_v48, 16 }
 0x15a   : > { %v8204_v58 = vpop.f32.mrb[24].mxu0 }
 0x15b   : > { %v8205_v61 = vpop.f32.mrb[25].mxu0  ;;  %v2589_v0 = vsel %vm485_vm0, %v2584_v50, %v2588_v29 }
 0x15c   : > { %v8207_v1 = vpop.f32.mrb[26].mxu0  ;;  %v8340_v56 = vpop.f32.mrb[24].mxu1  ;;  %v11117_v41 = vadd.f32 %v8205_v61, %v8204_v58 }
 0x15d   : > { %v8208_v51 = vpop.f32.mrb[27].mxu0  ;;  %v8341_v27 = vpop.f32.mrb[25].mxu1 }
 0x15e   : > { %v11122_v18 = vadd.f32 %v8341_v27, %v8340_v56  ;;  %v8343_v15 = vpop.f32.mrb[26].mxu1  ;;  %v11124_v52 = vadd.f32 %v8208_v51, %v8207_v1 }
 0x15f   : > { %3016 = vmatmul.mubr.bf16.gmra.mrb[132].mxu0 %v10981_v2  ;;  %v8344_v31 = vpop.f32.mrb[27].mxu1  ;;  %v2595_v2 = vrot.slane %v2593_v34, 1  ;;  %v2603_v34 = vshrl.u32 %v11043_v48, 16 }
 0x160   : > { %3023 = vmatprep.mubr.bf16.mxu0 %v2577_v8  ;;  %v11127_v23 = vadd.f32 %v8344_v31, %v8343_v15 }
 0x161   : > { %v2596_v8 = vor.u32 %v2595_v2, %v2591_v30 }
 0x162   : > { %v8210_v44 = vpop.f32.mrb[28].mxu0 }
 0x163   : > { %v8211_v38 = vpop.f32.mrb[29].mxu0  ;;  %v2601_v29 = vsel %vm485_vm0, %v2596_v8, %v2600_v33 }
 0x164   : > { %v8213_v22 = vpop.f32.mrb[30].mxu0  ;;  %v8346_v17 = vpop.f32.mrb[28].mxu1  ;;  %v11130_v54 = vadd.f32 %v8211_v38, %v8210_v44  ;;  %v2610_v44 = vshll.u32 %v11046_v5, 16 }
 0x165   : > { %v8214_v21 = vpop.f32.mrb[31].mxu0  ;;  %v8347_v42 = vpop.f32.mrb[29].mxu1 }
 0x166   : > { %v11135_v58 = vadd.f32 %v8347_v42, %v8346_v17  ;;  %v8349_v61 = vpop.f32.mrb[30].mxu1  ;;  %v11137_v1 = vadd.f32 %v8214_v21, %v8213_v22  ;;  %v2612_v19 = vrot.slane %v2610_v44, 1  ;;  %v2617_v42 = vshll.u32 %v11055_v57, 16 }
 0x167   : > { %3024 = vmatmul.mubr.bf16.gmra.mrb[136].mxu0 %v10993_v9  ;;  %v8350_v56 = vpop.f32.mrb[31].mxu1  ;;  %v2607_v9 = vrot.slane %v2605_v49, 1  ;;  %v9800_v49 = vld [vmem:[#allocation3 + $0x100] sm:$0xff]  }
 0x168   : > { %3031 = vmatprep.mubr.bf16.mxu0 %v2589_v0  ;;  %v11140_v51 = vadd.f32 %v8350_v56, %v8349_v61  ;;  %8560 = vmatprep.subr.bf16.mxu0 %v9800_v49  ;;  %v9805_v49 = vld [vmem:[#allocation3 + $0x148] sm:$0xff]  }
 0x169   : > { %v2608_v2 = vor.u32 %v2607_v9, %v2603_v34 }
 0x16a   : > { %v8216_v20 = vpop.f32.mrb[32].mxu0 }
 0x16b   : > { %v8217_v27 = vpop.f32.mrb[33].mxu0 }
 0x16c   : > { %v11143_v15 = vadd.f32 %v8217_v27, %v8216_v20  ;;  %v8219_v36 = vpop.f32.mrb[34].mxu0  ;;  %v8352_v31 = vpop.f32.mrb[32].mxu1  ;;  %v11159_v27 = vsel %vm485_vm0, %v2608_v2, %v2612_v19  ;;  %v9803_v2 = vld [vmem:[#allocation3 + $0x108] sm:$0xff]  }
 0x16d   : > { %v8220_v50 = vpop.f32.mrb[35].mxu0  ;;  %v8353_v38 = vpop.f32.mrb[33].mxu1 }
 0x16e   : > { %v11148_v22 = vadd.f32 %v8220_v50, %v8219_v36  ;;  %v11150_v17 = vadd.f32 %v8353_v38, %v8352_v31  ;;  %v8355_v21 = vpop.f32.mrb[34].mxu1  ;;  %v11162_v36 = vrot.slane %v2617_v42, 1  ;;  %v2622_v31 = vshll.u32 %v11058_v63, 16 }
 0x16f   : > { %3032 = vmatmul.mubr.bf16.gmra.mrb[140].mxu0 %v11012_v6  ;;  %v8356_v0 = vpop.f32.mrb[35].mxu1  ;;  %v2615_v6 = vshrl.u32 %v11055_v57, 16  ;;  %v2627_v63 = vshrl.u32 %v11074_v26, 16 }
 0x170   : > { %3039 = vmatprep.mubr.bf16.mxu0 %v2601_v29  ;;  %v11153_v30 = vadd.f32 %v8356_v0, %v8355_v21  ;;  %v11165_v29 = vld [vmem:[#allocation3 + $0xc0] sm:$0xff]   ;;  %v10097_v21 = vmov 0   ;;  %v2624_v42 = vrot.slane %v2622_v31, 1  ;;  %v2634_v31 = vshll.u32 %v11077_v55, 16 }
 0x171   : > { %3378 = vst [vmem:[#allocation2 + $0xc] sm:$0xf] %v10097_v21  ;;  %3375 = vst [vmem:[#allocation2] sm:$0xf] %v10097_v21  ;;  %8561 = vmatpush3.bf16.msra.mxu0 %v11165_v29  ;;  %v2620_v19 = vor.u32 %v11162_v36, %v2615_v6  ;;  %v9806_v29 = vld [vmem:[#allocation3 + $0x110] sm:$0xff]  }
 0x172   : > { %v8222_v61 = vpop.f32.mrb[36].mxu0  ;;  %3376 = vst [vmem:[#allocation2 + $0x4] sm:$0xf] %v10097_v21  ;;  %3377 = vst [vmem:[#allocation2 + $0x8] sm:$0x1] %v10097_v21  ;;  %8562 = vmatprep.subr.bf16.mxu0 %v9803_v2 }
 0x173   : > { %v8223_v56 = vpop.f32.mrb[37].mxu0  ;;  %3379 = vst [vmem:[#allocation2 + $0x10] sm:$0xf] %v10097_v21  ;;  %3380 = vst [vmem:[#allocation2 + $0x14] sm:$0x1] %v10097_v21  ;;  %v2625_v6 = vsel %vm485_vm0, %v2620_v19, %v2624_v42  ;;  %v9809_v42 = vld [vmem:[#allocation3 + $0x118] sm:$0xff]  }
 0x174   : > { %v11156_v8 = vadd.f32 %v8223_v56, %v8222_v61  ;;  %v8225_v5 = vpop.f32.mrb[38].mxu0  ;;  %v8358_v33 = vpop.f32.mrb[36].mxu1  ;;  %3381 = vst [vmem:[#allocation2 + $0x18] sm:$0xf] %v10097_v21  ;;  %3382 = vst [vmem:[#allocation2 + $0x1c] sm:$0xf] %v10097_v21 }
 0x175   : > { %v8226_v20 = vpop.f32.mrb[39].mxu0  ;;  %v8359_v50 = vpop.f32.mrb[37].mxu1  ;;  %3383 = vst [vmem:[#allocation2 + $0x20] sm:$0x1] %v10097_v21  ;;  %3384 = vst [vmem:[#allocation2 + $0x24] sm:$0xf] %v10097_v21 }
 0x176   : > { %v11167_v34 = vadd.f32 %v8226_v20, %v8225_v5  ;;  %v11169_v9 = vadd.f32 %v8359_v50, %v8358_v33  ;;  %v8361_v44 = vpop.f32.mrb[38].mxu1  ;;  %3385 = vst [vmem:[#allocation2 + $0x28] sm:$0xf] %v10097_v21  ;;  %3386 = vst [vmem:[#allocation2 + $0x2c] sm:$0x1] %v10097_v21  ;;  %v2629_v61 = vshll.u32 %v11074_v26, 16 }
 0x177   : > { %3040 = vmatmul.mubr.bf16.gmra.mrb[144].mxu0 %v11024_v43  ;;  %v8362_v38 = vpop.f32.mrb[39].mxu1  ;;  %3387 = vst [vmem:[#allocation2 + $0x30] sm:$0xf] %v10097_v21  ;;  %3388 = vst [vmem:[#allocation2 + $0x34] sm:$0xf] %v10097_v21  ;;  %v9802_v43 = vld [vmem:[#allocation3 + $0x140] sm:$0xff]  }
 0x178   : > { %3389 = vst [vmem:[#allocation2 + $0x38] sm:$0x1] %v10097_v21  ;;  %3390 = vst [vmem:[#allocation2 + $0x3c] sm:$0xf] %v10097_v21  ;;  %3047 = vmatprep.mubr.bf16.mxu0 %v11159_v27  ;;  %v11173_v0 = vadd.f32 %v8362_v38, %v8361_v44  ;;  %9112 = vmatprep.subr.bf16.mxu1 %v9802_v43  ;;  %v9804_v56 = vld [vmem:[#allocation3 + $0xc8] sm:$0xff]   ;;  %v2631_v36 = vrot.slane %v2629_v61, 1 }
 0x179   : > { %3391 = vst [vmem:[#allocation2 + $0x40] sm:$0xf] %v10097_v21  ;;  %3392 = vst [vmem:[#allocation2 + $0x44] sm:$0x1] %v10097_v21  ;;  %9113 = vmatpush3.bf16.msra.mxu1 %v9802_v43  ;;  %8563 = vmatpush3.bf16.msra.mxu0 %v9804_v56  ;;  %v2636_v61 = vrot.slane %v2634_v31, 1 }
 0x17a   : > { %3393 = vst [vmem:[#allocation2 + $0x48] sm:$0xf] %v10097_v21  ;;  %3394 = vst [vmem:[#allocation2 + $0x4c] sm:$0xf] %v10097_v21  ;;  %v8228_v5 = vpop.f32.mrb[40].mxu0  ;;  %9114 = vmatprep.subr.bf16.mxu1 %v9805_v49  ;;  %8564 = vmatprep.subr.bf16.mxu0 %v9806_v29  ;;  %v2632_v55 = vor.u32 %v2631_v36, %v2627_v63  ;;  %v9813_v63 = vld [vmem:[#allocation3 + $0xe0] sm:$0xff]  }
 0x17b   : > { %3395 = vst [vmem:[#allocation2 + $0x50] sm:$0x1] %v10097_v21  ;;  %3396 = vst [vmem:[#allocation2 + $0x54] sm:$0xf] %v10097_v21  ;;  %v8229_v33 = vpop.f32.mrb[41].mxu0 }
 0x17c   : > { %3397 = vst [vmem:[#allocation2 + $0x58] sm:$0xf] %v10097_v21  ;;  %3398 = vst [vmem:[#allocation2 + $0x5c] sm:$0x1] %v10097_v21  ;;  %v11182_v20 = vadd.f32 %v8229_v33, %v8228_v5  ;;  %v8231_v27 = vpop.f32.mrb[42].mxu0  ;;  %v8364_v50 = vpop.f32.mrb[40].mxu1 }
 0x17d   : > { %3399 = vst [vmem:[#allocation2 + $0x60] sm:$0xf] %v10097_v21  ;;  %3400 = vst [vmem:[#allocation2 + $0x64] sm:$0xf] %v10097_v21  ;;  %v8232_v44 = vpop.f32.mrb[43].mxu0  ;;  %v8365_v38 = vpop.f32.mrb[41].mxu1  ;;  %9115 = vmatpush3.bf16.msra.mxu1 %v9805_v49 }
 0x17e   : > { %3401 = vst [vmem:[#allocation2 + $0x68] sm:$0x1] %v10097_v21  ;;  %3402 = vst [vmem:[#allocation2 + $0x6c] sm:$0xf] %v10097_v21  ;;  %v11187_v43 = vadd.f32 %v8232_v44, %v8231_v27  ;;  %v11189_v2 = vadd.f32 %v8365_v38, %v8364_v50  ;;  %v8367_v5 = vpop.f32.mrb[42].mxu1  ;;  %v9808_v33 = vld [vmem:[#allocation3 + $0x150] sm:$0xff]  }
 0x17f   : > { %3403 = vst [vmem:[#allocation2 + $0x70] sm:$0xf] %v10097_v21  ;;  %3404 = vst [vmem:[#allocation2 + $0x74] sm:$0x1] %v10097_v21  ;;  %3048 = vmatmul.mubr.bf16.gmra.mrb[148].mxu0 %v11043_v48  ;;  %v8368_v56 = vpop.f32.mrb[43].mxu1  ;;  %9116 = vmatprep.subr.bf16.mxu1 %v9808_v33  ;;  %v9811_v44 = vld [vmem:[#allocation3 + $0x158] sm:$0xff]  }
 0x180   : > { %3405 = vst [vmem:[#allocation2 + $0x78] sm:$0xf] %v10097_v21  ;;  %3406 = vst [vmem:[#allocation2 + $0x7c] sm:$0xf] %v10097_v21  ;;  %3055 = vmatprep.mubr.bf16.mxu0 %v2625_v6  ;;  %v11192_v19 = vadd.f32 %v8368_v56, %v8367_v5  ;;  %v9812_v38 = vld [vmem:[#allocation3 + $0x120] sm:$0xff]   ;;  %v2637_v5 = vsel %vm485_vm0, %v2632_v55, %v2636_v61  ;;  %v9816_v55 = vld [vmem:[#allocation3 + $0xe8] sm:$0xff]  }
 0x181   : > { %3407 = vst [vmem:[#allocation2 + $0x80] sm:$0x1] %v10097_v21  ;;  %3408 = vst [vmem:[#allocation2 + $0x84] sm:$0xf] %v10097_v21  ;;  %9117 = vmatpush3.bf16.msra.mxu1 %v9808_v33 }
 0x182   : > { %3409 = vst [vmem:[#allocation2 + $0x88] sm:$0xf] %v10097_v21  ;;  %3410 = vst [vmem:[#allocation2 + $0x8c] sm:$0x1] %v10097_v21  ;;  %v8234_v27 = vpop.f32.mrb[44].mxu0  ;;  %9118 = vmatprep.subr.bf16.mxu1 %v9811_v44 }
 0x183   : > { %3411 = vst [vmem:[#allocation2 + $0x90] sm:$0xf] %v10097_v21  ;;  %3412 = vst [vmem:[#allocation2 + $0x94] sm:$0xf] %v10097_v21  ;;  %v8235_v50 = vpop.f32.mrb[45].mxu0 }
 0x184   : > { %3413 = vst [vmem:[#allocation2 + $0x98] sm:$0x1] %v10097_v21  ;;  %3414 = vst [vmem:[#allocation2 + $0x9c] sm:$0xf] %v10097_v21  ;;  %v11194_v29 = vadd.f32 %v8235_v50, %v8234_v27  ;;  %v8237_v49 = vpop.f32.mrb[46].mxu0  ;;  %v8370_v48 = vpop.f32.mrb[44].mxu1 }
 0x185   : > { %3415 = vst [vmem:[#allocation2 + $0xa0] sm:$0xf] %v10097_v21  ;;  %3416 = vst [vmem:[#allocation2 + $0xa4] sm:$0x1] %v10097_v21  ;;  %v8238_v6 = vpop.f32.mrb[47].mxu0  ;;  %9119 = vmatpush3.bf16.msra.mxu1 %v9811_v44  ;;  %v9815_v27 = vld [vmem:[#allocation3 + $0x128] sm:$0xff]  }
 0x186   : > { %3417 = vst [vmem:[#allocation2 + $0xa8] sm:$0xf] %v10097_v21  ;;  %3418 = vst [vmem:[#allocation2 + $0xac] sm:$0xf] %v10097_v21  ;;  %v11197_v36 = vadd.f32 %v8238_v6, %v8237_v49  ;;  %v9817_v49 = vld [vmem:[#allocation3 + $0x168] sm:$0xff]  }
 0x187   : > { %3419 = vst [vmem:[#allocation2 + $0xb0] sm:$0x1] %v10097_v21  ;;  %3420 = vst [vmem:[#allocation2 + $0xb4] sm:$0xf] %v10097_v21  ;;  %3056 = vmatmul.mubr.bf16.gmra.mrb[152].mxu0 %v11055_v57  ;;  %v9818_v57 = vld [vmem:[#allocation3 + $0x130] sm:$0xff]  }
 0x188   : > { %3421 = vst [vmem:[#allocation2 + $0xb8] sm:$0xf] %v10097_v21  ;;  %3422 = vst [vmem:[#allocation2 + $0xbc] sm:$0x1] %v10097_v21  ;;  %3063 = vmatprep.mubr.bf16.mxu0 %v2637_v5  ;;  %v9819_v5 = vld [vmem:[#allocation3 + $0xf0] sm:$0xff]  }
 0x189   : > { %3423 = vst [vmem:[#allocation2 + $0xc0] sm:$0xf] %v10097_v21  ;;  %3424 = vst [vmem:[#allocation2 + $0xc4] sm:$0xf] %v10097_v21 }
 0x18a   : > { %3425 = vst [vmem:[#allocation2 + $0xc8] sm:$0x1] %v10097_v21  ;;  %3426 = vst [vmem:[#allocation2 + $0xcc] sm:$0xf] %v10097_v21  ;;  %v8240_v61 = vpop.f32.mrb[48].mxu0 }
 0x18b   : > { %3427 = vst [vmem:[#allocation2 + $0xd0] sm:$0xf] %v10097_v21  ;;  %3428 = vst [vmem:[#allocation2 + $0xd4] sm:$0x1] %v10097_v21  ;;  %v9807_v21 = vld [vmem:[#allocation3 + $0xd0] sm:$0xff]   ;;  %v8241_v50 = vpop.f32.mrb[49].mxu0 }
 0x18c   : > { %12860 = vst [vmem:[#allocation9_spill] sm:$0xff] %v11182_v20  ;;  %12861 = vst [vmem:[#allocation10_spill] sm:$0xff] %v11192_v19  ;;  %8565 = vmatpush3.bf16.msra.mxu0 %v9807_v21  ;;  %v9810_v20 = vld [vmem:[#allocation3 + $0xd8] sm:$0xff]   ;;  %v8371_v21 = vpop.f32.mrb[45].mxu1 }
 0x18d   : > { %8566 = vmatprep.subr.bf16.mxu0 %v9809_v42  ;;  %v11199_v31 = vadd.f32 %v8371_v21, %v8370_v48  ;;  %v8373_v56 = vpop.f32.mrb[46].mxu1  ;;  %v9814_v42 = vld [vmem:[#allocation3 + $0x160] sm:$0xff]   ;;  %v11204_v48 = vadd.f32 %v8241_v50, %v8240_v61  ;;  %v9824_v50 = vld [vmem:[#allocation3 + $0xf8] sm:$0xff]  }
 0x18e   : > { %v8374_v33 = vpop.f32.mrb[47].mxu1  ;;  %9120 = vmatprep.subr.bf16.mxu1 %v9814_v42  ;;  %v9825_v19 = vld [vmem:[#allocation3 + $0x178] sm:$0xff]  }
 0x18f   : > { %9121 = vmatpush3.bf16.msra.mxu1 %v9814_v42  ;;  %12863 = vst [vmem:[#allocation12_spill] sm:$0xff] %v11204_v48  ;;  %v8376_v44 = vpop.f32.mrb[48].mxu1  ;;  %3064 = vmatmul.mubr.bf16.gmra.mrb[156].mxu0 %v11074_v26 }
 0x190   : > { %8567 = vmatpush3.bf16.msra.mxu0 %v9810_v20  ;;  %v11202_v20 = vadd.f32 %v8374_v33, %v8373_v56  ;;  %v8377_v21 = vpop.f32.mrb[49].mxu1  ;;  %9122 = vmatprep.subr.bf16.mxu1 %v9817_v49 }
 0x191   : > { %8568 = vmatprep.subr.bf16.mxu0 %v9812_v38  ;;  %v8243_v38 = vpop.f32.mrb[50].mxu0  ;;  %v8379_v33 = vpop.f32.mrb[50].mxu1 }
 0x192   : > { %12862 = vst [vmem:[#allocation11_spill] sm:$0xff] %v11202_v20  ;;  %v8244_v6 = vpop.f32.mrb[51].mxu0  ;;  %v8380_v42 = vpop.f32.mrb[51].mxu1 }
 0x193   : > { %v11206_v56 = vadd.f32 %v8244_v6, %v8243_v38  ;;  %9123 = vmatpush3.bf16.msra.mxu1 %v9817_v49  ;;  %v11211_v61 = vadd.f32 %v8380_v42, %v8379_v33  ;;  %v8246_v48 = vpop.f32.mrb[52].mxu0 }
 0x194   : > { %8569 = vmatpush3.bf16.msra.mxu0 %v9813_v63  ;;  %v11208_v63 = vadd.f32 %v8377_v21, %v8376_v44  ;;  %v8247_v38 = vpop.f32.mrb[53].mxu0  ;;  %v8382_v21 = vpop.f32.mrb[52].mxu1 }
 0x195   : > { %8570 = vmatprep.subr.bf16.mxu0 %v9815_v27  ;;  %12864 = vst [vmem:[#allocation13_spill] sm:$0xff] %v11206_v56  ;;  %v9820_v27 = vld [vmem:[#allocation3 + $0x170] sm:$0xff]   ;;  %12866 = vst [vmem:[#allocation15_spill] sm:$0xff] %v11211_v61  ;;  %v11213_v6 = vadd.f32 %v8247_v38, %v8246_v48  ;;  %v8249_v44 = vpop.f32.mrb[54].mxu0 }
 0x196   : > { %12865 = vst [vmem:[#allocation14_spill] sm:$0xff] %v11208_v63  ;;  %9124 = vmatprep.subr.bf16.mxu1 %v9820_v27  ;;  %v8250_v49 = vpop.f32.mrb[55].mxu0 }
 0x197   : > { %9125 = vmatpush3.bf16.msra.mxu1 %v9820_v27  ;;  %12867 = vst [vmem:[#allocation16_spill] sm:$0xff] %v11213_v6  ;;  %v11215_v26 = vadd.f32 %v8250_v49, %v8249_v44 }
 0x198   : > { %8571 = vmatpush3.bf16.msra.mxu0 %v9816_v55  ;;  %v9823_v55 = vld [vmem:[#allocation3 + $0x138] sm:$0xff]   ;;  %9126 = vmatprep.subr.bf16.mxu1 %v9825_v19 }
 0x199   : > { %8572 = vmatprep.subr.bf16.mxu0 %v9818_v57  ;;  %v8383_v57 = vpop.f32.mrb[53].mxu1  ;;  %12868 = vst [vmem:[#allocation17_spill] sm:$0xff] %v11215_v26 }
 0x19a   : > { %v11217_v56 = vadd.f32 %v8383_v57, %v8382_v21  ;;  %v8385_v33 = vpop.f32.mrb[54].mxu1  ;;  %v8252_v61 = vpop.f32.mrb[56].mxu0 }
 0x19b   : > { %v8253_v63 = vpop.f32.mrb[57].mxu0  ;;  %9127 = vmatpush3.bf16.msra.mxu1 %v9825_v19 }
 0x19c   : > { %8573 = vmatpush3.bf16.msra.mxu0 %v9819_v5  ;;  %v8386_v5 = vpop.f32.mrb[55].mxu1  ;;  %v8255_v27 = vpop.f32.mrb[58].mxu0 }
 0x19d   : > { %8574 = vmatprep.subr.bf16.mxu0 %v9823_v55  ;;  %v11219_v42 = vadd.f32 %v8386_v5, %v8385_v33  ;;  %v11221_v55 = vadd.f32 %v8253_v63, %v8252_v61  ;;  %v8388_v48 = vpop.f32.mrb[56].mxu1  ;;  %v8256_v38 = vpop.f32.mrb[59].mxu0 }
 0x19e   : > { %v8389_v6 = vpop.f32.mrb[57].mxu1 }
 0x19f   : > { %12869 = vst [vmem:[#allocation18_spill] sm:$0xff] %v11219_v42  ;;  %12870 = vst [vmem:[#allocation19_spill] sm:$0xff] %v11221_v55  ;;  %v11225_v20 = vadd.f32 %v8389_v6, %v8388_v48  ;;  %v8391_v44 = vpop.f32.mrb[58].mxu1 }
 0x1a0   : > { %8575 = vmatpush3.bf16.msra.mxu0 %v9824_v50  ;;  %v11223_v50 = vadd.f32 %v8256_v38, %v8255_v27  ;;  %v8392_v21 = vpop.f32.mrb[59].mxu1 }
 0x1a1   : > { %v11227_v49 = vadd.f32 %v8392_v21, %v8391_v44 }
 0x1a2   : > { %12871 = vst [vmem:[#allocation20_spill] sm:$0xff] %v11223_v50  ;;  %v8258_v57 = vpop.f32.mrb[60].mxu0 }
 0x1a3   : > { %12872 = vst [vmem:[#allocation21_spill] sm:$0xff] %v11227_v49  ;;  %v8259_v33 = vpop.f32.mrb[61].mxu0 }
 0x1a4   : > { %v11229_v5 = vadd.f32 %v8259_v33, %v8258_v57  ;;  %v8261_v63 = vpop.f32.mrb[62].mxu0  ;;  %v8394_v61 = vpop.f32.mrb[60].mxu1 }
 0x1a5   : > { %v8262_v55 = vpop.f32.mrb[63].mxu0  ;;  %v8395_v42 = vpop.f32.mrb[61].mxu1 }
 0x1a6   : > { %v11231_v26 = vadd.f32 %v8262_v55, %v8261_v63  ;;  %v11233_v27 = vadd.f32 %v8395_v42, %v8394_v61  ;;  %v8397_v6 = vpop.f32.mrb[62].mxu1 }
 0x1a7   : > { %v8398_v48 = vpop.f32.mrb[63].mxu1 }
 0x1a8   : > { %v11235_v38 = vadd.f32 %v8398_v48, %v8397_v6 }
 0x1aa   : > { %v8986_v50 = vpop.f32.mrb[64].mxu0 }
 0x1ab   : > { %v1669_v44 = vadd.f32 %v8986_v50, %v11005_v11  ;;  %v1660_v19 = vpop.f32.mrb[65].mxu0 }
 0x1ac   : > { %v1661_v21 = vadd.f32 %v10974_v40, %v1660_v19  ;;  %v8987_v57 = vpop.f32.mrb[66].mxu0 }
 0x1ad   : > { %v11240_v33 = vadd.f32 %v11017_v59, %v1669_v44  ;;  %v1672_v49 = vadd.f32 %v8987_v57, %v11019_v32  ;;  %v1663_v55 = vpop.f32.mrb[67].mxu0 }
 0x1ae   : > { %v11244_v42 = vadd.f32 %v10986_v45, %v1661_v21  ;;  %v1664_v63 = vadd.f32 %v10988_v39, %v1663_v55 }
 0x1af   : > { %v11248_v61 = vadd.f32 %v11029_v62, %v1672_v49 }
 0x1b0   : > { %v11251_v11 = vadd.f32 %v10998_v4, %v1664_v63 }
 0x1b2   : > { %v8990_v50 = vpop.f32.mrb[68].mxu0 }
 0x1b3   : > { %v1685_v40 = vadd.f32 %v8990_v50, %v11067_v24  ;;  %v1676_v6 = vpop.f32.mrb[69].mxu0 }
 0x1b4   : > { %v1677_v59 = vadd.f32 %v11036_v47, %v1676_v6  ;;  %v8991_v48 = vpop.f32.mrb[70].mxu0 }
 0x1b5   : > { %v11256_v32 = vadd.f32 %v11079_v14, %v1685_v40  ;;  %v1688_v45 = vadd.f32 %v8991_v48, %v11081_v16  ;;  %v1679_v44 = vpop.f32.mrb[71].mxu0 }
 0x1b6   : > { %v11260_v39 = vadd.f32 %v11048_v10, %v1677_v59  ;;  %v1680_v62 = vadd.f32 %v11050_v35, %v1679_v44 }
 0x1b7   : > { %v11264_v4 = vadd.f32 %v11085_v37, %v1688_v45 }
 0x1b8   : > { %v11267_v24 = vadd.f32 %v11060_v7, %v1680_v62 }
 0x1ba   : > { %v8994_v49 = vpop.f32.mrb[72].mxu0 }
 0x1bb   : > { %v1701_v47 = vadd.f32 %v8994_v49, %v11104_v60  ;;  %v1692_v19 = vpop.f32.mrb[73].mxu0 }
 0x1bc   : > { %v1693_v14 = vadd.f32 %v11090_v28, %v1692_v19  ;;  %v8995_v21 = vpop.f32.mrb[74].mxu0 }
 0x1bd   : > { %v11272_v16 = vadd.f32 %v11109_v3, %v1701_v47  ;;  %v1704_v10 = vadd.f32 %v8995_v21, %v11111_v25  ;;  %v1695_v57 = vpop.f32.mrb[75].mxu0  ;;  %v12875_v21 = vld [vmem:[#allocation10_spill] sm:$0xff] }
 0x1be   : > { %v11276_v35 = vadd.f32 %v11096_v13, %v1693_v14  ;;  %v1696_v37 = vadd.f32 %v11098_v53, %v1695_v57  ;;  %v12876_v57 = vld [vmem:[#allocation16_spill] sm:$0xff] }
 0x1bf   : > { %v11280_v7 = vadd.f32 %v11114_v46, %v1704_v10 }
 0x1c0   : > { %v11283_v60 = vadd.f32 %v11101_v12, %v1696_v37 }
 0x1c2   : > { %v8998_v55 = vpop.f32.mrb[76].mxu0 }
 0x1c3   : > { %v1717_v28 = vadd.f32 %v8998_v55, %v11130_v54  ;;  %v1708_v63 = vpop.f32.mrb[77].mxu0 }
 0x1c4   : > { %v1709_v3 = vadd.f32 %v11117_v41, %v1708_v63  ;;  %v8999_v50 = vpop.f32.mrb[78].mxu0 }
 0x1c5   : > { %v11288_v25 = vadd.f32 %v11135_v58, %v1717_v28  ;;  %v1720_v13 = vadd.f32 %v8999_v50, %v11137_v1  ;;  %v1711_v40 = vpop.f32.mrb[79].mxu0 }
 0x1c6   : > { %v11292_v53 = vadd.f32 %v11122_v18, %v1709_v3  ;;  %v1712_v46 = vadd.f32 %v11124_v52, %v1711_v40  ;;  %v12881_v40 = vld [vmem:[#allocation13_spill] sm:$0xff] }
 0x1c7   : > { %v11296_v12 = vadd.f32 %v11140_v51, %v1720_v13 }
 0x1c8   : > { %v11299_v54 = vadd.f32 %v11127_v23, %v1712_v46 }
 0x1ca   : > { %v9002_v6 = vpop.f32.mrb[80].mxu0 }
 0x1cb   : > { %v1733_v41 = vadd.f32 %v9002_v6, %v11156_v8  ;;  %v1724_v59 = vpop.f32.mrb[81].mxu0  ;;  %v12882_v6 = vld [vmem:[#allocation18_spill] sm:$0xff] }
 0x1cc   : > { %v1725_v58 = vadd.f32 %v11143_v15, %v1724_v59  ;;  %v9003_v48 = vpop.f32.mrb[82].mxu0  ;;  %v12884_v59 = vld [vmem:[#allocation15_spill] sm:$0xff] }
 0x1cd   : > { %v11304_v1 = vadd.f32 %v11169_v9, %v1733_v41  ;;  %v1736_v18 = vadd.f32 %v9003_v48, %v11167_v34  ;;  %v1727_v45 = vpop.f32.mrb[83].mxu0  ;;  %v12873_v9 = vld [vmem:[#allocation9_spill] sm:$0xff] }
 0x1ce   : > { %v11308_v52 = vadd.f32 %v11150_v17, %v1725_v58  ;;  %v1728_v51 = vadd.f32 %v11148_v22, %v1727_v45 }
 0x1cf   : > { %v11312_v23 = vadd.f32 %v11173_v0, %v1736_v18 }
 0x1d0   : > { %v11315_v8 = vadd.f32 %v11153_v30, %v1728_v51  ;;  %v12874_v30 = vld [vmem:[#allocation11_spill] sm:$0xff] }
 0x1d2   : > { %v9006_v44 = vpop.f32.mrb[84].mxu0 }
 0x1d3   : > { %v1749_v15 = vadd.f32 %v9006_v44, %v11194_v29  ;;  %v1740_v62 = vpop.f32.mrb[85].mxu0 }
 0x1d4   : > { %v1741_v49 = vadd.f32 %v12873_v9, %v1740_v62  ;;  %v9007_v47 = vpop.f32.mrb[86].mxu0 }
 0x1d5   : > { %v11320_v34 = vadd.f32 %v11199_v31, %v1749_v15  ;;  %v1752_v17 = vadd.f32 %v9007_v47, %v11197_v36  ;;  %v1743_v19 = vpop.f32.mrb[87].mxu0  ;;  %v12877_v31 = vld [vmem:[#allocation12_spill] sm:$0xff] }
 0x1d6   : > { %v11324_v22 = vadd.f32 %v11189_v2, %v1741_v49  ;;  %v1744_v0 = vadd.f32 %v11187_v43, %v1743_v19  ;;  %v12879_v2 = vld [vmem:[#allocation17_spill] sm:$0xff]  ;;  %v12880_v43 = vld [vmem:[#allocation14_spill] sm:$0xff]  ;;  %v12889_v47 = vld [vmem:[#allocation20_spill] sm:$0xff] }
 0x1d7   : > { %v11328_v14 = vadd.f32 %v12874_v30, %v1752_v17 }
 0x1d8   : > { %v11331_v29 = vadd.f32 %v12875_v21, %v1744_v0  ;;  %v12891_v0 = vld [vmem:[#allocation21_spill] sm:$0xff] }
 0x1da   : > { %v9010_v10 = vpop.f32.mrb[88].mxu0 }
 0x1db   : > { %v1765_v37 = vadd.f32 %v9010_v10, %v12876_v57  ;;  %v1756_v55 = vpop.f32.mrb[89].mxu0 }
 0x1dc   : > { %v1757_v28 = vadd.f32 %v12877_v31, %v1756_v55  ;;  %v9011_v63 = vpop.f32.mrb[90].mxu0 }
 0x1dd   : > { %v11336_v36 = vadd.f32 %v11217_v56, %v1765_v37  ;;  %v1768_v3 = vadd.f32 %v9011_v63, %v12879_v2  ;;  %v1759_v50 = vpop.f32.mrb[91].mxu0  ;;  %v12886_v56 = vld [vmem:[#allocation19_spill] sm:$0xff]  ;;  %v11371_v63 = vld [vmem:[#allocation3 + $0x80] sm:$0xff]  }
 0x1de   : > { %v11340_v13 = vadd.f32 %v12880_v43, %v1757_v28  ;;  %v1760_v46 = vadd.f32 %v12881_v40, %v1759_v50  ;;  %v11369_v28 = vld [vmem:[%s12844_s2] ss:$0 sm:$0xff]  ;;  %9160 = vmatprep.subr.bf16.mxu1 %v11371_v63 }
 0x1df   : > { %12878 = vst [vmem:[#allocation9_spill] sm:$0xff] %v11336_v36  ;;  %v11344_v41 = vadd.f32 %v12882_v6, %v1768_v3  ;;  %v11377_v50 = vld [vmem:[%s12845_s3] ss:$0 sm:$0xff] }
 0x1e0   : > { %v11347_v58 = vadd.f32 %v12884_v59, %v1760_v46 }
 0x1e1   : > { %12883 = vst [vmem:[#allocation11_spill] sm:$0xff] %v11344_v41 }
 0x1e2   : > { %12885 = vst [vmem:[#allocation10_spill] sm:$0xff] %v11347_v58  ;;  %v9014_v48 = vpop.f32.mrb[92].mxu0 }
 0x1e3   : > { %v1781_v18 = vadd.f32 %v9014_v48, %v11229_v5  ;;  %v1772_v45 = vpop.f32.mrb[93].mxu0 }
 0x1e4   : > { %v1773_v51 = vadd.f32 %v12886_v56, %v1772_v45  ;;  %v9015_v44 = vpop.f32.mrb[94].mxu0 }
 0x1e5   : > { %v11352_v15 = vadd.f32 %v11233_v27, %v1781_v18  ;;  %v1784_v62 = vadd.f32 %v9015_v44, %v11231_v26  ;;  %v1775_v9 = vpop.f32.mrb[95].mxu0 }
 0x1e6   : > { %v11356_v49 = vadd.f32 %v11225_v20, %v1773_v51  ;;  %v1776_v17 = vadd.f32 %v12889_v47, %v1775_v9 }
 0x1e7   : > { %12887 = vst [vmem:[#allocation16_spill] sm:$0xff] %v11352_v15  ;;  %v11360_v19 = vadd.f32 %v11235_v38, %v1784_v62 }
 0x1e8   : > { %12888 = vst [vmem:[#allocation12_spill] sm:$0xff] %v11356_v49  ;;  %v11363_v5 = vadd.f32 %v12891_v0, %v1776_v17 }
 0x1e9   : > { %12890 = vst [vmem:[#allocation17_spill] sm:$0xff] %v11360_v19 }
 0x1ea   : > { %12892 = vst [vmem:[#allocation14_spill] sm:$0xff] %v11363_v5  ;;  %v8440_v30 = vpop.f32.mrb[96].mxu0 }
 0x1eb   : > { %v8441_v21 = vpop.f32.mrb[97].mxu0 }
 0x1ec   : > { %v8442_v10 = vadd.f32 %v8441_v21, %v8440_v30  ;;  %v9082_v57 = vpop.f32.mrb[64].mxu1  ;;  %v8443_v27 = vpop.f32.mrb[98].mxu0 }
 0x1ed   : > { %v3106_v37 = vpop.f32.mrb[65].mxu1  ;;  %v8444_v55 = vpop.f32.mrb[99].mxu0 }
 0x1ee   : > { %v9262_v26 = vadd.f32 %v8442_v10, %v11244_v42  ;;  %v8445_v31 = vadd.f32 %v8444_v55, %v8443_v27  ;;  %v9083_v20 = vpop.f32.mrb[66].mxu1 }
 0x1ef   : > { %v3109_v38 = vpop.f32.mrb[67].mxu1 }
 0x1f0   : > { %v9263_v2 = vadd.f32 %v9262_v26, %v3106_v37  ;;  %v9270_v3 = vadd.f32 %v8445_v31, %v11251_v11 }
 0x1f2   : > { %v3272_v42 = vmul.f32 %v9263_v2, %v11369_v28  ;;  %v9271_v43 = vadd.f32 %v9270_v3, %v3109_v38  ;;  %v8446_v40 = vpop.f32.mrb[100].mxu0 }
 0x1f3   : > { %v8447_v46 = vpop.f32.mrb[101].mxu0 }
 0x1f4   : > { %v3311_v6 = vadd.f32 %v11377_v50, %v3272_v42  ;;  %v3273_v59 = vmul.f32 %v9271_v43, %v11369_v28  ;;  %v8448_v48 = vadd.f32 %v8447_v46, %v8446_v40  ;;  %v11383_v18 = vpop.f32.mrb[68].mxu1  ;;  %v8449_v11 = vpop.f32.mrb[102].mxu0  ;;  %v3852_v40 = vld [vmem:[#allocation2 + $0xc] sm:$0xf] }
 0x1f5   : > { %v3122_v45 = vpop.f32.mrb[69].mxu1  ;;  %v8450_v56 = vpop.f32.mrb[103].mxu0 }
 0x1f6   : > { %v3343_v51 = vmax.f32 %v3311_v6, 0.0  ;;  %v3312_v44 = vadd.f32 %v11377_v50, %v3273_v59  ;;  %v9258_v62 = vadd.f32 %v8448_v48, %v11240_v33  ;;  %v8451_v9 = vadd.f32 %v8450_v56, %v8449_v11  ;;  %v11387_v47 = vpop.f32.mrb[70].mxu1 }
 0x1f7   : > { %v3125_v17 = vpop.f32.mrb[71].mxu1 }
 0x1f8   : > { %v8079_v0 = vpack.c.bf16 %v3343_v51, %v3343_v51  ;;  %v3344_v30 = vmax.f32 %v3312_v44, 0.0  ;;  %v9259_v21 = vadd.f32 %v9258_v62, %v9082_v57  ;;  %v9266_v10 = vadd.f32 %v8451_v9, %v11248_v61 }
 0x1fa   : > { %v3529_v27 = vshrl.u32 %v8079_v0, 16  ;;  %v8080_v37 = vpack.c.bf16 %v3344_v30, %v3344_v30  ;;  %v3274_v55 = vmul.f32 %v9259_v21, %v11369_v28  ;;  %v8452_v26 = vpop.f32.mrb[104].mxu0  ;;  %v9267_v33 = vadd.f32 %v9266_v10, %v9083_v20  ;;  %v3858_v30 = vld [vmem:[#allocation2 + $0x14] sm:$0x1] }
 0x1fb   : > { %v8453_v31 = vpop.f32.mrb[105].mxu0  ;;  %v3532_v2 = vshll.u32 %v8079_v0, 16  ;;  %v9879_v0 = vld [vmem:[#allocation2 + $0x8] ss:$0 sps:$4 sm:$0x11]  }
 0x1fc   : > { %v3531_v38 = vrot.slane %v3529_v27, 7  ;;  %v3537_v3 = vshrl.u32 %v8080_v37, 16  ;;  %v3313_v42 = vadd.f32 %v11377_v50, %v3274_v55  ;;  %v11392_v57 = vpop.f32.mrb[72].mxu1  ;;  %v8455_v61 = vpop.f32.mrb[106].mxu0  ;;  %v3275_v46 = vmul.f32 %v9267_v33, %v11369_v28 }
 0x1fd   : > { %v8454_v6 = vadd.f32 %v8453_v31, %v8452_v26  ;;  %v11401_v20 = vpop.f32.mrb[73].mxu1  ;;  %v8456_v59 = vpop.f32.mrb[107].mxu0  ;;  %v3540_v51 = vshll.u32 %v8080_v37, 16 }
 0x1fe   : > { %v3534_v48 = vor.u32 %v3532_v2, %v3531_v38  ;;  %v3539_v56 = vrot.slane %v3537_v3, 7  ;;  %v3345_v44 = vmax.f32 %v3313_v42, 0.0  ;;  %v11409_v62 = vpop.f32.mrb[74].mxu1  ;;  %v3535_v9 = vrot.slane %v3531_v38, 4 }
 0x1ff   : > { %v3314_v21 = vadd.f32 %v11377_v50, %v3275_v46  ;;  %v9278_v10 = vadd.f32 %v8454_v6, %v11260_v39  ;;  %v8457_v27 = vadd.f32 %v8456_v59, %v8455_v61  ;;  %v11419_v55 = vpop.f32.mrb[75].mxu1 }
 0x200   : > { %v3853_v37 = vsel %vm11396_vm7, %v3534_v48, %v3852_v40  ;;  %v3542_v26 = vor.u32 %v3540_v51, %v3539_v56  ;;  %v3544_v33 = vrot.slane %v3539_v56, 4  ;;  %v8081_v31 = vpack.c.bf16 %v3345_v44, %v3345_v44 }
 0x201   : > { %3854 = vst [vmem:[#allocation2 + $0xc] sm:$0xf] %v3853_v37  ;;  %v3346_v38 = vmax.f32 %v3314_v21, 0.0  ;;  %v9279_v2 = vadd.f32 %v9278_v10, %v3122_v45  ;;  %v9286_v3 = vadd.f32 %v8457_v27, %v11267_v24  ;;  %v3861_v21 = vld [vmem:[#allocation2 + $0x18] sm:$0xf] }
 0x202   : > { %v3543_v42 = vsel %vm11405_vm8, %v3535_v9, %v3542_v26  ;;  %v3859_v39 = vsel %vm11413_vm9, %v3544_v33, %v3858_v30  ;;  %v3546_v61 = vshrl.u32 %v8081_v31, 16  ;;  %v8458_v46 = vpop.f32.mrb[108].mxu0  ;;  %v3549_v51 = vshll.u32 %v8081_v31, 16 }
 0x203   : > { %3855 = vst [vmem:[#allocation2 + $0x10] sm:$0xf] %v3543_v42  ;;  %3860 = vst [vmem:[#allocation2 + $0x14] sm:$0x1] %v3859_v39  ;;  %v8082_v6 = vpack.c.bf16 %v3346_v38, %v3346_v38  ;;  %v3276_v40 = vmul.f32 %v9279_v2, %v11369_v28  ;;  %v9287_v59 = vadd.f32 %v9286_v3, %v3125_v17  ;;  %v8459_v48 = vpop.f32.mrb[109].mxu0 }
 0x204   : > { %v3548_v56 = vrot.slane %v3546_v61, 7  ;;  %v8460_v45 = vadd.f32 %v8459_v48, %v8458_v46  ;;  %v11429_v44 = vpop.f32.mrb[76].mxu1  ;;  %v8461_v24 = vpop.f32.mrb[110].mxu0  ;;  %v3865_v3 = vld [vmem:[#allocation2 + $0x20] sm:$0x1] }
 0x205   : > { %v3554_v9 = vshrl.u32 %v8082_v6, 16  ;;  %v3315_v10 = vadd.f32 %v11377_v50, %v3276_v40  ;;  %v3277_v30 = vmul.f32 %v9287_v59, %v11369_v28  ;;  %v11433_v27 = vpop.f32.mrb[77].mxu1  ;;  %v8462_v37 = vpop.f32.mrb[111].mxu0  ;;  %v3557_v2 = vshll.u32 %v8082_v6, 16 }
 0x206   : > { %v3551_v26 = vor.u32 %v3549_v51, %v3548_v56  ;;  %v9274_v33 = vadd.f32 %v8460_v45, %v11256_v32  ;;  %v8463_v17 = vadd.f32 %v8462_v37, %v8461_v24  ;;  %v11436_v38 = vpop.f32.mrb[78].mxu1  ;;  %v3552_v46 = vrot.slane %v3548_v56, 4 }
 0x207   : > { %v3556_v31 = vrot.slane %v3554_v9, 7  ;;  %v3347_v42 = vmax.f32 %v3315_v10, 0.0  ;;  %v3316_v39 = vadd.f32 %v11377_v50, %v3277_v30  ;;  %v11439_v61 = vpop.f32.mrb[79].mxu1 }
 0x208   : > { %v3862_v40 = vsel %vm11396_vm7, %v3551_v26, %v3861_v21  ;;  %v9275_v59 = vadd.f32 %v9274_v33, %v11383_v18  ;;  %v9282_v48 = vadd.f32 %v8463_v17, %v11264_v4  ;;  %v3868_v33 = vld [vmem:[#allocation2 + $0x24] sm:$0xf] }
 0x209   : > { %3863 = vst [vmem:[#allocation2 + $0x18] sm:$0xf] %v3862_v40  ;;  %v3559_v32 = vor.u32 %v3557_v2, %v3556_v31  ;;  %v3561_v51 = vrot.slane %v3556_v31, 4  ;;  %v8083_v45 = vpack.c.bf16 %v3347_v42, %v3347_v42  ;;  %v3348_v24 = vmax.f32 %v3316_v39, 0.0 }
 0x20a   : > { %v3278_v6 = vmul.f32 %v9275_v59, %v11369_v28  ;;  %v9283_v9 = vadd.f32 %v9282_v48, %v11387_v47  ;;  %v8464_v10 = vpop.f32.mrb[112].mxu0  ;;  %v11447_v30 = vld [vmem:[#allocation2 + $0xc] sm:$0xff]   ;;  %v11453_v26 = vld [vmem:[#allocation2 + $0x14] ss:$0 sps:$4 sm:$0x11]  }
 0x20b   : > { %v3560_v56 = vsel %vm11405_vm8, %v3552_v46, %v3559_v32  ;;  %v3866_v18 = vsel %vm11413_vm9, %v3561_v51, %v3865_v3  ;;  %v3563_v21 = vshrl.u32 %v8083_v45, 16  ;;  %v3566_v4 = vshll.u32 %v8083_v45, 16  ;;  %v8465_v37 = vpop.f32.mrb[113].mxu0 }
 0x20c   : > { %3864 = vst [vmem:[#allocation2 + $0x1c] sm:$0xf] %v3560_v56  ;;  %3867 = vst [vmem:[#allocation2 + $0x20] sm:$0x1] %v3866_v18  ;;  %v8084_v17 = vpack.c.bf16 %v3348_v24, %v3348_v24  ;;  %v3317_v47 = vadd.f32 %v11377_v50, %v3278_v6  ;;  %v3279_v31 = vmul.f32 %v9283_v9, %v11369_v28  ;;  %v11457_v42 = vpop.f32.mrb[80].mxu1  ;;  %v8467_v39 = vpop.f32.mrb[114].mxu0 }
 0x20d   : > { %v8466_v2 = vadd.f32 %v8465_v37, %v8464_v10  ;;  %v3565_v46 = vrot.slane %v3563_v21, 7  ;;  %v11459_v40 = vpop.f32.mrb[81].mxu1  ;;  %v8468_v3 = vpop.f32.mrb[115].mxu0  ;;  %v4878_v59 = vrot.slane %v11447_v30, 1  ;;  %v4879_v48 = vrot.slane %v11453_v26, 1  ;;  %v9855_v10 = vld [vmem:[#allocation3 + $0x40] sm:$0xff]  }
 0x20e   : > { %v4671_v32 = vshrl.u32 %v11447_v30, 16  ;;  %v3571_v51 = vshrl.u32 %v8084_v17, 16  ;;  %v3574_v45 = vshll.u32 %v8084_v17, 16  ;;  %v3349_v24 = vmax.f32 %v3317_v47, 0.0  ;;  %v11465_v9 = vpop.f32.mrb[82].mxu1  ;;  %8696 = vmatprep.subr.bf16.mxu0 %v9855_v10 }
 0x20f   : > { %v3318_v6 = vadd.f32 %v11377_v50, %v3279_v31  ;;  %v3568_v56 = vor.u32 %v3566_v4, %v3565_v46  ;;  %v3569_v18 = vrot.slane %v3565_v46, 4  ;;  %v3872_v21 = vld [vmem:[#allocation2 + $0x2c] sm:$0x1]  ;;  %v9294_v37 = vadd.f32 %v8466_v2, %v11276_v35  ;;  %v11468_v15 = vpop.f32.mrb[83].mxu1 }
 0x210   : > { %v8469_v19 = vadd.f32 %v8468_v3, %v8467_v39  ;;  %v3573_v5 = vrot.slane %v3571_v51, 7  ;;  %v8085_v49 = vpack.c.bf16 %v3349_v24, %v3349_v24  ;;  %v4880_v36 = vsel %vm694_vm1, %v4878_v59, %v4879_v48 }
 0x211   : > { %v3350_v41 = vmax.f32 %v3318_v6, 0.0  ;;  %v3869_v17 = vsel %vm11396_vm7, %v3568_v56, %v3868_v33  ;;  %v9295_v47 = vadd.f32 %v9294_v37, %v11401_v20  ;;  %9128 = vmatprep.mubr.bf16.mxu1 %v4880_v36  ;;  %v4673_v31 = vshll.u32 %v11447_v30, 16 }
 0x212   : > { %v9302_v4 = vadd.f32 %v8469_v19, %v11283_v60  ;;  %3870 = vst [vmem:[#allocation2 + $0x24] sm:$0xf] %v3869_v17  ;;  %v3576_v35 = vor.u32 %v3574_v45, %v3573_v5  ;;  %v3578_v2 = vrot.slane %v3573_v5, 4  ;;  %v3580_v39 = vshrl.u32 %v8085_v49, 16  ;;  %v8470_v3 = vpop.f32.mrb[116].mxu0 }
 0x213   : > { %v3583_v46 = vshll.u32 %v8085_v49, 16  ;;  %v8086_v51 = vpack.c.bf16 %v3350_v41, %v3350_v41  ;;  %v3280_v59 = vmul.f32 %v9295_v47, %v11369_v28  ;;  %v8471_v24 = vpop.f32.mrb[117].mxu0  ;;  %v4675_v33 = vrot.slane %v4673_v31, 1  ;;  %v11484_v49 = vld [vmem:[#allocation2 + $0x18] sm:$0xff]   ;;  %v3875_v41 = vld [vmem:[#allocation2 + $0x30] sm:$0xf] }
 0x214   : > { %v9303_v48 = vadd.f32 %v9302_v4, %v11419_v55  ;;  %v3577_v20 = vsel %vm11405_vm8, %v3569_v18, %v3576_v35  ;;  %v3873_v60 = vsel %vm11413_vm9, %v3578_v2, %v3872_v21  ;;  %v3582_v36 = vrot.slane %v3580_v39, 7  ;;  %v11482_v45 = vpop.f32.mrb[84].mxu1  ;;  %v8473_v5 = vpop.f32.mrb[118].mxu0  ;;  %v11493_v35 = vld [vmem:[#allocation2 + $0x20] ss:$0 sps:$4 sm:$0x11]  }
 0x215   : > { %v8472_v19 = vadd.f32 %v8471_v24, %v8470_v3  ;;  %3871 = vst [vmem:[#allocation2 + $0x28] sm:$0xf] %v3577_v20  ;;  %3874 = vst [vmem:[#allocation2 + $0x2c] sm:$0x1] %v3873_v60  ;;  %v3588_v6 = vshrl.u32 %v8086_v51, 16  ;;  %v3591_v55 = vshll.u32 %v8086_v51, 16  ;;  %v3319_v10 = vadd.f32 %v11377_v50, %v3280_v59 }
 0x216   : > { %v3281_v56 = vmul.f32 %v9303_v48, %v11369_v28  ;;  %v11488_v18 = vpop.f32.mrb[85].mxu1  ;;  %v8474_v37 = vpop.f32.mrb[119].mxu0  ;;  %v3585_v21 = vor.u32 %v3583_v46, %v3582_v36  ;;  %v3586_v17 = vrot.slane %v3582_v36, 4  ;;  %v4676_v4 = vor.u32 %v4675_v33, %v4671_v32  ;;  %v3879_v46 = vld [vmem:[#allocation2 + $0x38] sm:$0x1] }
 0x217   : > { %v9290_v47 = vadd.f32 %v8472_v19, %v11272_v16  ;;  %v11491_v31 = vpop.f32.mrb[86].mxu1  ;;  %v3590_v2 = vrot.slane %v3588_v6, 7  ;;  %v3351_v39 = vmax.f32 %v3319_v10, 0.0  ;;  %v4678_v51 = vshll.u32 %v11453_v26, 16 }
 0x218   : > { %v3320_v3 = vadd.f32 %v11377_v50, %v3281_v56  ;;  %v11497_v59 = vpop.f32.mrb[87].mxu1  ;;  %v3876_v48 = vsel %vm11396_vm7, %v3585_v21, %v3875_v41  ;;  %v8475_v16 = vadd.f32 %v8474_v37, %v8473_v5  ;;  %v4881_v32 = vrot.slane %v11484_v49, 1  ;;  %v11506_v41 = vld [vmem:[#allocation3 + $0x88] sm:$0xff]   ;;  %v9856_v21 = vld [vmem:[#allocation3] sm:$0xff]  }
 0x219   : > { %v9291_v24 = vadd.f32 %v9290_v47, %v11392_v57  ;;  %3877 = vst [vmem:[#allocation2 + $0x30] sm:$0xf] %v3876_v48  ;;  %v3593_v33 = vor.u32 %v3591_v55, %v3590_v2  ;;  %v3595_v20 = vrot.slane %v3590_v2, 4  ;;  %v8087_v60 = vpack.c.bf16 %v3351_v39, %v3351_v39  ;;  %v9860_v2 = vld [vmem:[#allocation3 + $0x48] sm:$0xff]  }
 0x21a   : > { %v3352_v36 = vmax.f32 %v3320_v3, 0.0  ;;  %v4680_v6 = vrot.slane %v4678_v51, 1  ;;  %v9298_v26 = vadd.f32 %v8475_v16, %v11280_v7  ;;  %v4882_v10 = vrot.slane %v11493_v35, 1  ;;  %v8476_v56 = vpop.f32.mrb[120].mxu0 }
 0x21b   : > { %v3282_v19 = vmul.f32 %v9291_v24, %v11369_v28  ;;  %v3594_v57 = vsel %vm11405_vm8, %v3586_v17, %v3593_v33  ;;  %v3880_v5 = vsel %vm11413_vm9, %v3595_v20, %v3879_v46  ;;  %v3597_v55 = vshrl.u32 %v8087_v60, 16  ;;  %v8477_v47 = vpop.f32.mrb[121].mxu0 }
 0x21c   : > { %v3600_v37 = vshll.u32 %v8087_v60, 16  ;;  %3878 = vst [vmem:[#allocation2 + $0x34] sm:$0xf] %v3594_v57  ;;  %3881 = vst [vmem:[#allocation2 + $0x38] sm:$0x1] %v3880_v5  ;;  %v8088_v39 = vpack.c.bf16 %v3352_v36, %v3352_v36  ;;  %v4681_v3 = vsel %vm485_vm0, %v4676_v4, %v4680_v6  ;;  %v9299_v51 = vadd.f32 %v9298_v26, %v11409_v62  ;;  %v11515_v48 = vpop.f32.mrb[88].mxu1 }
 0x21d   : > { %v3321_v7 = vadd.f32 %v11377_v50, %v3282_v19  ;;  %12899 = vst [vmem:[#allocation13_spill] sm:$0xff] %v11515_v48  ;;  %v8479_v24 = vpop.f32.mrb[122].mxu0  ;;  %v3599_v17 = vrot.slane %v3597_v55, 7  ;;  %5167 = vmatprep.mubr.bf16.mxu0 %v4681_v3  ;;  %v4883_v46 = vsel %vm694_vm1, %v4881_v32, %v4882_v10  ;;  %v8478_v16 = vadd.f32 %v8477_v47, %v8476_v56  ;;  %v11518_v33 = vpop.f32.mrb[89].mxu1  ;;  %v3882_v36 = vld [vmem:[#allocation2 + $0x3c] sm:$0xf] }
 0x21e   : > { %v4683_v20 = vshrl.u32 %v11484_v49, 16  ;;  %v8480_v60 = vpop.f32.mrb[123].mxu0  ;;  %v3605_v57 = vshrl.u32 %v8088_v39, 16  ;;  %v3608_v19 = vshll.u32 %v8088_v39, 16  ;;  %v3283_v4 = vmul.f32 %v9299_v51, %v11369_v28  ;;  %5168 = vmatmul.mubr.bf16.vlgmr.msra.gmra.mrb[160].mxu0 %v11447_v30  ;;  %9129 = vmatmul.mubr.bf16.vlgmr.msra.gmra.mrb[96].mxu1 %v4883_v46  ;;  %v11523_v62 = vpop.f32.mrb[90].mxu1  ;;  %v9848_v47 = vld [vmem:[#allocation3 + $0x90] sm:$0xff]  }
 0x21f   : > { %v3353_v5 = vmax.f32 %v3321_v7, 0.0  ;;  %12900 = vst [vmem:[#allocation18_spill] sm:$0xff] %v11523_v62  ;;  %v3602_v6 = vor.u32 %v3600_v37, %v3599_v17  ;;  %v3603_v26 = vrot.slane %v3599_v17, 4  ;;  %v3886_v32 = vld [vmem:[#allocation2 + $0x44] sm:$0x1]  ;;  %v9310_v10 = vadd.f32 %v8478_v16, %v11292_v53  ;;  %v11527_v55 = vpop.f32.mrb[91].mxu1  ;;  %9161 = vmatpush3.bf16.msra.mxu1 %v11371_v63  ;;  %8697 = vmatpush3.bf16.msra.mxu0 %v9856_v21 }
 0x220   : > { %v4685_v56 = vshll.u32 %v11484_v49, 16  ;;  %12901 = vst [vmem:[#allocation15_spill] sm:$0xff] %v11527_v55  ;;  %v9861_v39 = vld [vmem:[#allocation3 + $0x8] sm:$0xff]   ;;  %v9862_v7 = vld [vmem:[#allocation3 + $0x50] sm:$0xff]   ;;  %v3607_v3 = vrot.slane %v3605_v57, 7  ;;  %v3322_v51 = vadd.f32 %v11377_v50, %v3283_v4  ;;  %v4690_v37 = vshll.u32 %v11493_v35, 16  ;;  %9162 = vmatprep.subr.bf16.mxu1 %v11506_v41  ;;  %8698 = vmatprep.subr.bf16.mxu0 %v9860_v2 }
 0x221   : > { %v8089_v30 = vpack.c.bf16 %v3353_v5, %v3353_v5  ;;  %v3883_v53 = vsel %vm11396_vm7, %v3602_v6, %v3882_v36  ;;  %v9311_v17 = vadd.f32 %v9310_v10, %v11433_v27  ;;  %v8481_v63 = vadd.f32 %v8480_v60, %v8479_v24  ;;  %v11536_v16 = vld [vmem:[#allocation2 + $0x24] sm:$0xff]   ;;  %v11538_v21 = vld [vmem:[#allocation2 + $0x2c] ss:$0 sps:$4 sm:$0x11]   ;;  %v11542_v27 = vld [vmem:[#allocation3 + $0x98] sm:$0xff]  }
 0x222   : > { %v4687_v46 = vrot.slane %v4685_v56, 1  ;;  %3884 = vst [vmem:[#allocation2 + $0x3c] sm:$0xf] %v3883_v53  ;;  %v3610_v57 = vor.u32 %v3608_v19, %v3607_v3  ;;  %v3612_v5 = vrot.slane %v3607_v3, 4  ;;  %v8482_v35 = vpop.f32.mrb[124].mxu0  ;;  %v3354_v48 = vmax.f32 %v3322_v51, 0.0 }
 0x223   : > { %v3614_v4 = vshrl.u32 %v8089_v30, 16  ;;  %v3617_v62 = vshll.u32 %v8089_v30, 16  ;;  %v3284_v2 = vmul.f32 %v9311_v17, %v11369_v28  ;;  %v4692_v58 = vrot.slane %v4690_v37, 1  ;;  %v8483_v36 = vpop.f32.mrb[125].mxu0  ;;  %9163 = vmatpush3.bf16.msra.mxu1 %v11506_v41  ;;  %8699 = vmatpush3.bf16.msra.mxu0 %v9861_v39  ;;  %v9863_v56 = vld [vmem:[#allocation3 + $0x10] sm:$0xff]  }
 0x224   : > { %v4688_v55 = vor.u32 %v4687_v46, %v4683_v20  ;;  %v3611_v24 = vsel %vm11405_vm8, %v3603_v26, %v3610_v57  ;;  %v3887_v60 = vsel %vm11413_vm9, %v3612_v5, %v3886_v32  ;;  %v9318_v6 = vadd.f32 %v8481_v63, %v11299_v54  ;;  %v11551_v10 = vpop.f32.mrb[92].mxu1  ;;  %v8485_v20 = vpop.f32.mrb[126].mxu0  ;;  %9164 = vmatprep.subr.bf16.mxu1 %v9848_v47  ;;  %v3889_v41 = vld [vmem:[#allocation2 + $0x48] sm:$0xf]  ;;  %v9867_v54 = vld [vmem:[#allocation3 + $0x58] sm:$0xff]  }
 0x225   : > { %v11548_v19 = vrot.slane %v3614_v4, 7  ;;  %8700 = vmatprep.subr.bf16.mxu0 %v9862_v7  ;;  %3885 = vst [vmem:[#allocation2 + $0x40] sm:$0xf] %v3611_v24  ;;  %3888 = vst [vmem:[#allocation2 + $0x44] sm:$0x1] %v3887_v60  ;;  %v8090_v39 = vpack.c.bf16 %v3354_v48, %v3354_v48  ;;  %v3323_v3 = vadd.f32 %v11377_v50, %v3284_v2  ;;  %v4884_v32 = vrot.slane %v11536_v16, 1 }
 0x226   : > { %v4693_v26 = vsel %vm485_vm0, %v4688_v55, %v4692_v58  ;;  %v11556_v30 = vpop.f32.mrb[93].mxu1  ;;  %v8486_v51 = vpop.f32.mrb[127].mxu0  ;;  %v9319_v7 = vadd.f32 %v9318_v6, %v11439_v61  ;;  %v4885_v17 = vrot.slane %v11538_v21, 1  ;;  %v11564_v46 = vld [vmem:[#allocation2 + $0x30] sm:$0xff]   ;;  %v8484_v57 = vadd.f32 %v8483_v36, %v8482_v35 }
 0x227   : > { %v3619_v37 = vor.u32 %v3617_v62, %v11548_v19  ;;  %v3620_v53 = vrot.slane %v11548_v19, 4  ;;  %5175 = vmatprep.mubr.bf16.mxu0 %v4693_v26  ;;  %v11562_v48 = vpop.f32.mrb[94].mxu1  ;;  %v3622_v58 = vshrl.u32 %v8090_v39, 16  ;;  %v3625_v55 = vshll.u32 %v8090_v39, 16  ;;  %9165 = vmatpush3.bf16.msra.mxu1 %v9848_v47  ;;  %v9854_v62 = vld [vmem:[#allocation3 + $0xa0] sm:$0xff]   ;;  %v9868_v19 = vld [vmem:[#allocation3 + $0x18] sm:$0xff]  }
 0x228   : > { %v3355_v63 = vmax.f32 %v3323_v3, 0.0  ;;  %5176 = vmatmul.mubr.bf16.gmra.mrb[164].mxu0 %v11484_v49  ;;  %v11567_v5 = vpop.f32.mrb[95].mxu1  ;;  %v3893_v61 = vld [vmem:[#allocation2 + $0x50] sm:$0x1]  ;;  %v3285_v2 = vmul.f32 %v9319_v7, %v11369_v28  ;;  %v4886_v24 = vsel %vm694_vm1, %v4884_v32, %v4885_v17  ;;  %v4695_v60 = vshrl.u32 %v11536_v16, 16  ;;  %9166 = vmatprep.subr.bf16.mxu1 %v11542_v27  ;;  %v9869_v49 = vld [vmem:[#allocation3 + $0x60] sm:$0xff]  }
 0x229   : > { %v3890_v4 = vsel %vm11396_vm7, %v3619_v37, %v3889_v41  ;;  %8701 = vmatpush3.bf16.msra.mxu0 %v9863_v56  ;;  %v3624_v35 = vrot.slane %v3622_v58, 7  ;;  %9132 = vmatprep.mubr.bf16.mxu1 %v4886_v24  ;;  %v9306_v47 = vadd.f32 %v8484_v57, %v11288_v25  ;;  %v4697_v6 = vshll.u32 %v11536_v16, 16  ;;  %v11579_v26 = vld [vmem:[#allocation2 + $0x38] ss:$0 sps:$4 sm:$0x11]   ;;  %v11582_v37 = vld [vmem:[#allocation3 + $0xa8] sm:$0xff]  }
 0x22a   : > { %3891 = vst [vmem:[#allocation2 + $0x48] sm:$0xf] %v3890_v4  ;;  %v8091_v36 = vpack.c.bf16 %v3355_v63, %v3355_v63  ;;  %8702 = vmatprep.subr.bf16.mxu0 %v9867_v54  ;;  %v3324_v41 = vadd.f32 %v11377_v50, %v3285_v2  ;;  %v4702_v39 = vshll.u32 %v11538_v21, 16  ;;  %v8487_v3 = vadd.f32 %v8486_v51, %v8485_v20  ;;  %v8488_v32 = vpop.f32.mrb[128].mxu0  ;;  %v9870_v7 = vld [vmem:[#allocation3 + $0x20] sm:$0xff]  }
 0x22b   : > { %v4887_v56 = vrot.slane %v11564_v46, 1  ;;  %v3627_v17 = vor.u32 %v3625_v55, %v3624_v35  ;;  %v3629_v58 = vrot.slane %v3624_v35, 4  ;;  %v8489_v57 = vpop.f32.mrb[129].mxu0  ;;  %9167 = vmatpush3.bf16.msra.mxu1 %v11542_v27  ;;  %v9307_v4 = vadd.f32 %v9306_v47, %v11429_v44  ;;  %v3896_v44 = vld [vmem:[#allocation2 + $0x54] sm:$0xf] }
 0x22c   : > { %v3631_v63 = vshrl.u32 %v8091_v36, 16  ;;  %v3634_v25 = vshll.u32 %v8091_v36, 16  ;;  %v3356_v54 = vmax.f32 %v3324_v41, 0.0  ;;  %v4699_v21 = vrot.slane %v4697_v6, 1  ;;  %v8491_v51 = vpop.f32.mrb[130].mxu0  ;;  %9168 = vmatprep.subr.bf16.mxu1 %v9854_v62  ;;  %v11595_v41 = vld [vmem:[#allocation3 + $0xb0] sm:$0xff]  }
 0x22d   : > { %v4704_v20 = vrot.slane %v4702_v39, 1  ;;  %8703 = vmatpush3.bf16.msra.mxu0 %v9868_v19  ;;  %v3628_v2 = vsel %vm11405_vm8, %v3620_v53, %v3627_v17  ;;  %v3894_v55 = vsel %vm11413_vm9, %v3629_v58, %v3893_v61  ;;  %v9314_v35 = vadd.f32 %v8487_v3, %v11296_v12  ;;  %v8492_v36 = vpop.f32.mrb[131].mxu0  ;;  %v9875_v3 = vld [vmem:[#allocation3 + $0x28] sm:$0xff]   ;;  %v9876_v17 = vld [vmem:[#allocation3 + $0x70] sm:$0xff]  }
 0x22e   : > { %v11590_v24 = vrot.slane %v3631_v63, 7  ;;  %8704 = vmatprep.subr.bf16.mxu0 %v9869_v49  ;;  %3892 = vst [vmem:[#allocation2 + $0x4c] sm:$0xf] %v3628_v2  ;;  %3895 = vst [vmem:[#allocation2 + $0x50] sm:$0x1] %v3894_v55  ;;  %v8092_v27 = vpack.c.bf16 %v3356_v54, %v3356_v54  ;;  %v3286_v47 = vmul.f32 %v9307_v4, %v11369_v28  ;;  %v4888_v19 = vrot.slane %v11579_v26, 1 }
 0x22f   : > { %v4700_v6 = vor.u32 %v4699_v21, %v4695_v60  ;;  %v9315_v39 = vadd.f32 %v9314_v35, %v11436_v38  ;;  %v8490_v12 = vadd.f32 %v8489_v57, %v8488_v32  ;;  %9169 = vmatpush3.bf16.msra.mxu1 %v9854_v62  ;;  %v9874_v49 = vld [vmem:[#allocation3 + $0x68] sm:$0xff]   ;;  %v3900_v4 = vld [vmem:[#allocation2 + $0x5c] sm:$0x1]  ;;  %v11611_v55 = vld [vmem:[#allocation3 + $0xb8] sm:$0xff]  }
 0x230   : > { %v3636_v53 = vor.u32 %v3634_v25, %v11590_v24  ;;  %v3637_v61 = vrot.slane %v11590_v24, 4  ;;  %v3639_v58 = vshrl.u32 %v8092_v27, 16  ;;  %v3642_v63 = vshll.u32 %v8092_v27, 16  ;;  %9170 = vmatprep.subr.bf16.mxu1 %v11582_v37 }
 0x231   : > { %v3325_v54 = vadd.f32 %v11377_v50, %v3286_v47  ;;  %v4705_v60 = vsel %vm485_vm0, %v4700_v6, %v4704_v20  ;;  %8705 = vmatpush3.bf16.msra.mxu0 %v9870_v7  ;;  %v3287_v38 = vmul.f32 %v9315_v39, %v11369_v28  ;;  %v4889_v62 = vsel %vm694_vm1, %v4887_v56, %v4888_v19  ;;  %v11619_v39 = vld [vmem:[#allocation2 + $0x3c] sm:$0xff]  }
 0x232   : > { %v3897_v25 = vsel %vm11396_vm7, %v3636_v53, %v3896_v44  ;;  %5183 = vmatprep.mubr.bf16.mxu0 %v4705_v60  ;;  %v9326_v32 = vadd.f32 %v8490_v12, %v11308_v52  ;;  %v3641_v57 = vrot.slane %v3639_v58, 7  ;;  %9133 = vmatmul.mubr.bf16.gmra.mrb[100].mxu1 %v4889_v62  ;;  %v4707_v20 = vshrl.u32 %v11564_v46, 16  ;;  %v8494_v2 = vpop.f32.mrb[132].mxu0  ;;  %v11616_v44 = vld [vmem:[#allocation2 + $0x44] ss:$0 sps:$4 sm:$0x11]  }
 0x233   : > { %3898 = vst [vmem:[#allocation2 + $0x54] sm:$0xf] %v3897_v25  ;;  %v3357_v21 = vmax.f32 %v3325_v54, 0.0  ;;  %5184 = vmatmul.mubr.bf16.gmra.mrb[168].mxu0 %v11536_v16  ;;  %v4709_v7 = vshll.u32 %v11564_v46, 16  ;;  %v3326_v24 = vadd.f32 %v11377_v50, %v3287_v38  ;;  %v4714_v56 = vshll.u32 %v11579_v26, 16  ;;  %v8495_v27 = vpop.f32.mrb[133].mxu0  ;;  %9171 = vmatpush3.bf16.msra.mxu1 %v11582_v37 }
 0x234   : > { %v9327_v35 = vadd.f32 %v9326_v32, %v11459_v40  ;;  %v8493_v52 = vadd.f32 %v8492_v36, %v8491_v51  ;;  %8706 = vmatprep.subr.bf16.mxu0 %v9874_v49  ;;  %v9877_v16 = vld [vmem:[#allocation3 + $0x30] sm:$0xff]   ;;  %v3644_v47 = vor.u32 %v3642_v63, %v3641_v57  ;;  %v3646_v6 = vrot.slane %v3641_v57, 4  ;;  %v11621_v12 = vpop.f32.mrb[134].mxu0  ;;  %9172 = vmatprep.subr.bf16.mxu1 %v11595_v41  ;;  %v9883_v49 = vld [vmem:[#allocation3 + $0x78] sm:$0xff]  }
 0x235   : > { %v8093_v19 = vpack.c.bf16 %v3357_v21, %v3357_v21  ;;  %v4711_v53 = vrot.slane %v4709_v7, 1  ;;  %8707 = vmatpush3.bf16.msra.mxu0 %v9875_v3  ;;  %v3358_v40 = vmax.f32 %v3326_v24, 0.0  ;;  %v4716_v51 = vrot.slane %v4714_v56, 1  ;;  %v11626_v37 = vpop.f32.mrb[135].mxu0  ;;  %v3903_v3 = vld [vmem:[#allocation2 + $0x60] sm:$0xf] }
 0x236   : > { %v3288_v26 = vmul.f32 %v9327_v35, %v11369_v28  ;;  %v9334_v36 = vadd.f32 %v8493_v52, %v11315_v8  ;;  %8708 = vmatprep.subr.bf16.mxu0 %v9876_v17  ;;  %v3645_v58 = vsel %vm11405_vm8, %v3637_v61, %v3644_v47  ;;  %v3901_v63 = vsel %vm11413_vm9, %v3646_v6, %v3900_v4  ;;  %v9887_v4 = vld [vmem:[#allocation3 + $0x38] sm:$0xff]  }
 0x237   : > { %v3648_v54 = vshrl.u32 %v8093_v19, 16  ;;  %v3651_v60 = vshll.u32 %v8093_v19, 16  ;;  %3899 = vst [vmem:[#allocation2 + $0x58] sm:$0xf] %v3645_v58  ;;  %3902 = vst [vmem:[#allocation2 + $0x5c] sm:$0x1] %v3901_v63  ;;  %v8094_v25 = vpack.c.bf16 %v3358_v40, %v3358_v40  ;;  %v4712_v62 = vor.u32 %v4711_v53, %v4707_v20  ;;  %9173 = vmatpush3.bf16.msra.mxu1 %v11595_v41 }
 0x238   : > { %v3327_v38 = vadd.f32 %v11377_v50, %v3288_v26  ;;  %v9335_v8 = vadd.f32 %v9334_v36, %v11468_v15  ;;  %v4890_v32 = vrot.slane %v11619_v39, 1  ;;  %v4891_v61 = vrot.slane %v11616_v44, 1  ;;  %9174 = vmatprep.subr.bf16.mxu1 %v11611_v55  ;;  %v9882_v20 = vld [vmem:[#allocation3 + $0x1c0] sm:$0xff]   ;;  %v3907_v41 = vld [vmem:[#allocation2 + $0x68] sm:$0x1] }
 0x239   : > { %v3650_v17 = vrot.slane %v3648_v54, 7  ;;  %v8496_v57 = vadd.f32 %v8495_v27, %v8494_v2  ;;  %8709 = vmatpush3.bf16.msra.mxu0 %v9877_v16  ;;  %v3656_v21 = vshrl.u32 %v8094_v25, 16  ;;  %v3659_v7 = vshll.u32 %v8094_v25, 16  ;;  %v11644_v53 = vld [vmem:[#allocation2 + $0x48] sm:$0xff]  }
 0x23a   : > { %v3359_v24 = vmax.f32 %v3327_v38, 0.0  ;;  %v4717_v35 = vsel %vm485_vm0, %v4712_v62, %v4716_v51  ;;  %8710 = vmatprep.subr.bf16.mxu0 %v9883_v49  ;;  %v3289_v52 = vmul.f32 %v9335_v8, %v11369_v28  ;;  %v4892_v47 = vsel %vm694_vm1, %v4890_v32, %v4891_v61  ;;  %v8500_v2 = vpop.f32.mrb[136].mxu0  ;;  %v11651_v49 = vld [vmem:[#allocation2 + $0x50] ss:$0 sps:$4 sm:$0x11]  }
 0x23b   : > { %v3653_v15 = vor.u32 %v3651_v60, %v3650_v17  ;;  %v3654_v56 = vrot.slane %v3650_v17, 4  ;;  %5191 = vmatprep.mubr.bf16.mxu0 %v4717_v35  ;;  %v3658_v27 = vrot.slane %v3656_v21, 7  ;;  %9136 = vmatprep.mubr.bf16.mxu1 %v4892_v47  ;;  %v9322_v16 = vadd.f32 %v8496_v57, %v11304_v1  ;;  %v8501_v40 = vpop.f32.mrb[137].mxu0  ;;  %v3910_v8 = vld [vmem:[#allocation2 + $0x6c] sm:$0xf] }
 0x23c   : > { %v8095_v6 = vpack.c.bf16 %v3359_v24, %v3359_v24  ;;  %5192 = vmatmul.mubr.bf16.gmra.mrb[172].mxu0 %v11564_v46  ;;  %v4719_v19 = vshrl.u32 %v11619_v39, 16  ;;  %v3328_v28 = vadd.f32 %v11377_v50, %v3289_v52  ;;  %v4721_v51 = vshll.u32 %v11619_v39, 16  ;;  %v8503_v46 = vpop.f32.mrb[138].mxu0  ;;  %9175 = vmatpush3.bf16.msra.mxu1 %v11611_v55  ;;  %v3914_v47 = vld [vmem:[#allocation2 + $0x74] sm:$0x1] }
 0x23d   : > { %v3904_v26 = vsel %vm11396_vm7, %v3653_v15, %v3903_v3  ;;  %v4726_v36 = vshll.u32 %v11616_v44, 16  ;;  %8711 = vmatpush3.bf16.msra.mxu0 %v9887_v4  ;;  %v3661_v1 = vor.u32 %v3659_v7, %v3658_v27  ;;  %v3663_v58 = vrot.slane %v3658_v27, 4  ;;  %v8504_v60 = vpop.f32.mrb[139].mxu0  ;;  %8832 = vmatprep.subr.bf16.mxu1 %v9882_v20  ;;  %v11673_v20 = vld [vmem:[%s12845_s3] ss:$0 sm:$0xff] }
 0x23e   : > { %3905 = vst [vmem:[#allocation2 + $0x60] sm:$0xf] %v3904_v26  ;;  %v3665_v63 = vshrl.u32 %v8095_v6, 16  ;;  %v3668_v54 = vshll.u32 %v8095_v6, 16  ;;  %v3360_v3 = vmax.f32 %v3328_v28, 0.0  ;;  %v9323_v50 = vadd.f32 %v9322_v16, %v11457_v42 }
 0x23f   : > { %v4723_v25 = vrot.slane %v4721_v51, 1  ;;  %v4728_v38 = vrot.slane %v4726_v36, 1  ;;  %v3662_v44 = vsel %vm11405_vm8, %v3654_v56, %v3661_v1  ;;  %v3908_v62 = vsel %vm11413_vm9, %v3663_v58, %v3907_v41  ;;  %v11664_v42 = vld [vmem:[%s12844_s2] ss:$0 sm:$0xff] }
 0x240   : > { %v3667_v55 = vrot.slane %v3665_v63, 7  ;;  %v8499_v17 = vadd.f32 %v11626_v37, %v11621_v12  ;;  %3906 = vst [vmem:[#allocation2 + $0x64] sm:$0xf] %v3662_v44  ;;  %3909 = vst [vmem:[#allocation2 + $0x68] sm:$0x1] %v3908_v62  ;;  %v8096_v32 = vpack.c.bf16 %v3360_v3, %v3360_v3  ;;  %v3290_v61 = vmul.f32 %v11664_v42, %v9323_v50 }
 0x241   : > { %v4724_v57 = vor.u32 %v4723_v25, %v4719_v19  ;;  %v4893_v4 = vrot.slane %v11644_v53, 1  ;;  %v4894_v35 = vrot.slane %v11651_v49, 1  ;;  %v8502_v6 = vadd.f32 %v8501_v40, %v8500_v2  ;;  %v11684_v36 = vld [vmem:[#allocation2 + $0x5c] ss:$0 sps:$4 sm:$0x11]   ;;  %v11691_v25 = vld [vmem:[#allocation2 + $0x54] sm:$0xff]  }
 0x242   : > { %v3670_v21 = vor.u32 %v3668_v54, %v3667_v55  ;;  %v3671_v7 = vrot.slane %v3667_v55, 4  ;;  %v9330_v24 = vadd.f32 %v8499_v17, %v11312_v23  ;;  %v3673_v12 = vshrl.u32 %v8096_v32, 16  ;;  %v8506_v41 = vpop.f32.mrb[140].mxu0 }
 0x243   : > { %v3676_v37 = vshll.u32 %v8096_v32, 16  ;;  %v3329_v15 = vadd.f32 %v11673_v20, %v3290_v61  ;;  %v4729_v56 = vsel %vm485_vm0, %v4724_v57, %v4728_v38  ;;  %v4895_v27 = vsel %vm694_vm1, %v4893_v4, %v4894_v35  ;;  %v8507_v16 = vpop.f32.mrb[141].mxu0 }
 0x244   : > { %v3911_v52 = vsel %vm11396_vm7, %v3670_v21, %v3910_v8  ;;  %5199 = vmatprep.mubr.bf16.mxu0 %v4729_v56  ;;  %v9331_v23 = vadd.f32 %v9330_v24, %v11465_v9  ;;  %v3675_v19 = vrot.slane %v3673_v12, 7  ;;  %9137 = vmatmul.mubr.bf16.gmra.mrb[104].mxu1 %v4895_v27  ;;  %v4731_v28 = vshrl.u32 %v11644_v53, 16  ;;  %v11686_v1 = vpop.f32.mrb[142].mxu0 }
 0x245   : > { %3912 = vst [vmem:[#allocation2 + $0x6c] sm:$0xf] %v3911_v52  ;;  %v3361_v26 = vmax.f32 %v3329_v15, 0.0  ;;  %5200 = vmatmul.mubr.bf16.gmra.mrb[176].mxu0 %v11619_v39  ;;  %v4733_v51 = vshll.u32 %v11644_v53, 16  ;;  %v9342_v58 = vadd.f32 %v8502_v6, %v11324_v22  ;;  %v4738_v2 = vshll.u32 %v11651_v49, 16  ;;  %v8510_v63 = vpop.f32.mrb[143].mxu0 }
 0x246   : > { %v3291_v9 = vmul.f32 %v11664_v42, %v9331_v23  ;;  %v8505_v40 = vadd.f32 %v8504_v60, %v8503_v46  ;;  %v3678_v54 = vor.u32 %v3676_v37, %v3675_v19  ;;  %v3680_v3 = vrot.slane %v3675_v19, 4 }
 0x247   : > { %v8097_v39 = vpack.c.bf16 %v3361_v26, %v3361_v26  ;;  %v4735_v50 = vrot.slane %v4733_v51, 1  ;;  %v9343_v44 = vadd.f32 %v9342_v58, %v11488_v18  ;;  %v4740_v62 = vrot.slane %v4738_v2, 1  ;;  %v11709_v15 = vld [vmem:[#allocation2 + $0x60] sm:$0xff]  }
 0x248   : > { %v3330_v38 = vadd.f32 %v11673_v20, %v3291_v9  ;;  %v9350_v55 = vadd.f32 %v8505_v40, %v11331_v29  ;;  %v3679_v22 = vsel %vm11405_vm8, %v3671_v7, %v3678_v54  ;;  %v3915_v49 = vsel %vm11413_vm9, %v3680_v3, %v3914_v47  ;;  %v3917_v7 = vld [vmem:[#allocation2 + $0x78] sm:$0xf]  ;;  %v3921_v51 = vld [vmem:[#allocation2 + $0x80] sm:$0x1] }
 0x249   : > { %v3682_v46 = vshrl.u32 %v8097_v39, 16  ;;  %v3685_v60 = vshll.u32 %v8097_v39, 16  ;;  %3913 = vst [vmem:[#allocation2 + $0x70] sm:$0xf] %v3679_v22  ;;  %3916 = vst [vmem:[#allocation2 + $0x74] sm:$0x1] %v3915_v49  ;;  %v3292_v17 = vmul.f32 %v11664_v42, %v9343_v44  ;;  %v4736_v32 = vor.u32 %v4735_v50, %v4731_v28 }
 0x24a   : > { %v3362_v8 = vmax.f32 %v3330_v38, 0.0  ;;  %v9351_v61 = vadd.f32 %v9350_v55, %v11497_v59  ;;  %v4896_v57 = vrot.slane %v11691_v25, 1  ;;  %v4897_v29 = vrot.slane %v11684_v36, 1  ;;  %v11704_v21 = vpop.f32.mrb[144].mxu0  ;;  %v3924_v49 = vld [vmem:[#allocation2 + $0x84] sm:$0xf] }
 0x24b   : > { %v3684_v18 = vrot.slane %v3682_v46, 7  ;;  %v8508_v4 = vadd.f32 %v8507_v16, %v8506_v41  ;;  %v3331_v35 = vadd.f32 %v11673_v20, %v3292_v17  ;;  %v4741_v12 = vsel %vm485_vm0, %v4736_v32, %v4740_v62  ;;  %v8513_v56 = vpop.f32.mrb[145].mxu0 }
 0x24c   : > { %v8098_v24 = vpack.c.bf16 %v3362_v8, %v3362_v8  ;;  %v3293_v37 = vmul.f32 %v11664_v42, %v9351_v61  ;;  %5207 = vmatprep.mubr.bf16.mxu0 %v4741_v12  ;;  %v4898_v47 = vsel %vm694_vm1, %v4896_v57, %v4897_v29  ;;  %v11713_v23 = vpop.f32.mrb[146].mxu0  ;;  %v4745_v58 = vshll.u32 %v11691_v25, 16 }
 0x24d   : > { %v3687_v59 = vor.u32 %v3685_v60, %v3684_v18  ;;  %v3688_v52 = vrot.slane %v3684_v18, 4  ;;  %v9338_v41 = vadd.f32 %v8508_v4, %v11320_v34  ;;  %v3363_v16 = vmax.f32 %v3331_v35, 0.0  ;;  %5208 = vmatmul.mubr.bf16.gmra.mrb[180].mxu0 %v11644_v53  ;;  %9140 = vmatprep.mubr.bf16.mxu1 %v4898_v47  ;;  %v11717_v26 = vpop.f32.mrb[147].mxu0  ;;  %v11725_v53 = vld [vmem:[#allocation2 + $0x68] ss:$0 sps:$4 sm:$0x11]  }
 0x24e   : > { %v3690_v27 = vshrl.u32 %v8098_v24, 16  ;;  %v3693_v6 = vshll.u32 %v8098_v24, 16  ;;  %v3332_v19 = vadd.f32 %v11673_v20, %v3293_v37  ;;  %v4743_v34 = vshrl.u32 %v11691_v25, 16 }
 0x24f   : > { %v3918_v28 = vsel %vm11396_vm7, %v3687_v59, %v3917_v7  ;;  %v9339_v9 = vadd.f32 %v9338_v41, %v11482_v45  ;;  %v8099_v40 = vpack.c.bf16 %v3363_v16, %v3363_v16  ;;  %v4750_v3 = vshll.u32 %v11684_v36, 16  ;;  %v3928_v16 = vld [vmem:[#allocation2 + $0x8c] sm:$0x1] }
 0x250   : > { %3919 = vst [vmem:[#allocation2 + $0x78] sm:$0xf] %v3918_v28  ;;  %v3692_v2 = vrot.slane %v3690_v27, 7  ;;  %v3364_v54 = vmax.f32 %v3332_v19, 0.0  ;;  %v4747_v50 = vrot.slane %v4745_v58, 1  ;;  %v8511_v38 = vadd.f32 %v8510_v63, %v11686_v1 }
 0x251   : > { %v3294_v39 = vmul.f32 %v11664_v42, %v9339_v9  ;;  %v4899_v44 = vrot.slane %v11709_v15, 1  ;;  %v3699_v55 = vshrl.u32 %v8099_v40, 16  ;;  %v3702_v22 = vshll.u32 %v8099_v40, 16 }
 0x252   : > { %v3695_v45 = vor.u32 %v3693_v6, %v3692_v2  ;;  %v3697_v62 = vrot.slane %v3692_v2, 4  ;;  %v8100_v46 = vpack.c.bf16 %v3364_v54, %v3364_v54  ;;  %v4748_v8 = vor.u32 %v4747_v50, %v4743_v34  ;;  %v11731_v36 = vpop.f32.mrb[148].mxu0 }
 0x253   : > { %v3333_v60 = vadd.f32 %v11673_v20, %v3294_v39  ;;  %v4752_v17 = vrot.slane %v4750_v3, 1  ;;  %v3701_v63 = vrot.slane %v3699_v55, 7  ;;  %v9346_v61 = vadd.f32 %v8511_v38, %v11328_v14  ;;  %v8519_v18 = vpop.f32.mrb[149].mxu0 }
 0x254   : > { %v3696_v32 = vsel %vm11405_vm8, %v3688_v52, %v3695_v45  ;;  %v3922_v1 = vsel %vm11413_vm9, %v3697_v62, %v3921_v51  ;;  %v3707_v57 = vshrl.u32 %v8100_v46, 16  ;;  %v3710_v29 = vshll.u32 %v8100_v46, 16  ;;  %v11739_v24 = vpop.f32.mrb[150].mxu0  ;;  %v11753_v51 = vld [vmem:[#allocation2 + $0x6c] sm:$0xff]   ;;  %v12902_v46 = vld [vmem:[#allocation10_spill] sm:$0xff] }
 0x255   : > { %3920 = vst [vmem:[#allocation2 + $0x7c] sm:$0xf] %v3696_v32  ;;  %3923 = vst [vmem:[#allocation2 + $0x80] sm:$0x1] %v3922_v1  ;;  %v3365_v4 = vmax.f32 %v3333_v60, 0.0  ;;  %v4753_v7 = vsel %vm485_vm0, %v4748_v8, %v4752_v17  ;;  %v3704_v35 = vor.u32 %v3702_v22, %v3701_v63  ;;  %v3705_v12 = vrot.slane %v3701_v63, 4 }
 0x256   : > { %5215 = vmatprep.mubr.bf16.mxu0 %v4753_v7  ;;  %v9347_v37 = vadd.f32 %v9346_v61, %v11491_v31  ;;  %v4900_v59 = vrot.slane %v11725_v53, 1  ;;  %v11743_v52 = vpop.f32.mrb[151].mxu0  ;;  %v3709_v14 = vrot.slane %v3707_v57, 7  ;;  %v8514_v41 = vadd.f32 %v8513_v56, %v11704_v21  ;;  %v9841_v21 = vld [vmem:[#allocation2 + $0x74] ss:$0 sps:$4 sm:$0x11]  }
 0x257   : > { %v8101_v47 = vpack.c.bf16 %v3365_v4, %v3365_v4  ;;  %5216 = vmatmul.mubr.bf16.gmra.mrb[184].mxu0 %v11691_v25  ;;  %v4755_v27 = vshrl.u32 %v11709_v15, 16  ;;  %v3925_v6 = vsel %vm11396_vm7, %v3704_v35, %v3924_v49  ;;  %v4757_v28 = vshll.u32 %v11709_v15, 16  ;;  %v3931_v56 = vld [vmem:[#allocation2 + $0x90] sm:$0xf]  ;;  %v12903_v61 = vld [vmem:[#allocation15_spill] sm:$0xff] }
 0x258   : > { %v3295_v19 = vmul.f32 %v11664_v42, %v9347_v37  ;;  %v4901_v31 = vsel %vm694_vm1, %v4899_v44, %v4900_v59  ;;  %3926 = vst [vmem:[#allocation2 + $0x84] sm:$0xf] %v3925_v6  ;;  %v3712_v9 = vor.u32 %v3710_v29, %v3709_v14  ;;  %v3714_v34 = vrot.slane %v3709_v14, 4 }
 0x259   : > { %v3716_v25 = vshrl.u32 %v8101_v47, 16  ;;  %v3719_v58 = vshll.u32 %v8101_v47, 16  ;;  %9141 = vmatmul.mubr.bf16.gmra.mrb[108].mxu1 %v4901_v31  ;;  %v9358_v40 = vadd.f32 %v8514_v41, %v11340_v13  ;;  %v4759_v54 = vrot.slane %v4757_v28, 1 }
 0x25a   : > { %v3334_v2 = vadd.f32 %v11673_v20, %v3295_v19  ;;  %v4762_v3 = vshll.u32 %v11725_v53, 16  ;;  %v3713_v39 = vsel %vm11405_vm8, %v3705_v12, %v3712_v9  ;;  %v3929_v50 = vsel %vm11413_vm9, %v3714_v34, %v3928_v16  ;;  %v11764_v45 = vpop.f32.mrb[152].mxu0  ;;  %v3935_v19 = vld [vmem:[#allocation2 + $0x98] sm:$0x1] }
 0x25b   : > { %v3718_v38 = vrot.slane %v3716_v25, 7  ;;  %v8517_v44 = vadd.f32 %v11717_v26, %v11713_v23  ;;  %3927 = vst [vmem:[#allocation2 + $0x88] sm:$0xf] %v3713_v39  ;;  %3930 = vst [vmem:[#allocation2 + $0x8c] sm:$0x1] %v3929_v50  ;;  %v9359_v13 = vadd.f32 %v9358_v40, %v11518_v33  ;;  %v4760_v55 = vor.u32 %v4759_v54, %v4755_v27  ;;  %v8525_v63 = vpop.f32.mrb[153].mxu0 }
 0x25c   : > { %v3366_v62 = vmax.f32 %v3334_v2, 0.0  ;;  %v4764_v22 = vrot.slane %v4762_v3, 1  ;;  %v4902_v8 = vrot.slane %v11753_v51, 1  ;;  %v11769_v17 = vld [vmem:[#allocation2 + $0x78] sm:$0xff]   ;;  %v4903_v1 = vrot.slane %v9841_v21, 1  ;;  %v11780_v35 = vpop.f32.mrb[154].mxu0 }
 0x25d   : > { %v3721_v53 = vor.u32 %v3719_v58, %v3718_v38  ;;  %v3722_v49 = vrot.slane %v3718_v38, 4  ;;  %v9366_v60 = vadd.f32 %v8517_v44, %v12902_v46  ;;  %v3296_v23 = vmul.f32 %v11664_v42, %v9359_v13  ;;  %v11778_v7 = vld [vmem:[#allocation2 + $0x80] ss:$0 sps:$4 sm:$0x11]   ;;  %v8528_v47 = vpop.f32.mrb[155].mxu0  ;;  %v12905_v34 = vld [vmem:[#allocation13_spill] sm:$0xff] }
 0x25e   : > { %v8102_v32 = vpack.c.bf16 %v3366_v62, %v3366_v62  ;;  %v4765_v26 = vsel %vm485_vm0, %v4760_v55, %v4764_v22  ;;  %v8520_v29 = vadd.f32 %v8519_v18, %v11731_v36  ;;  %v4767_v4 = vshrl.u32 %v11753_v51, 16  ;;  %v12904_v36 = vld [vmem:[#allocation9_spill] sm:$0xff]  ;;  %v12906_v3 = vld [vmem:[#allocation11_spill] sm:$0xff] }
 0x25f   : > { %v3932_v33 = vsel %vm11396_vm7, %v3721_v53, %v3931_v56  ;;  %5223 = vmatprep.mubr.bf16.mxu0 %v4765_v26  ;;  %v9367_v57 = vadd.f32 %v9366_v60, %v12903_v61  ;;  %v3335_v59 = vadd.f32 %v11673_v20, %v3296_v23  ;;  %v4904_v14 = vsel %vm694_vm1, %v4902_v8, %v4903_v1  ;;  %v3938_v46 = vld [vmem:[#allocation2 + $0x9c] sm:$0xf]  ;;  %v12907_v23 = vld [vmem:[#allocation18_spill] sm:$0xff] }
 0x260   : > { %3933 = vst [vmem:[#allocation2 + $0x90] sm:$0xf] %v3932_v33  ;;  %v3724_v12 = vshrl.u32 %v8102_v32, 16  ;;  %v3727_v37 = vshll.u32 %v8102_v32, 16  ;;  %5224 = vmatmul.mubr.bf16.gmra.mrb[188].mxu0 %v11709_v15  ;;  %9144 = vmatprep.mubr.bf16.mxu1 %v4904_v14  ;;  %v9354_v18 = vadd.f32 %v8520_v29, %v12904_v36  ;;  %v4769_v27 = vshll.u32 %v11753_v51, 16  ;;  %v12908_v36 = vld [vmem:[#allocation12_spill] sm:$0xff] }
 0x261   : > { %v3297_v41 = vmul.f32 %v11664_v42, %v9367_v57  ;;  %v4774_v6 = vshll.u32 %v9841_v21, 16  ;;  %v3367_v31 = vmax.f32 %v3335_v59, 0.0  ;;  %v8523_v28 = vadd.f32 %v11743_v52, %v11739_v24 }
 0x262   : > { %v3726_v16 = vrot.slane %v3724_v12, 7  ;;  %v4905_v9 = vrot.slane %v11769_v17, 1  ;;  %v9355_v25 = vadd.f32 %v9354_v18, %v12905_v34  ;;  %v4771_v58 = vrot.slane %v4769_v27, 1  ;;  %v11794_v21 = vpop.f32.mrb[156].mxu0 }
 0x263   : > { %v3336_v15 = vadd.f32 %v11673_v20, %v3297_v41  ;;  %v4776_v56 = vrot.slane %v4774_v6, 1  ;;  %v8103_v54 = vpack.c.bf16 %v3367_v31, %v3367_v31  ;;  %v9362_v39 = vadd.f32 %v8523_v28, %v12906_v3  ;;  %v11798_v52 = vpop.f32.mrb[157].mxu0  ;;  %v3942_v41 = vld [vmem:[#allocation2 + $0xa4] sm:$0x1] }
 0x264   : > { %v3729_v2 = vor.u32 %v3727_v37, %v3726_v16  ;;  %v3731_v40 = vrot.slane %v3726_v16, 4  ;;  %v3298_v38 = vmul.f32 %v11664_v42, %v9355_v25  ;;  %v4772_v44 = vor.u32 %v4771_v58, %v4767_v4  ;;  %v11804_v53 = vpop.f32.mrb[158].mxu0  ;;  %v11818_v6 = vld [vmem:[#allocation2 + $0x84] sm:$0xff]  }
 0x265   : > { %v3368_v50 = vmax.f32 %v3336_v15, 0.0  ;;  %v4906_v24 = vrot.slane %v11778_v7, 1  ;;  %v3733_v55 = vshrl.u32 %v8103_v54, 16  ;;  %v3736_v22 = vshll.u32 %v8103_v54, 16  ;;  %v11809_v1 = vpop.f32.mrb[159].mxu0 }
 0x266   : > { %v3730_v62 = vsel %vm11405_vm8, %v3722_v49, %v3729_v2  ;;  %v3936_v13 = vsel %vm11413_vm9, %v3731_v40, %v3935_v19  ;;  %v3337_v8 = vadd.f32 %v11673_v20, %v3298_v38  ;;  %v4777_v32 = vsel %vm485_vm0, %v4772_v44, %v4776_v56  ;;  %v9847_v15 = vld [vmem:[#allocation2 + $0x8c] ss:$0 sps:$4 sm:$0x11]  }
 0x267   : > { %3934 = vst [vmem:[#allocation2 + $0x94] sm:$0xf] %v3730_v62  ;;  %3937 = vst [vmem:[#allocation2 + $0x98] sm:$0x1] %v3936_v13  ;;  %v8104_v60 = vpack.c.bf16 %v3368_v50, %v3368_v50  ;;  %v9363_v26 = vadd.f32 %v9362_v39, %v12907_v23  ;;  %v3735_v49 = vrot.slane %v3733_v55, 7  ;;  %5231 = vmatprep.mubr.bf16.mxu0 %v4777_v32  ;;  %v4779_v57 = vshrl.u32 %v11769_v17, 16 }
 0x268   : > { %v4907_v33 = vsel %vm694_vm1, %v4905_v9, %v4906_v24  ;;  %v8526_v61 = vadd.f32 %v8525_v63, %v11764_v45  ;;  %v3369_v12 = vmax.f32 %v3337_v8, 0.0  ;;  %5232 = vmatmul.mubr.bf16.gmra.mrb[192].mxu0 %v11753_v51  ;;  %v4781_v27 = vshll.u32 %v11769_v17, 16  ;;  %v3945_v50 = vld [vmem:[#allocation2 + $0xa8] sm:$0xf] }
 0x269   : > { %v3741_v29 = vshrl.u32 %v8104_v60, 16  ;;  %v3744_v4 = vshll.u32 %v8104_v60, 16  ;;  %v3299_v37 = vmul.f32 %v11664_v42, %v9363_v26  ;;  %9145 = vmatmul.mubr.bf16.gmra.mrb[112].mxu1 %v4907_v33  ;;  %v3738_v59 = vor.u32 %v3736_v22, %v3735_v49  ;;  %v3949_v33 = vld [vmem:[#allocation2 + $0xb0] sm:$0x1] }
 0x26a   : > { %v3739_v14 = vrot.slane %v3735_v49, 4  ;;  %v9374_v18 = vadd.f32 %v8526_v61, %v12908_v36  ;;  %v8105_v63 = vpack.c.bf16 %v3369_v12, %v3369_v12  ;;  %v4786_v19 = vshll.u32 %v11778_v7, 16 }
 0x26b   : > { %v3743_v45 = vrot.slane %v3741_v29, 7  ;;  %v3338_v16 = vadd.f32 %v11673_v20, %v3299_v37  ;;  %v3939_v31 = vsel %vm11396_vm7, %v3738_v59, %v3938_v46  ;;  %v4783_v28 = vrot.slane %v4781_v27, 1  ;;  %v12910_v37 = vld [vmem:[#allocation16_spill] sm:$0xff] }
 0x26c   : > { %v9375_v51 = vadd.f32 %v9374_v18, %v11556_v30  ;;  %v8529_v9 = vadd.f32 %v8528_v47, %v11780_v35  ;;  %3940 = vst [vmem:[#allocation2 + $0x9c] sm:$0xf] %v3939_v31  ;;  %v3750_v58 = vshrl.u32 %v8105_v63, 16  ;;  %v3753_v56 = vshll.u32 %v8105_v63, 16  ;;  %v12909_v35 = vld [vmem:[#allocation14_spill] sm:$0xff] }
 0x26d   : > { %v3746_v34 = vor.u32 %v3744_v4, %v3743_v45  ;;  %v3748_v25 = vrot.slane %v3743_v45, 4  ;;  %v3370_v2 = vmax.f32 %v3338_v16, 0.0  ;;  %v4784_v54 = vor.u32 %v4783_v28, %v4779_v57 }
 0x26e   : > { %v3300_v40 = vmul.f32 %v11664_v42, %v9375_v51  ;;  %v4788_v3 = vrot.slane %v4786_v19, 1  ;;  %v3752_v39 = vrot.slane %v3750_v58, 7  ;;  %v9382_v47 = vadd.f32 %v8529_v9, %v12909_v35  ;;  %v11836_v60 = vld [vmem:[#allocation2 + $0x90] sm:$0xff]   ;;  %v9850_v29 = vld [vmem:[#allocation2 + $0x98] ss:$0 sps:$4 sm:$0x11]  }
 0x26f   : > { %v3747_v7 = vsel %vm11405_vm8, %v3739_v14, %v3746_v34  ;;  %v3943_v30 = vsel %vm11413_vm9, %v3748_v25, %v3942_v41  ;;  %v8106_v38 = vpack.c.bf16 %v3370_v2, %v3370_v2  ;;  %v4908_v62 = vrot.slane %v11818_v6, 1 }
 0x270   : > { %3941 = vst [vmem:[#allocation2 + $0xa0] sm:$0xf] %v3747_v7  ;;  %3944 = vst [vmem:[#allocation2 + $0xa4] sm:$0x1] %v3943_v30  ;;  %v3339_v44 = vadd.f32 %v11673_v20, %v3300_v40  ;;  %v4789_v24 = vsel %vm485_vm0, %v4784_v54, %v4788_v3  ;;  %v3755_v13 = vor.u32 %v3753_v56, %v3752_v39  ;;  %v3756_v55 = vrot.slane %v3752_v39, 4 }
 0x271   : > { %5239 = vmatprep.mubr.bf16.mxu0 %v4789_v24  ;;  %v9383_v22 = vadd.f32 %v9382_v47, %v11567_v5  ;;  %v4909_v46 = vrot.slane %v9847_v15, 1  ;;  %v3758_v8 = vshrl.u32 %v8106_v38, 16  ;;  %v3761_v32 = vshll.u32 %v8106_v38, 16  ;;  %v3956_v47 = vld [vmem:[#allocation2 + $0xbc] sm:$0x1] }
 0x272   : > { %v3371_v23 = vmax.f32 %v3339_v44, 0.0  ;;  %5240 = vmatmul.mubr.bf16.gmra.mrb[196].mxu0 %v11769_v17  ;;  %v8532_v26 = vadd.f32 %v11798_v52, %v11794_v21  ;;  %v3946_v49 = vsel %vm11396_vm7, %v3755_v13, %v3945_v50  ;;  %v4791_v5 = vshrl.u32 %v11818_v6, 16 }
 0x273   : > { %v3301_v61 = vmul.f32 %v11664_v42, %v9383_v22  ;;  %v4910_v57 = vsel %vm694_vm1, %v4908_v62, %v4909_v46  ;;  %3947 = vst [vmem:[#allocation2 + $0xa8] sm:$0xf] %v3946_v49  ;;  %v3760_v4 = vrot.slane %v3758_v8, 7  ;;  %v4793_v59 = vshll.u32 %v11818_v6, 16 }
 0x274   : > { %v8107_v12 = vpack.c.bf16 %v3371_v23, %v3371_v23  ;;  %9148 = vmatprep.mubr.bf16.mxu1 %v4910_v57  ;;  %v9370_v17 = vadd.f32 %v8532_v26, %v12910_v37  ;;  %v4798_v52 = vshll.u32 %v9847_v15, 16  ;;  %v8535_v14 = vadd.f32 %v11809_v1, %v11804_v53  ;;  %v3952_v15 = vld [vmem:[#allocation2 + $0xb4] sm:$0xf]  ;;  %v12911_v53 = vld [vmem:[#allocation17_spill] sm:$0xff] }
 0x275   : > { %v3340_v21 = vadd.f32 %v11673_v20, %v3301_v61  ;;  %v4911_v41 = vrot.slane %v11836_v60, 1  ;;  %v3763_v36 = vor.u32 %v3761_v32, %v3760_v4  ;;  %v3765_v18 = vrot.slane %v3760_v4, 4 }
 0x276   : > { %v3767_v27 = vshrl.u32 %v8107_v12, 16  ;;  %v3770_v45 = vshll.u32 %v8107_v12, 16  ;;  %v9371_v16 = vadd.f32 %v9370_v17, %v11551_v10  ;;  %v4795_v19 = vrot.slane %v4793_v59, 1 }
 0x277   : > { %v3372_v63 = vmax.f32 %v3340_v21, 0.0  ;;  %v4800_v31 = vrot.slane %v4798_v52, 1  ;;  %v3764_v51 = vsel %vm11405_vm8, %v3756_v55, %v3763_v36  ;;  %v3950_v28 = vsel %vm11413_vm9, %v3765_v18, %v3949_v33  ;;  %v11859_v10 = vld [vmem:[#allocation2 + $0x9c] sm:$0xff]   ;;  %v9853_v3 = vld [vmem:[#allocation2 + $0xa4] ss:$0 sps:$4 sm:$0x11]  }
 0x278   : > { %v3769_v9 = vrot.slane %v3767_v27, 7  ;;  %v9378_v1 = vadd.f32 %v8535_v14, %v12911_v53  ;;  %3948 = vst [vmem:[#allocation2 + $0xac] sm:$0xf] %v3764_v51  ;;  %3951 = vst [vmem:[#allocation2 + $0xb0] sm:$0x1] %v3950_v28  ;;  %v3302_v25 = vmul.f32 %v11664_v42, %v9371_v16  ;;  %v4796_v58 = vor.u32 %v4795_v19, %v4791_v5 }
 0x279   : > { %v8108_v34 = vpack.c.bf16 %v3372_v63, %v3372_v63  ;;  %v4912_v56 = vrot.slane %v9850_v29, 1  ;;  %v4805_v24 = vshll.u32 %v11836_v60, 16  ;;  %v4810_v13 = vshll.u32 %v9850_v29, 16  ;;  %v3959_v27 = vld [vmem:[#allocation2 + $0xc0] sm:$0xf] }
 0x27a   : > { %v3772_v2 = vor.u32 %v3770_v45, %v3769_v9  ;;  %v3773_v40 = vrot.slane %v3769_v9, 4  ;;  %v9379_v54 = vadd.f32 %v9378_v1, %v11562_v48  ;;  %v3341_v39 = vadd.f32 %v11673_v20, %v3302_v25 }
 0x27b   : > { %v3775_v7 = vshrl.u32 %v8108_v34, 16  ;;  %v3778_v30 = vshll.u32 %v8108_v34, 16  ;;  %v4801_v50 = vsel %vm485_vm0, %v4796_v58, %v4800_v31  ;;  %v4913_v44 = vsel %vm694_vm1, %v4911_v41, %v4912_v56  ;;  %v3963_v34 = vld [vmem:[#allocation2 + $0xc8] sm:$0x1] }
 0x27c   : > { %v3953_v35 = vsel %vm11396_vm7, %v3772_v2, %v3952_v15  ;;  %5247 = vmatprep.mubr.bf16.mxu0 %v4801_v50  ;;  %v3303_v38 = vmul.f32 %v11664_v42, %v9379_v54  ;;  %v3373_v62 = vmax.f32 %v3341_v39, 0.0  ;;  %9149 = vmatmul.mubr.bf16.gmra.mrb[116].mxu1 %v4913_v44  ;;  %v4914_v55 = vrot.slane %v11859_v10, 1 }
 0x27d   : > { %3954 = vst [vmem:[#allocation2 + $0xb4] sm:$0xf] %v3953_v35  ;;  %v3777_v48 = vrot.slane %v3775_v7, 7  ;;  %5248 = vmatmul.mubr.bf16.gmra.mrb[200].mxu0 %v11818_v6  ;;  %v4803_v46 = vshrl.u32 %v11836_v60, 16  ;;  %v4807_v8 = vrot.slane %v4805_v24, 1  ;;  %v4915_v32 = vrot.slane %v9853_v3, 1 }
 0x27e   : > { %v3342_v22 = vadd.f32 %v11673_v20, %v3303_v38  ;;  %v8109_v26 = vpack.c.bf16 %v3373_v62, %v3373_v62  ;;  %v4812_v49 = vrot.slane %v4810_v13, 1  ;;  %v4817_v6 = vshll.u32 %v11859_v10, 16 }
 0x27f   : > { %v3780_v42 = vor.u32 %v3778_v30, %v3777_v48  ;;  %v3782_v23 = vrot.slane %v3777_v48, 4  ;;  %v4808_v61 = vor.u32 %v4807_v8, %v4803_v46  ;;  %v4916_v57 = vsel %vm694_vm1, %v4914_v55, %v4915_v32  ;;  %v11880_v12 = vld [vmem:[#allocation2 + $0xa8] sm:$0xff]   ;;  %v9858_v37 = vld [vmem:[#allocation2 + $0xb0] ss:$0 sps:$4 sm:$0x11]   ;;  %v11897_v48 = vld [vmem:[#allocation2] sm:$0xff]  }
 0x280   : > { %v3374_v33 = vmax.f32 %v3342_v22, 0.0  ;;  %v3784_v29 = vshrl.u32 %v8109_v26, 16  ;;  %9152 = vmatprep.mubr.bf16.mxu1 %v4916_v57  ;;  %v4815_v4 = vshrl.u32 %v11859_v10, 16  ;;  %v4819_v21 = vrot.slane %v4817_v6, 1  ;;  %v11904_v57 = vld [vmem:[#allocation2 + $0xc] sm:$0xff]  }
 0x281   : > { %v3781_v5 = vsel %vm11405_vm8, %v3773_v40, %v3780_v42  ;;  %v3957_v20 = vsel %vm11413_vm9, %v3782_v23, %v3956_v47  ;;  %v4813_v59 = vsel %vm485_vm0, %v4808_v61, %v4812_v49  ;;  %v4822_v52 = vshll.u32 %v9853_v3, 16  ;;  %v11906_v6 = vld [vmem:[#allocation2 + $0x14] ss:$0 sps:$4 sm:$0x11]  }
 0x282   : > { %3955 = vst [vmem:[#allocation2 + $0xb8] sm:$0xf] %v3781_v5  ;;  %3958 = vst [vmem:[#allocation2 + $0xbc] sm:$0x1] %v3957_v20  ;;  %v8110_v17 = vpack.c.bf16 %v3374_v33, %v3374_v33  ;;  %v3786_v14 = vrot.slane %v3784_v29, 7  ;;  %v3787_v41 = vshll.u32 %v8109_v26, 16  ;;  %5255 = vmatprep.mubr.bf16.mxu0 %v4813_v59  ;;  %v4820_v63 = vor.u32 %v4819_v21, %v4815_v4 }
 0x283   : > { %v4917_v36 = vrot.slane %v11880_v12, 1  ;;  %v4918_v18 = vrot.slane %v9858_v37, 1  ;;  %v4824_v16 = vrot.slane %v4822_v52, 1  ;;  %v4829_v51 = vshll.u32 %v11880_v12, 16  ;;  %v11910_v4 = vld [vmem:[#allocation2 + $0x18] sm:$0xff]  }
 0x284   : > { %v3792_v45 = vshrl.u32 %v8110_v17, 16  ;;  %v3789_v19 = vor.u32 %v3787_v41, %v3786_v14  ;;  %v3795_v9 = vshll.u32 %v8110_v17, 16  ;;  %v4834_v53 = vshll.u32 %v9858_v37, 16 }
 0x285   : > { %5256 = vmatmul.mubr.bf16.gmra.mrb[204].mxu0 %v11836_v60  ;;  %v4919_v31 = vsel %vm694_vm1, %v4917_v36, %v4918_v18  ;;  %v4825_v15 = vsel %vm485_vm0, %v4820_v63, %v4824_v16  ;;  %v4827_v25 = vshrl.u32 %v11880_v12, 16  ;;  %v4831_v58 = vrot.slane %v4829_v51, 1  ;;  %v11923_v51 = vld [vmem:[#allocation2 + $0x2c] ss:$0 sps:$4 sm:$0x11]  }
 0x286   : > { %v3794_v28 = vrot.slane %v3792_v45, 7  ;;  %9153 = vmatmul.mubr.bf16.gmra.mrb[120].mxu1 %v4919_v31  ;;  %v3960_v1 = vsel %vm11396_vm7, %v3789_v19, %v3959_v27  ;;  %5263 = vmatprep.mubr.bf16.mxu0 %v4825_v15  ;;  %v3790_v56 = vrot.slane %v3786_v14, 4  ;;  %v4836_v54 = vrot.slane %v4834_v53, 1  ;;  %v9886_v27 = vld [vmem:[#allocation3 + $0x180] sm:$0xff]   ;;  %v9890_v45 = vld [vmem:[#allocation3 + $0x1c8] sm:$0xff]  }
 0x287   : > { %3961 = vst [vmem:[#allocation2 + $0xc0] sm:$0xf] %v3960_v1  ;;  %v4832_v40 = vor.u32 %v4831_v58, %v4827_v25  ;;  %v4366_v55 = vrot.slane %v11897_v48, 1  ;;  %v4367_v46 = vrot.slane %v9879_v0, 1  ;;  %v4161_v20 = vshll.u32 %v11897_v48, 16  ;;  %v11921_v31 = vld [vmem:[#allocation2 + $0x24] sm:$0xff]  }
 0x288   : > { %v3797_v60 = vor.u32 %v3795_v9, %v3794_v28  ;;  %v3799_v2 = vrot.slane %v3794_v28, 4  ;;  %v4369_v17 = vrot.slane %v11904_v57, 1  ;;  %v4370_v59 = vrot.slane %v11906_v6, 1  ;;  %v11926_v9 = vld [vmem:[#allocation2 + $0x30] sm:$0xff]   ;;  %v9893_v1 = vld [vmem:[#allocation3 + $0x188] sm:$0xff]  }
 0x289   : > { %v9864_v3 = vld [vmem:[#allocation2 + $0xb4] sm:$0xff]   ;;  %v9865_v43 = vld [vmem:[#allocation2 + $0xbc] ss:$0 sps:$4 sm:$0x11]   ;;  %v4837_v39 = vsel %vm485_vm0, %v4832_v40, %v4836_v54  ;;  %v4368_v61 = vsel %vm694_vm1, %v4366_v55, %v4367_v46  ;;  %v4159_v52 = vshrl.u32 %v11897_v48, 16  ;;  %v4163_v14 = vrot.slane %v4161_v20, 1 }
 0x28a   : > { %v3798_v7 = vsel %vm11405_vm8, %v3790_v56, %v3797_v60  ;;  %v3964_v30 = vsel %vm11413_vm9, %v3799_v2, %v3963_v34  ;;  %v4920_v50 = vrot.slane %v9864_v3, 1  ;;  %v4841_v35 = vshll.u32 %v9864_v3, 16  ;;  %v11928_v15 = vld [vmem:[#allocation2 + $0x38] ss:$0 sps:$4 sm:$0x11]   ;;  %v9896_v34 = vld [vmem:[#allocation3 + $0x1d0] sm:$0xff]  }
 0x28b   : > { %3962 = vst [vmem:[#allocation2 + $0xc4] sm:$0xf] %v3798_v7  ;;  %3965 = vst [vmem:[#allocation2 + $0xc8] sm:$0x1] %v3964_v30  ;;  %v4921_v47 = vrot.slane %v9865_v43, 1  ;;  %v4839_v38 = vshrl.u32 %v9864_v3, 16  ;;  %v4371_v63 = vsel %vm694_vm1, %v4369_v17, %v4370_v59  ;;  %v4164_v16 = vor.u32 %v4163_v14, %v4159_v52 }
 0x28c   : > { %v4843_v44 = vrot.slane %v4841_v35, 1  ;;  %v4846_v24 = vshll.u32 %v9865_v43, 16  ;;  %v4166_v41 = vshll.u32 %v9879_v0, 16  ;;  %v4372_v36 = vrot.slane %v11910_v4, 1  ;;  %v9899_v54 = vld [vmem:[#allocation3 + $0x190] sm:$0xff]   ;;  %v9908_v0 = vld [vmem:[#allocation3 + $0x1e0] sm:$0xff]  }
 0x28d   : > { %5264 = vmatmul.mubr.bf16.gmra.mrb[208].mxu0 %v11859_v10  ;;  %v4922_v11 = vsel %vm694_vm1, %v4920_v50, %v4921_v47  ;;  %v4173_v53 = vshll.u32 %v11904_v57, 16  ;;  %v4375_v58 = vrot.slane %v11921_v31, 1  ;;  %v4376_v56 = vrot.slane %v11923_v51, 1  ;;  %v11941_v50 = vld [vmem:[#allocation2 + $0x44] ss:$0 sps:$4 sm:$0x11]  }
 0x28e   : > { %5271 = vmatprep.mubr.bf16.mxu0 %v4837_v39  ;;  %9156 = vmatprep.mubr.bf16.mxu1 %v4922_v11  ;;  %v4844_v62 = vor.u32 %v4843_v44, %v4839_v38  ;;  %v4848_v13 = vrot.slane %v4846_v24, 1  ;;  %v4168_v19 = vrot.slane %v4166_v41, 1  ;;  %v4378_v60 = vrot.slane %v11926_v9, 1  ;;  %v11939_v39 = vld [vmem:[#allocation2 + $0x3c] sm:$0xff]   ;;  %v11944_v47 = vld [vmem:[#allocation2 + $0x48] sm:$0xff]   ;;  %v9905_v11 = vld [vmem:[#allocation3 + $0x198] sm:$0xff]  }
 0x28f   : > { %v4379_v2 = vrot.slane %v11928_v15, 1  ;;  %v4175_v40 = vrot.slane %v4173_v53, 1  ;;  %v4171_v7 = vshrl.u32 %v11904_v57, 16  ;;  %v4178_v30 = vshll.u32 %v11906_v6, 16  ;;  %v11963_v6 = vld [vmem:[#allocation2 + $0x60] sm:$0xff]   ;;  %v11982_v53 = vld [vmem:[#allocation2 + $0x78] sm:$0xff]  }
 0x290   : > { %v4849_v8 = vsel %vm485_vm0, %v4844_v62, %v4848_v13  ;;  %v4169_v25 = vsel %vm485_vm0, %v4164_v16, %v4168_v19  ;;  %v4377_v43 = vsel %vm694_vm1, %v4375_v58, %v4376_v56  ;;  %v11946_v38 = vld [vmem:[#allocation2 + $0x50] ss:$0 sps:$4 sm:$0x11]   ;;  %v4185_v24 = vshll.u32 %v11910_v4, 16 }
 0x291   : > { %v4380_v35 = vsel %vm694_vm1, %v4378_v60, %v4379_v2  ;;  %v4176_v44 = vor.u32 %v4175_v40, %v4171_v7  ;;  %v4180_v62 = vrot.slane %v4178_v30, 1  ;;  %v4381_v13 = vrot.slane %v11939_v39, 1  ;;  %v11977_v19 = vld [vmem:[#allocation2 + $0x6c] sm:$0xff]  }
 0x292   : > { %v9871_v22 = vld [vmem:[#allocation2 + $0xc0] sm:$0xff]   ;;  %v9872_v32 = vld [vmem:[#allocation2 + $0xc8] ss:$0 sps:$4 sm:$0x11]   ;;  %v4382_v55 = vrot.slane %v11941_v50, 1  ;;  %v4385_v46 = vrot.slane %v11946_v38, 1 }
 0x293   : > { %v4923_v10 = vrot.slane %v9871_v22, 1  ;;  %v4853_v42 = vshll.u32 %v9871_v22, 16  ;;  %v4924_v23 = vrot.slane %v9872_v32, 1  ;;  %v4858_v26 = vshll.u32 %v9872_v32, 16  ;;  %v9927_v58 = vld [vmem:[#allocation3 + $0x1b8] sm:$0xff]  }
 0x294   : > { %v4851_v49 = vshrl.u32 %v9871_v22, 16  ;;  %v4187_v32 = vrot.slane %v4185_v24, 1  ;;  %v4390_v52 = vrot.slane %v11963_v6, 1  ;;  %v4393_v60 = vrot.slane %v11977_v19, 1 }
 0x295   : > { %5272 = vmatmul.mubr.bf16.gmra.mrb[212].mxu0 %v11880_v12  ;;  %v4855_v33 = vrot.slane %v4853_v42, 1  ;;  %v4925_v5 = vsel %vm694_vm1, %v4923_v10, %v4924_v23  ;;  %v11912_v12 = vld [vmem:[#allocation2 + $0x20] ss:$0 sps:$4 sm:$0x11]   ;;  %v4860_v37 = vrot.slane %v4858_v26, 1  ;;  %v9911_v10 = vld [vmem:[#allocation3 + $0x1a0] sm:$0xff]  }
 0x296   : > { %5279 = vmatprep.mubr.bf16.mxu0 %v4849_v8  ;;  %9157 = vmatmul.mubr.bf16.gmra.mrb[124].mxu1 %v4925_v5  ;;  %v4373_v18 = vrot.slane %v11912_v12, 1  ;;  %v4181_v8 = vsel %vm485_vm0, %v4176_v44, %v4180_v62  ;;  %v9914_v42 = vld [vmem:[#allocation3 + $0x1e8] sm:$0xff]   ;;  %v4183_v23 = vshrl.u32 %v11910_v4, 16  ;;  %v4190_v26 = vshll.u32 %v11912_v12, 16  ;;  %v9920_v12 = vld [vmem:[#allocation3 + $0x1f0] sm:$0xff]  }
 0x297   : > { %v4856_v29 = vor.u32 %v4855_v33, %v4851_v49  ;;  %9176 = vmatprep.mubr.bf16.mxu1 %v4368_v61  ;;  %v4383_v49 = vsel %vm694_vm1, %v4381_v13, %v4382_v55  ;;  %v11958_v33 = vld [vmem:[#allocation2 + $0x54] sm:$0xff]   ;;  %v11960_v61 = vld [vmem:[#allocation2 + $0x5c] ss:$0 sps:$4 sm:$0x11]   ;;  %v4396_v40 = vrot.slane %v11982_v53, 1  ;;  %v4207_v30 = vshrl.u32 %v11926_v9, 16 }
 0x298   : > { %v4374_v28 = vsel %vm694_vm1, %v4372_v36, %v4373_v18  ;;  %v11965_v5 = vld [vmem:[#allocation2 + $0x68] ss:$0 sps:$4 sm:$0x11]   ;;  %v4188_v20 = vor.u32 %v4187_v32, %v4183_v23  ;;  %v4192_v17 = vrot.slane %v4190_v26, 1  ;;  %v4387_v59 = vrot.slane %v11958_v33, 1 }
 0x299   : > { %v4861_v21 = vsel %vm485_vm0, %v4856_v29, %v4860_v37  ;;  %v4197_v29 = vshll.u32 %v11921_v31, 16  ;;  %v9917_v37 = vld [vmem:[#allocation3 + $0x1a8] sm:$0xff]   ;;  %v4391_v14 = vrot.slane %v11965_v5, 1  ;;  %v9923_v18 = vld [vmem:[#allocation3 + $0x1b0] sm:$0xff]   ;;  %v4221_v13 = vshll.u32 %v11939_v39, 16 }
 0x29a   : > { %v4193_v41 = vsel %vm485_vm0, %v4188_v20, %v4192_v17  ;;  %v11999_v44 = vld [vmem:[#allocation2 + $0x84] sm:$0xff]   ;;  %v12001_v24 = vld [vmem:[#allocation2 + $0x8c] ss:$0 sps:$4 sm:$0x11]   ;;  %v4226_v23 = vshll.u32 %v11941_v50, 16  ;;  %v4233_v17 = vshll.u32 %v11944_v47, 16 }
 0x29b   : > { %v4199_v36 = vrot.slane %v4197_v29, 1  ;;  %v12023_v29 = vld [vmem:[#allocation2 + $0xa8] sm:$0xff]  }
 0x29c   : > { %v12030_v50 = vld [vmem:[#allocation2 + $0x24] sm:$0xff]  }
 0x29d   : > { %5280 = vmatmul.mubr.bf16.gmra.mrb[216].mxu0 %v9864_v3  ;;  %v9902_v3 = vld [vmem:[#allocation3 + $0x1d8] sm:$0xff]  }
 0x29e   : > { %5287 = vmatprep.mubr.bf16.mxu0 %v4861_v21  ;;  %9177 = vmatmul.mubr.bf16.vlgmr.msra.gmra.mrb[96].mxu1 %v4371_v63  ;;  %v4388_v21 = vrot.slane %v11960_v61, 1  ;;  %v4202_v63 = vshll.u32 %v11923_v51, 16  ;;  %v11987_v51 = vld [vmem:[#allocation3 + $0x200] sm:$0xff]  }
 0x29f   : > { %9180 = vmatprep.mubr.bf16.mxu1 %v4374_v28  ;;  %8833 = vmatpush3.bf16.msra.mxu1 %v9886_v27  ;;  %v9926_v27 = vld [vmem:[#allocation3 + $0x1f8] sm:$0xff]  }
 0x2a0   : > { %8834 = vmatprep.subr.bf16.mxu1 %v9890_v45  ;;  %v4195_v45 = vshrl.u32 %v11921_v31, 16  ;;  %v4389_v16 = vsel %vm694_vm1, %v4387_v59, %v4388_v21  ;;  %v11979_v28 = vld [vmem:[#allocation2 + $0x74] ss:$0 sps:$4 sm:$0x11]   ;;  %v4204_v56 = vrot.slane %v4202_v63, 1  ;;  %v4228_v59 = vrot.slane %v4226_v23, 1 }
 0x2a1   : > { %v4394_v2 = vrot.slane %v11979_v28, 1  ;;  %v4235_v63 = vrot.slane %v4233_v17, 1  ;;  %v6129_v17 = vshrl.u32 %v12030_v50, 16 }
 0x2a3   : > { %8835 = vmatpush3.bf16.msra.mxu1 %v9893_v1  ;;  %v11984_v1 = vld [vmem:[#allocation2 + $0x80] ss:$0 sps:$4 sm:$0x11]  }
 0x2a4   : > { %8836 = vmatprep.subr.bf16.mxu1 %v9896_v34  ;;  %v4200_v34 = vor.u32 %v4199_v36, %v4195_v45 }
 0x2a5   : > { %5288 = vmatmul.mubr.bf16.gmra.mrb[220].mxu0 %v9871_v22  ;;  %v4384_v22 = vrot.slane %v11944_v47, 1 }
 0x2a6   : > { %5633 = vmatprep.mubr.bf16.mxu0 %v4169_v25  ;;  %9181 = vmatmul.mubr.bf16.gmra.mrb[100].mxu1 %v4377_v43  ;;  %v4209_v25 = vshll.u32 %v11926_v9, 16  ;;  %v4214_v43 = vshll.u32 %v11928_v15, 16  ;;  %v4399_v15 = vrot.slane %v11999_v44, 1 }
 0x2a7   : > { %9184 = vmatprep.mubr.bf16.mxu1 %v4380_v35  ;;  %8837 = vmatpush3.bf16.msra.mxu1 %v9899_v54  ;;  %v4397_v54 = vrot.slane %v11984_v1, 1  ;;  %v4395_v35 = vsel %vm694_vm1, %v4393_v60, %v4394_v2 }
 0x2a8   : > { %8838 = vmatprep.subr.bf16.mxu1 %v9902_v3  ;;  %v4205_v3 = vsel %vm485_vm0, %v4200_v34, %v4204_v56  ;;  %v4211_v7 = vrot.slane %v4209_v25, 1  ;;  %v4216_v55 = vrot.slane %v4214_v43, 1  ;;  %v4238_v34 = vshll.u32 %v11946_v38, 16 }
 0x2aa   : > { %v4212_v62 = vor.u32 %v4211_v7, %v4207_v30  ;;  %v4245_v7 = vshll.u32 %v11958_v33, 16 }
 0x2ab   : > { %8839 = vmatpush3.bf16.msra.mxu1 %v9905_v11  ;;  %v12004_v11 = vld [vmem:[#allocation2 + $0x90] sm:$0xff]  }
 0x2ac   : > { %8840 = vmatprep.subr.bf16.mxu1 %v9908_v0  ;;  %v12006_v0 = vld [vmem:[#allocation2 + $0x98] ss:$0 sps:$4 sm:$0x11]   ;;  %v4217_v32 = vsel %vm485_vm0, %v4212_v62, %v4216_v55 }
 0x2ad   : > { %5634 = vmatmul.mubr.bf16.vlgmr.msra.gmra.mrb[224].mxu0 %v11897_v48  ;;  %v4386_v48 = vsel %vm694_vm1, %v4384_v22, %v4385_v46  ;;  %v4400_v22 = vrot.slane %v12001_v24, 1  ;;  %v4402_v46 = vrot.slane %v12004_v11, 1 }
 0x2ae   : > { %5641 = vmatprep.mubr.bf16.mxu0 %v4181_v8  ;;  %9185 = vmatmul.mubr.bf16.gmra.mrb[104].mxu1 %v4383_v49  ;;  %v4403_v8 = vrot.slane %v12006_v0, 1  ;;  %v12018_v49 = vld [vmem:[#allocation2 + $0x9c] sm:$0xff]  }
 0x2af   : > { %9188 = vmatprep.mubr.bf16.mxu1 %v4386_v48  ;;  %8841 = vmatpush3.bf16.msra.mxu1 %v9911_v10  ;;  %v4223_v10 = vrot.slane %v4221_v13, 1  ;;  %v4401_v26 = vsel %vm694_vm1, %v4399_v15, %v4400_v22  ;;  %v12020_v48 = vld [vmem:[#allocation2 + $0xa4] ss:$0 sps:$4 sm:$0x11]   ;;  %v4405_v21 = vrot.slane %v12018_v49, 1  ;;  %v6131_v15 = vshll.u32 %v12030_v50, 16 }
 0x2b0   : > { %8842 = vmatprep.subr.bf16.mxu1 %v9914_v42  ;;  %v4219_v42 = vshrl.u32 %v11939_v39, 16  ;;  %v4404_v20 = vsel %vm694_vm1, %v4402_v46, %v4403_v8  ;;  %v4247_v46 = vrot.slane %v4245_v7, 1  ;;  %v12088_v7 = vld [vmem:[#allocation2 + $0x44] ss:$0 sps:$4 sm:$0x11]  }
 0x2b3   : > { %8843 = vmatpush3.bf16.msra.mxu1 %v9917_v37  ;;  %v12027_v37 = vld [vmem:[#allocation2 + $0x18] sm:$0xff]  }
 0x2b4   : > { %8844 = vmatprep.subr.bf16.mxu1 %v9920_v12  ;;  %v4224_v12 = vor.u32 %v4223_v10, %v4219_v42  ;;  %v6324_v56 = vrot.slane %v12027_v37, 1  ;;  %v6117_v30 = vshrl.u32 %v12027_v37, 16  ;;  %v4250_v10 = vshll.u32 %v11960_v61, 16 }
 0x2b5   : > { %5642 = vmatmul.mubr.bf16.gmra.mrb[228].mxu0 %v11904_v57  ;;  %v4392_v57 = vsel %vm694_vm1, %v4390_v52, %v4391_v14  ;;  %v4406_v52 = vrot.slane %v12020_v48, 1  ;;  %v9929_v14 = vld [vmem:[#allocation2 + $0x20] ss:$0 sps:$4 sm:$0x11]  }
 0x2b6   : > { %5649 = vmatprep.mubr.bf16.mxu0 %v4193_v41  ;;  %9189 = vmatmul.mubr.bf16.gmra.mrb[108].mxu1 %v4389_v16  ;;  %v4408_v41 = vrot.slane %v12023_v29, 1  ;;  %v4229_v45 = vsel %vm485_vm0, %v4224_v12, %v4228_v59  ;;  %v4231_v16 = vshrl.u32 %v11944_v47, 16  ;;  %v6325_v60 = vrot.slane %v9929_v14, 1 }
 0x2b7   : > { %9192 = vmatprep.mubr.bf16.mxu1 %v4392_v57  ;;  %8845 = vmatpush3.bf16.msra.mxu1 %v9923_v18  ;;  %v6119_v18 = vshll.u32 %v12027_v37, 16  ;;  %v12040_v57 = vld [vmem:[#allocation2 + $0xb4] sm:$0xff]   ;;  %v4407_v25 = vsel %vm694_vm1, %v4405_v21, %v4406_v52  ;;  %v6124_v43 = vshll.u32 %v9929_v14, 16  ;;  %v4252_v21 = vrot.slane %v4250_v10, 1 }
 0x2b8   : > { %8846 = vmatprep.subr.bf16.mxu1 %v9926_v27  ;;  %v9932_v27 = vld [vmem:[#allocation2 + $0x2c] ss:$0 sps:$4 sm:$0x11]   ;;  %v12051_v38 = vsel %vm694_vm1, %v6324_v56, %v6325_v60  ;;  %v4411_v62 = vrot.slane %v12040_v57, 1  ;;  %v4269_v56 = vshll.u32 %v11977_v19, 16 }
 0x2b9   : > { %v6121_v2 = vrot.slane %v6119_v18, 1  ;;  %v6126_v8 = vrot.slane %v6124_v43, 1  ;;  %v6136_v59 = vshll.u32 %v9932_v27, 16  ;;  %v12073_v18 = vld [vmem:[#allocation2 + $0x38] ss:$0 sps:$4 sm:$0x11]  }
 0x2ba   : > { %v4267_v43 = vshrl.u32 %v11977_v19, 16 }
 0x2bb   : > { %8847 = vmatpush3.bf16.msra.mxu1 %v9927_v58  ;;  %v12044_v58 = vld [vmem:[#allocation2 + $0xbc] ss:$0 sps:$4 sm:$0x11]   ;;  %v6122_v55 = vor.u32 %v6121_v2, %v6117_v30  ;;  %v9940_v2 = vld [vmem:[#allocation3 + $0x210] sm:$0xff]   ;;  %v9945_v30 = vld [vmem:[#allocation3 + $0x218] sm:$0xff]  }
 0x2bc   : > { %9208 = vmatprep.subr.bf16.mxu1 %v11987_v51  ;;  %v4412_v13 = vrot.slane %v12044_v58, 1 }
 0x2bd   : > { %5650 = vmatmul.mubr.bf16.gmra.mrb[232].mxu0 %v11910_v4  ;;  %v4398_v4 = vsel %vm694_vm1, %v4396_v40, %v4397_v54  ;;  %v6327_v40 = vrot.slane %v12030_v50, 1  ;;  %v6328_v54 = vrot.slane %v9932_v27, 1  ;;  %v6127_v23 = vsel %vm485_vm0, %v6122_v55, %v6126_v8  ;;  %v9950_v8 = vld [vmem:[#allocation3 + $0x220] sm:$0xff]  }
 0x2be   : > { %5657 = vmatprep.mubr.bf16.mxu0 %v4205_v3  ;;  %9193 = vmatmul.mubr.bf16.gmra.mrb[112].mxu1 %v4395_v35  ;;  %v4236_v3 = vor.u32 %v4235_v63, %v4231_v16  ;;  %v4413_v42 = vsel %vm694_vm1, %v4411_v62, %v4412_v13  ;;  %v4255_v63 = vshrl.u32 %v11963_v6, 16  ;;  %v4262_v16 = vshll.u32 %v11965_v5, 16 }
 0x2bf   : > { %9196 = vmatprep.mubr.bf16.mxu1 %v4398_v4  ;;  %v12055_v35 = vsel %vm694_vm1, %v6327_v40, %v6328_v54  ;;  %v4240_v4 = vrot.slane %v4238_v34, 1 }
 0x2c0   : > { %v4264_v5 = vrot.slane %v4262_v16, 1 }
 0x2c1   : > { %v4241_v22 = vsel %vm485_vm0, %v4236_v3, %v4240_v4  ;;  %v4271_v3 = vrot.slane %v4269_v56, 1  ;;  %v4274_v4 = vshll.u32 %v11979_v28, 16 }
 0x2c3   : > { %v4272_v55 = vor.u32 %v4271_v3, %v4267_v43  ;;  %v4298_v3 = vshll.u32 %v12001_v24, 16 }
 0x2c5   : > { %5658 = vmatmul.mubr.bf16.gmra.mrb[236].mxu0 %v11921_v31  ;;  %v12025_v31 = vld [vmem:[#allocation2 + $0xb0] ss:$0 sps:$4 sm:$0x11]  }
 0x2c6   : > { %5665 = vmatprep.mubr.bf16.mxu0 %v4217_v32  ;;  %9197 = vmatmul.mubr.bf16.gmra.mrb[116].mxu1 %v4401_v26  ;;  %v4409_v36 = vrot.slane %v12025_v31, 1  ;;  %v4243_v32 = vshrl.u32 %v11958_v33, 16  ;;  %v6133_v26 = vrot.slane %v6131_v15, 1  ;;  %v4281_v15 = vshll.u32 %v11982_v53, 16 }
 0x2c7   : > { %9200 = vmatprep.mubr.bf16.mxu1 %v4404_v20  ;;  %v12066_v20 = vld [vmem:[#allocation2 + $0x30] sm:$0xff]  }
 0x2c8   : > { %v4248_v12 = vor.u32 %v4247_v46, %v4243_v32  ;;  %v6134_v52 = vor.u32 %v6133_v26, %v6129_v17  ;;  %v6143_v14 = vshll.u32 %v12066_v20, 16  ;;  %v6141_v60 = vshrl.u32 %v12066_v20, 16  ;;  %v12102_v26 = vld [vmem:[#allocation2 + $0x50] ss:$0 sps:$4 sm:$0x11]  }
 0x2c9   : > { %v6160_v46 = vshll.u32 %v12088_v7, 16  ;;  %v4276_v32 = vrot.slane %v4274_v4, 1  ;;  %v4286_v17 = vshll.u32 %v11984_v1, 16  ;;  %v4305_v4 = vshll.u32 %v12004_v11, 16 }
 0x2ca   : > { %v4253_v61 = vsel %vm485_vm0, %v4248_v12, %v4252_v21  ;;  %v6145_v34 = vrot.slane %v6143_v14, 1  ;;  %v9955_v12 = vld [vmem:[#allocation3 + $0x228] sm:$0xff]   ;;  %v4293_v14 = vshll.u32 %v11999_v44, 16 }
 0x2cb   : > { %v4277_v10 = vsel %vm485_vm0, %v4272_v55, %v4276_v32  ;;  %v4288_v1 = vrot.slane %v4286_v17, 1  ;;  %v4300_v55 = vrot.slane %v4298_v3, 1  ;;  %v4307_v32 = vrot.slane %v4305_v4, 1  ;;  %v12160_v3 = vld [vmem:[#allocation2 + $0x78] sm:$0xff]  }
 0x2cc   : > { %v6146_v40 = vor.u32 %v6145_v34, %v6141_v60  ;;  %v4295_v60 = vrot.slane %v4293_v14, 1  ;;  %v4317_v14 = vshll.u32 %v12018_v49, 16 }
 0x2cd   : > { %5666 = vmatmul.mubr.bf16.gmra.mrb[240].mxu0 %v11926_v9  ;;  %v4410_v9 = vsel %vm694_vm1, %v4408_v41, %v4409_v36  ;;  %v6138_v36 = vrot.slane %v6136_v59, 1 }
 0x2ce   : > { %5673 = vmatprep.mubr.bf16.mxu0 %v4229_v45  ;;  %9201 = vmatmul.mubr.bf16.gmra.mrb[120].mxu1 %v4407_v25  ;;  %v9935_v45 = vld [vmem:[#allocation3 + $0x208] sm:$0xff]  }
 0x2cf   : > { %9204 = vmatprep.mubr.bf16.mxu1 %v4410_v9  ;;  %v6139_v27 = vsel %vm485_vm0, %v6134_v52, %v6138_v36  ;;  %v12079_v25 = vld [vmem:[#allocation2 + $0x3c] sm:$0xff]   ;;  %v6148_v9 = vshll.u32 %v12073_v18, 16  ;;  %v6172_v36 = vshll.u32 %v12102_v26, 16 }
 0x2d5   : > { %5674 = vmatmul.mubr.bf16.gmra.mrb[244].mxu0 %v11939_v39  ;;  %v4257_v39 = vshll.u32 %v11963_v6, 16 }
 0x2d6   : > { %5681 = vmatprep.mubr.bf16.mxu0 %v4241_v22  ;;  %9205 = vmatmul.mubr.bf16.gmra.mrb[124].mxu1 %v4413_v42  ;;  %v6153_v22 = vshrl.u32 %v12079_v25, 16  ;;  %v4283_v42 = vrot.slane %v4281_v15, 1 }
 0x2d7   : > { %6613 = vmatprep.mubr.bf16.mxu1 %v6127_v23  ;;  %v4259_v41 = vrot.slane %v4257_v39, 1  ;;  %v6162_v23 = vrot.slane %v6160_v46, 1  ;;  %v4279_v39 = vshrl.u32 %v11982_v53, 16 }
 0x2d9   : > { %v4284_v52 = vor.u32 %v4283_v42, %v4279_v39  ;;  %v4310_v39 = vshll.u32 %v12006_v0, 16 }
 0x2db   : > { %v4289_v56 = vsel %vm485_vm0, %v4284_v52, %v4288_v1 }
 0x2dd   : > { %5682 = vmatmul.mubr.bf16.gmra.mrb[248].mxu0 %v11944_v47  ;;  %v4260_v47 = vor.u32 %v4259_v41, %v4255_v63 }
 0x2de   : > { %5689 = vmatprep.mubr.bf16.mxu0 %v4253_v61  ;;  %6614 = vmatmul.mubr.bf16.vlgmr.msra.gmra.mrb[128].mxu1 %v12027_v37  ;;  %v6155_v37 = vshll.u32 %v12079_v25, 16 }
 0x2df   : > { %6621 = vmatprep.mubr.bf16.mxu1 %v6139_v27  ;;  %9209 = vmatpush3.bf16.msra.mxu1 %v11987_v51  ;;  %v4265_v54 = vsel %vm485_vm0, %v4260_v47, %v4264_v5  ;;  %v6150_v51 = vrot.slane %v6148_v9, 1 }
 0x2e0   : > { %9210 = vmatprep.subr.bf16.mxu1 %v9935_v45  ;;  %v6157_v13 = vrot.slane %v6155_v37, 1  ;;  %v9965_v37 = vld [vmem:[#allocation3 + $0x238] sm:$0xff]  }
 0x2e1   : > { %v6151_v62 = vsel %vm485_vm0, %v6146_v40, %v6150_v51  ;;  %v12120_v40 = vld [vmem:[#allocation2 + $0x5c] ss:$0 sps:$4 sm:$0x11]  }
 0x2e2   : > { %v6158_v28 = vor.u32 %v6157_v13, %v6153_v22  ;;  %v6184_v13 = vshll.u32 %v12120_v40, 16 }
 0x2e3   : > { %9211 = vmatpush3.bf16.msra.mxu1 %v9935_v45  ;;  %v9960_v45 = vld [vmem:[#allocation3 + $0x230] sm:$0xff]  }
 0x2e4   : > { %9212 = vmatprep.subr.bf16.mxu1 %v9940_v2  ;;  %v6163_v59 = vsel %vm485_vm0, %v6158_v28, %v6162_v23  ;;  %v12136_v23 = vld [vmem:[#allocation2 + $0x68] ss:$0 sps:$4 sm:$0x11]  }
 0x2e5   : > { %5690 = vmatmul.mubr.bf16.gmra.mrb[252].mxu0 %v11958_v33  ;;  %v12094_v33 = vld [vmem:[#allocation2 + $0x48] sm:$0xff]  }
 0x2e6   : > { %5697 = vmatprep.mubr.bf16.mxu0 %v4265_v54  ;;  %6622 = vmatmul.mubr.bf16.gmra.mrb[132].mxu1 %v12030_v50  ;;  %v6167_v50 = vshll.u32 %v12094_v33, 16  ;;  %v6165_v41 = vshrl.u32 %v12094_v33, 16  ;;  %v4291_v54 = vshrl.u32 %v11999_v44, 16 }
 0x2e7   : > { %6629 = vmatprep.mubr.bf16.mxu1 %v6151_v62  ;;  %9213 = vmatpush3.bf16.msra.mxu1 %v9940_v2  ;;  %v6174_v2 = vrot.slane %v6172_v36, 1  ;;  %v4312_v36 = vrot.slane %v4310_v39, 1 }
 0x2e8   : > { %9214 = vmatprep.subr.bf16.mxu1 %v9945_v30  ;;  %v6169_v21 = vrot.slane %v6167_v50, 1  ;;  %v4296_v43 = vor.u32 %v4295_v60, %v4291_v54  ;;  %v4322_v60 = vshll.u32 %v12020_v48, 16 }
 0x2ea   : > { %v6170_v27 = vor.u32 %v6169_v21, %v6165_v41  ;;  %v12144_v21 = vld [vmem:[#allocation2 + $0x6c] sm:$0xff]   ;;  %v6196_v41 = vshll.u32 %v12136_v23, 16 }
 0x2eb   : > { %9215 = vmatpush3.bf16.msra.mxu1 %v9945_v30  ;;  %v12126_v30 = vld [vmem:[#allocation2 + $0x60] sm:$0xff]   ;;  %v6203_v0 = vshll.u32 %v12144_v21, 16  ;;  %v6201_v48 = vshrl.u32 %v12144_v21, 16 }
 0x2ec   : > { %9216 = vmatprep.subr.bf16.mxu1 %v9950_v8  ;;  %v6191_v46 = vshll.u32 %v12126_v30, 16 }
 0x2ed   : > { %5698 = vmatmul.mubr.bf16.gmra.mrb[0].mxu0 %v11963_v6  ;;  %v12108_v6 = vld [vmem:[#allocation2 + $0x54] sm:$0xff]   ;;  %v6205_v54 = vrot.slane %v6203_v0, 1 }
 0x2ee   : > { %5705 = vmatprep.mubr.bf16.mxu0 %v4277_v10  ;;  %6630 = vmatmul.mubr.bf16.gmra.mrb[136].mxu1 %v12066_v20  ;;  %v6179_v47 = vshll.u32 %v12108_v6, 16  ;;  %v6177_v62 = vshrl.u32 %v12108_v6, 16  ;;  %v6186_v10 = vrot.slane %v6184_v13, 1  ;;  %v4324_v13 = vrot.slane %v4322_v60, 1 }
 0x2ef   : > { %6637 = vmatprep.mubr.bf16.mxu1 %v6163_v59  ;;  %9217 = vmatpush3.bf16.msra.mxu1 %v9950_v8  ;;  %v4301_v8 = vsel %vm485_vm0, %v4296_v43, %v4300_v55  ;;  %v6193_v59 = vrot.slane %v6191_v46, 1  ;;  %v4329_v43 = vshll.u32 %v12023_v29, 16  ;;  %v6206_v55 = vor.u32 %v6205_v54, %v6201_v48 }
 0x2f0   : > { %9218 = vmatprep.subr.bf16.mxu1 %v9955_v12  ;;  %v6181_v51 = vrot.slane %v6179_v47, 1  ;;  %v12152_v47 = vld [vmem:[#allocation2 + $0x74] ss:$0 sps:$4 sm:$0x11]   ;;  %v4339_v60 = vshrl.u32 %v12040_v57, 16 }
 0x2f1   : > { %v8576_v61 = vpop.f32.mrb[160].mxu0 }
 0x2f2   : > { %v8577_v63 = vpop.f32.mrb[161].mxu0  ;;  %v6182_v22 = vor.u32 %v6181_v51, %v6177_v62  ;;  %v6208_v62 = vshll.u32 %v12152_v47, 16 }
 0x2f3   : > { %v12113_v16 = vadd.f32 %v8577_v63, %v8576_v61  ;;  %v8579_v34 = vpop.f32.mrb[162].mxu0  ;;  %9219 = vmatpush3.bf16.msra.mxu1 %v9955_v12  ;;  %v4303_v12 = vshrl.u32 %v12004_v11, 16  ;;  %v6189_v61 = vshrl.u32 %v12126_v30, 16  ;;  %v4319_v63 = vrot.slane %v4317_v14, 1 }
 0x2f4   : > { %v8580_v9 = vpop.f32.mrb[163].mxu0  ;;  %9220 = vmatprep.subr.bf16.mxu1 %v9960_v45  ;;  %v6210_v46 = vrot.slane %v6208_v62, 1  ;;  %v4341_v14 = vshll.u32 %v12040_v57, 16 }
 0x2f5   : > { %5706 = vmatmul.mubr.bf16.gmra.mrb[4].mxu0 %v11977_v19  ;;  %v12118_v5 = vadd.f32 %v8580_v9, %v8579_v34  ;;  %v6175_v19 = vsel %vm485_vm0, %v6170_v27, %v6174_v2  ;;  %v4308_v52 = vor.u32 %v4307_v32, %v4303_v12  ;;  %v6198_v34 = vrot.slane %v6196_v41, 1 }
 0x2f6   : > { %5713 = vmatprep.mubr.bf16.mxu0 %v4289_v56  ;;  %6638 = vmatmul.mubr.bf16.gmra.mrb[140].mxu1 %v12079_v25  ;;  %v4315_v56 = vshrl.u32 %v12018_v49, 16  ;;  %v4327_v32 = vshrl.u32 %v12023_v29, 16  ;;  %v6211_v12 = vsel %vm485_vm0, %v6206_v55, %v6210_v46  ;;  %v6213_v41 = vshrl.u32 %v12160_v3, 16 }
 0x2f7   : > { %6645 = vmatprep.mubr.bf16.mxu1 %v6175_v19  ;;  %9221 = vmatpush3.bf16.msra.mxu1 %v9960_v45  ;;  %v6194_v45 = vor.u32 %v6193_v59, %v6189_v61  ;;  %v4313_v1 = vsel %vm485_vm0, %v4308_v52, %v4312_v36 }
 0x2f8   : > { %9222 = vmatprep.subr.bf16.mxu1 %v9965_v37  ;;  %v4320_v19 = vor.u32 %v4319_v63, %v4315_v56  ;;  %v12188_v56 = vld [vmem:[#allocation2 + $0x8c] ss:$0 sps:$4 sm:$0x11]  }
 0x2fb   : > { %v8582_v15 = vpop.f32.mrb[164].mxu0  ;;  %9223 = vmatpush3.bf16.msra.mxu1 %v9965_v37  ;;  %v6199_v37 = vsel %vm485_vm0, %v6194_v45, %v6198_v34 }
 0x2fc   : > { %v8583_v24 = vpop.f32.mrb[165].mxu0 }
 0x2fd   : > { %5714 = vmatmul.mubr.bf16.gmra.mrb[8].mxu0 %v11982_v53  ;;  %v12134_v28 = vadd.f32 %v8583_v24, %v8582_v15  ;;  %v8585_v50 = vpop.f32.mrb[166].mxu0  ;;  %v6187_v53 = vsel %vm485_vm0, %v6182_v22, %v6186_v10  ;;  %v6215_v15 = vshll.u32 %v12160_v3, 16  ;;  %v4325_v24 = vsel %vm485_vm0, %v4320_v19, %v4324_v13  ;;  %v12194_v19 = vld [vmem:[#allocation2 + $0x90] sm:$0xff]  }
 0x2fe   : > { %5721 = vmatprep.mubr.bf16.mxu0 %v4301_v8  ;;  %v8586_v42 = vpop.f32.mrb[167].mxu0  ;;  %6646 = vmatmul.mubr.bf16.gmra.mrb[144].mxu1 %v12094_v33  ;;  %v4331_v22 = vrot.slane %v4329_v43, 1  ;;  %v12170_v8 = vld [vmem:[#allocation2 + $0x80] ss:$0 sps:$4 sm:$0x11]   ;;  %v6232_v13 = vshll.u32 %v12188_v56, 16 }
 0x2ff   : > { %v12140_v17 = vadd.f32 %v8586_v42, %v8585_v50  ;;  %6653 = vmatprep.mubr.bf16.mxu1 %v6187_v53  ;;  %v4334_v50 = vshll.u32 %v12025_v31, 16  ;;  %v6217_v39 = vrot.slane %v6215_v15, 1  ;;  %v12176_v53 = vld [vmem:[#allocation2 + $0x84] sm:$0xff]   ;;  %v6220_v31 = vshll.u32 %v12170_v8, 16 }
 0x300   : > { %v6225_v62 = vshrl.u32 %v12176_v53, 16 }
 0x301   : > { %v4336_v36 = vrot.slane %v4334_v50, 1  ;;  %v6218_v0 = vor.u32 %v6217_v39, %v6213_v41  ;;  %v6222_v34 = vrot.slane %v6220_v31, 1  ;;  %v12205_v50 = vld [vmem:[#allocation2 + $0x98] ss:$0 sps:$4 sm:$0x11]  }
 0x305   : > { %5722 = vmatmul.mubr.bf16.gmra.mrb[12].mxu0 %v11999_v44 }
 0x306   : > { %5729 = vmatprep.mubr.bf16.mxu0 %v4313_v1  ;;  %v8588_v27 = vpop.f32.mrb[168].mxu0  ;;  %6654 = vmatmul.mubr.bf16.gmra.mrb[148].mxu1 %v12108_v6  ;;  %v6227_v1 = vshll.u32 %v12176_v53, 16 }
 0x307   : > { %v8589_v9 = vpop.f32.mrb[169].mxu0  ;;  %6661 = vmatprep.mubr.bf16.mxu1 %v6199_v37 }
 0x308   : > { %v12157_v2 = vadd.f32 %v8589_v9, %v8588_v27  ;;  %v8591_v44 = vpop.f32.mrb[170].mxu0  ;;  %v4343_v27 = vrot.slane %v4341_v14, 1  ;;  %v4346_v9 = vshll.u32 %v12044_v58, 16  ;;  %v6229_v54 = vrot.slane %v6227_v1, 1 }
 0x309   : > { %v8592_v51 = vpop.f32.mrb[171].mxu0 }
 0x30a   : > { %v12163_v4 = vadd.f32 %v8592_v51, %v8591_v44  ;;  %v6223_v44 = vsel %vm485_vm0, %v6218_v0, %v6222_v34  ;;  %v4348_v55 = vrot.slane %v4346_v9, 1 }
 0x30d   : > { %5730 = vmatmul.mubr.bf16.gmra.mrb[16].mxu0 %v12004_v11  ;;  %v4332_v11 = vor.u32 %v4331_v22, %v4327_v32  ;;  %v6239_v22 = vshll.u32 %v12194_v19, 16  ;;  %v6234_v32 = vrot.slane %v6232_v13, 1 }
 0x30e   : > { %5737 = vmatprep.mubr.bf16.mxu0 %v4325_v24  ;;  %6662 = vmatmul.mubr.bf16.gmra.mrb[152].mxu1 %v12126_v30  ;;  %v6230_v24 = vor.u32 %v6229_v54, %v6225_v62 }
 0x30f   : > { %v8594_v10 = vpop.f32.mrb[172].mxu0  ;;  %6669 = vmatprep.mubr.bf16.mxu1 %v6211_v12  ;;  %v4337_v63 = vsel %vm485_vm0, %v4332_v11, %v4336_v36  ;;  %v12209_v12 = vld [vmem:[#allocation2 + $0x9c] sm:$0xff]  }
 0x310   : > { %v8595_v42 = vpop.f32.mrb[173].mxu0  ;;  %v6251_v36 = vshll.u32 %v12209_v12, 16 }
 0x311   : > { %v12178_v59 = vadd.f32 %v8595_v42, %v8594_v10  ;;  %v8597_v52 = vpop.f32.mrb[174].mxu0  ;;  %v6235_v10 = vsel %vm485_vm0, %v6230_v24, %v6234_v32  ;;  %v6241_v42 = vrot.slane %v6239_v22, 1 }
 0x312   : > { %v8598_v61 = vpop.f32.mrb[175].mxu0  ;;  %v6253_v34 = vrot.slane %v6251_v36, 1  ;;  %v12243_v36 = vld [vmem:[#allocation2 + $0xbc] ss:$0 sps:$4 sm:$0x11]  }
 0x313   : > { %v12183_v45 = vadd.f32 %v8598_v61, %v8597_v52  ;;  %v6237_v52 = vshrl.u32 %v12194_v19, 16 }
 0x315   : > { %5738 = vmatmul.mubr.bf16.gmra.mrb[20].mxu0 %v12018_v49  ;;  %v4344_v49 = vor.u32 %v4343_v27, %v4339_v60  ;;  %v6242_v31 = vor.u32 %v6241_v42, %v6237_v52  ;;  %v12223_v60 = vld [vmem:[#allocation2 + $0xa8] sm:$0xff]  }
 0x316   : > { %5745 = vmatprep.mubr.bf16.mxu0 %v4337_v63  ;;  %6670 = vmatmul.mubr.bf16.gmra.mrb[156].mxu1 %v12144_v21  ;;  %v12219_v63 = vld [vmem:[#allocation2 + $0xa4] ss:$0 sps:$4 sm:$0x11]   ;;  %v6261_v32 = vshrl.u32 %v12223_v60, 16 }
 0x317   : > { %6677 = vmatprep.mubr.bf16.mxu1 %v6223_v44  ;;  %v4349_v46 = vsel %vm485_vm0, %v4344_v49, %v4348_v55  ;;  %v6256_v44 = vshll.u32 %v12219_v63, 16 }
 0x318   : > { %v8600_v37 = vpop.f32.mrb[176].mxu0 }
 0x319   : > { %v8601_v51 = vpop.f32.mrb[177].mxu0  ;;  %v6258_v55 = vrot.slane %v6256_v44, 1  ;;  %v6280_v44 = vshll.u32 %v12243_v36, 16 }
 0x31a   : > { %v12196_v43 = vadd.f32 %v8601_v51, %v8600_v37  ;;  %v8603_v48 = vpop.f32.mrb[178].mxu0  ;;  %v6249_v37 = vshrl.u32 %v12209_v12, 16 }
 0x31b   : > { %v8604_v58 = vpop.f32.mrb[179].mxu0 }
 0x31c   : > { %v12200_v15 = vadd.f32 %v8604_v58, %v8603_v48  ;;  %v6254_v51 = vor.u32 %v6253_v34, %v6249_v37  ;;  %v6263_v48 = vshll.u32 %v12223_v60, 16  ;;  %v12232_v58 = vld [vmem:[#allocation2 + $0xb0] ss:$0 sps:$4 sm:$0x11]  }
 0x31d   : > { %5746 = vmatmul.mubr.bf16.gmra.mrb[24].mxu0 %v12023_v29  ;;  %v6244_v29 = vshll.u32 %v12205_v50, 16 }
 0x31e   : > { %5753 = vmatprep.mubr.bf16.mxu0 %v4349_v46  ;;  %6678 = vmatmul.mubr.bf16.gmra.mrb[160].mxu1 %v12160_v3  ;;  %v6259_v24 = vsel %vm485_vm0, %v6254_v51, %v6258_v55  ;;  %v6265_v22 = vrot.slane %v6263_v48, 1  ;;  %v12236_v46 = vld [vmem:[#allocation2 + $0xb4] sm:$0xff]  }
 0x31f   : > { %6685 = vmatprep.mubr.bf16.mxu1 %v6235_v10  ;;  %v6246_v1 = vrot.slane %v6244_v29, 1  ;;  %v6268_v10 = vshll.u32 %v12232_v58, 16  ;;  %v6275_v52 = vshll.u32 %v12236_v46, 16  ;;  %v6273_v37 = vshrl.u32 %v12236_v46, 16 }
 0x320   : > { %v8606_v39 = vpop.f32.mrb[180].mxu0 }
 0x321   : > { %v8607_v11 = vpop.f32.mrb[181].mxu0  ;;  %v6247_v27 = vsel %vm485_vm0, %v6242_v31, %v6246_v1  ;;  %v6270_v31 = vrot.slane %v6268_v10, 1  ;;  %v6277_v34 = vrot.slane %v6275_v52, 1 }
 0x322   : > { %v12213_v14 = vadd.f32 %v8607_v11, %v8606_v39  ;;  %v8609_v61 = vpop.f32.mrb[182].mxu0  ;;  %v6266_v11 = vor.u32 %v6265_v22, %v6261_v32  ;;  %v12256_v22 = vld [vmem:[#allocation2 + $0xc8] ss:$0 sps:$4 sm:$0x11]   ;;  %v12258_v32 = vld [vmem:[#allocation2 + $0xcc] sm:$0xff]  }
 0x323   : > { %v8610_v41 = vpop.f32.mrb[183].mxu0 }
 0x324   : > { %v12217_v0 = vadd.f32 %v8610_v41, %v8609_v61 }
 0x325   : > { %5754 = vmatmul.mubr.bf16.gmra.mrb[28].mxu0 %v12040_v57 }
 0x326   : > { %6686 = vmatmul.mubr.bf16.gmra.mrb[164].mxu1 %v12176_v53 }
 0x327   : > { %6693 = vmatprep.mubr.bf16.mxu1 %v6247_v27  ;;  %v6271_v27 = vsel %vm485_vm0, %v6266_v11, %v6270_v31  ;;  %v6299_v31 = vshll.u32 %v12258_v32, 16 }
 0x32a   : > { %v8612_v9 = vpop.f32.mrb[184].mxu0 }
 0x32b   : > { %v8613_v54 = vpop.f32.mrb[185].mxu0 }
 0x32c   : > { %v12227_v57 = vadd.f32 %v8613_v54, %v8612_v9  ;;  %v8615_v49 = vpop.f32.mrb[186].mxu0  ;;  %v12249_v9 = vld [vmem:[#allocation2 + $0xc0] sm:$0xff]  }
 0x32d   : > { %v8616_v62 = vpop.f32.mrb[187].mxu0  ;;  %v6287_v51 = vshll.u32 %v12249_v9, 16  ;;  %v6285_v52 = vshrl.u32 %v12249_v9, 16 }
 0x32e   : > { %v12230_v13 = vadd.f32 %v8616_v62, %v8615_v49  ;;  %6694 = vmatmul.mubr.bf16.gmra.mrb[168].mxu1 %v12194_v19  ;;  %v6278_v49 = vor.u32 %v6277_v34, %v6273_v37 }
 0x32f   : > { %6701 = vmatprep.mubr.bf16.mxu1 %v6259_v24  ;;  %v6282_v24 = vrot.slane %v6280_v44, 1  ;;  %v6289_v11 = vrot.slane %v6287_v51, 1 }
 0x333   : > { %v8618_v42 = vpop.f32.mrb[188].mxu0 }
 0x334   : > { %v8619_v39 = vpop.f32.mrb[189].mxu0 }
 0x335   : > { %v12241_v29 = vadd.f32 %v8619_v39, %v8618_v42  ;;  %v8621_v61 = vpop.f32.mrb[190].mxu0  ;;  %v6283_v39 = vsel %vm485_vm0, %v6278_v49, %v6282_v24 }
 0x336   : > { %v8622_v41 = vpop.f32.mrb[191].mxu0  ;;  %6702 = vmatmul.mubr.bf16.gmra.mrb[172].mxu1 %v12209_v12 }
 0x337   : > { %v12245_v1 = vadd.f32 %v8622_v41, %v8621_v61  ;;  %6709 = vmatprep.mubr.bf16.mxu1 %v6271_v27  ;;  %v6292_v61 = vshll.u32 %v12256_v22, 16  ;;  %v12266_v41 = vld [vmem:[#allocation2 + $0xd4] ss:$0 sps:$4 sm:$0x11]   ;;  %v6290_v27 = vor.u32 %v6289_v11, %v6285_v52 }
 0x339   : > { %12912 = vst [vmem:[#allocation19_spill] sm:$0xff] %v12245_v1  ;;  %v6294_v44 = vrot.slane %v6292_v61, 1 }
 0x33b   : > { %v8624_v54 = vpop.f32.mrb[192].mxu0 }
 0x33c   : > { %v8625_v48 = vpop.f32.mrb[193].mxu0 }
 0x33d   : > { %v12254_v62 = vadd.f32 %v8625_v48, %v8624_v54  ;;  %v8627_v55 = vpop.f32.mrb[194].mxu0  ;;  %v6297_v54 = vshrl.u32 %v12258_v32, 16  ;;  %v6301_v48 = vrot.slane %v6299_v31, 1 }
 0x33e   : > { %v8628_v10 = vpop.f32.mrb[195].mxu0  ;;  %6710 = vmatmul.mubr.bf16.gmra.mrb[176].mxu1 %v12223_v60 }
 0x33f   : > { %12913 = vst [vmem:[#allocation20_spill] sm:$0xff] %v12254_v62  ;;  %v12260_v42 = vadd.f32 %v8628_v10, %v8627_v55  ;;  %6717 = vmatprep.mubr.bf16.mxu1 %v6283_v39  ;;  %v6304_v55 = vshll.u32 %v12266_v41, 16  ;;  %v6295_v10 = vsel %vm485_vm0, %v6290_v27, %v6294_v44  ;;  %v6302_v11 = vor.u32 %v6301_v48, %v6297_v54 }
 0x341   : > { %12914 = vst [vmem:[#allocation21_spill] sm:$0xff] %v12260_v42  ;;  %v6306_v52 = vrot.slane %v6304_v55, 1 }
 0x343   : > { %v6307_v61 = vsel %vm485_vm0, %v6302_v11, %v6306_v52  ;;  %v6333_v52 = vrot.slane %v12079_v25, 1 }
 0x345   : > { %v8630_v34 = vpop.f32.mrb[196].mxu0 }
 0x346   : > { %v8631_v37 = vpop.f32.mrb[197].mxu0  ;;  %6718 = vmatmul.mubr.bf16.gmra.mrb[180].mxu1 %v12236_v46 }
 0x347   : > { %v12271_v49 = vadd.f32 %v8631_v37, %v8630_v34  ;;  %v8633_v51 = vpop.f32.mrb[198].mxu0  ;;  %6725 = vmatprep.mubr.bf16.mxu1 %v6295_v10 }
 0x348   : > { %v8634_v24 = vpop.f32.mrb[199].mxu0 }
 0x349   : > { %12915 = vst [vmem:[#allocation10_spill] sm:$0xff] %v12271_v49  ;;  %v12275_v39 = vadd.f32 %v8634_v24, %v8633_v51  ;;  %v6330_v51 = vrot.slane %v12066_v20, 1  ;;  %v6336_v20 = vrot.slane %v12094_v33, 1  ;;  %v6342_v33 = vrot.slane %v12126_v30, 1 }
 0x34a   : > { %v6348_v30 = vrot.slane %v12160_v3, 1  ;;  %v6354_v3 = vrot.slane %v12194_v19, 1 }
 0x34e   : > { %6726 = vmatmul.mubr.bf16.gmra.mrb[184].mxu1 %v12249_v9 }
 0x34f   : > { %6733 = vmatprep.mubr.bf16.mxu1 %v6307_v61  ;;  %v6334_v61 = vrot.slane %v12088_v7, 1  ;;  %v6339_v7 = vrot.slane %v12108_v6, 1 }
 0x350   : > { %v8636_v42 = vpop.f32.mrb[200].mxu0 }
 0x351   : > { %v8637_v31 = vpop.f32.mrb[201].mxu0 }
 0x352   : > { %v12279_v34 = vadd.f32 %v8637_v31, %v8636_v42  ;;  %v8639_v37 = vpop.f32.mrb[202].mxu0  ;;  %v6331_v42 = vrot.slane %v12073_v18, 1  ;;  %v6337_v18 = vrot.slane %v12102_v26, 1  ;;  %v6343_v26 = vrot.slane %v12136_v23, 1 }
 0x353   : > { %v8640_v49 = vpop.f32.mrb[203].mxu0  ;;  %v6349_v23 = vrot.slane %v12170_v8, 1  ;;  %v6355_v8 = vrot.slane %v12205_v50, 1  ;;  %v6360_v50 = vrot.slane %v12223_v60, 1  ;;  %v6364_v60 = vrot.slane %v12243_v36, 1 }
 0x354   : > { %v12281_v62 = vadd.f32 %v8640_v49, %v8639_v37  ;;  %v6332_v49 = vsel %vm694_vm1, %v6330_v51, %v6331_v42  ;;  %v6340_v42 = vrot.slane %v12120_v40, 1  ;;  %v6345_v40 = vrot.slane %v12144_v21, 1 }
 0x355   : > { %v6369_v36 = vrot.slane %v12258_v32, 1 }
 0x356   : > { %6734 = vmatmul.mubr.bf16.gmra.mrb[188].mxu1 %v12258_v32 }
 0x357   : > { %9224 = vmatprep.mubr.bf16.mxu1 %v12051_v38 }
 0x358   : > { %v8642_v1 = vpop.f32.mrb[204].mxu0 }
 0x359   : > { %v8643_v27 = vpop.f32.mrb[205].mxu0 }
 0x35a   : > { %v12285_v44 = vadd.f32 %v8643_v27, %v8642_v1  ;;  %v8645_v54 = vpop.f32.mrb[206].mxu0  ;;  %v6338_v27 = vsel %vm694_vm1, %v6336_v20, %v6337_v18  ;;  %v6346_v20 = vrot.slane %v12152_v47, 1  ;;  %v6351_v47 = vrot.slane %v12176_v53, 1 }
 0x35b   : > { %v8646_v48 = vpop.f32.mrb[207].mxu0  ;;  %v6357_v53 = vrot.slane %v12209_v12, 1 }
 0x35c   : > { %v12287_v55 = vadd.f32 %v8646_v48, %v8645_v54 }
 0x35e   : > { %9225 = vmatmul.mubr.bf16.vlgmr.msra.gmra.mrb[96].mxu1 %v12055_v35  ;;  %v6335_v35 = vsel %vm694_vm1, %v6333_v52, %v6334_v61 }
 0x35f   : > { %9228 = vmatprep.mubr.bf16.mxu1 %v6332_v49  ;;  %v6341_v49 = vsel %vm694_vm1, %v6339_v7, %v6340_v42  ;;  %v6352_v7 = vrot.slane %v12188_v56, 1  ;;  %v6358_v56 = vrot.slane %v12219_v63, 1 }
 0x360   : > { %v8648_v24 = vpop.f32.mrb[208].mxu0 }
 0x361   : > { %v8649_v10 = vpop.f32.mrb[209].mxu0 }
 0x362   : > { %v12293_v11 = vadd.f32 %v8649_v10, %v8648_v24  ;;  %v8651_v38 = vpop.f32.mrb[210].mxu0 }
 0x363   : > { %v8652_v1 = vpop.f32.mrb[211].mxu0 }
 0x364   : > { %v12297_v31 = vadd.f32 %v8652_v1, %v8651_v38  ;;  %v6344_v38 = vsel %vm694_vm1, %v6342_v33, %v6343_v26  ;;  %v6353_v33 = vsel %vm694_vm1, %v6351_v47, %v6352_v7 }
 0x366   : > { %9229 = vmatmul.mubr.bf16.gmra.mrb[100].mxu1 %v6335_v35  ;;  %v6347_v35 = vsel %vm694_vm1, %v6345_v40, %v6346_v20  ;;  %v6361_v40 = vrot.slane %v12232_v58, 1 }
 0x367   : > { %9232 = vmatprep.mubr.bf16.mxu1 %v6338_v27  ;;  %v6350_v27 = vsel %vm694_vm1, %v6348_v30, %v6349_v23  ;;  %v6359_v30 = vsel %vm694_vm1, %v6357_v53, %v6358_v56 }
 0x368   : > { %v8654_v37 = vpop.f32.mrb[212].mxu0 }
 0x369   : > { %v8655_v54 = vpop.f32.mrb[213].mxu0 }
 0x36a   : > { %v12303_v48 = vadd.f32 %v8655_v54, %v8654_v37  ;;  %v8657_v51 = vpop.f32.mrb[214].mxu0 }
 0x36b   : > { %v8658_v25 = vpop.f32.mrb[215].mxu0 }
 0x36c   : > { %v12307_v24 = vadd.f32 %v8658_v25, %v8657_v51 }
 0x36e   : > { %9233 = vmatmul.mubr.bf16.gmra.mrb[104].mxu1 %v6341_v49  ;;  %v6356_v49 = vsel %vm694_vm1, %v6354_v3, %v6355_v8 }
 0x36f   : > { %9236 = vmatprep.mubr.bf16.mxu1 %v6344_v38 }
 0x370   : > { %v8660_v10 = vpop.f32.mrb[216].mxu0 }
 0x371   : > { %v8661_v1 = vpop.f32.mrb[217].mxu0 }
 0x372   : > { %v12313_v52 = vadd.f32 %v8661_v1, %v8660_v10  ;;  %v8663_v61 = vpop.f32.mrb[218].mxu0 }
 0x373   : > { %v8664_v6 = vpop.f32.mrb[219].mxu0 }
 0x374   : > { %v12317_v18 = vadd.f32 %v8664_v6, %v8663_v61 }
 0x376   : > { %9237 = vmatmul.mubr.bf16.gmra.mrb[108].mxu1 %v6347_v35  ;;  %v6362_v35 = vsel %vm694_vm1, %v6360_v50, %v6361_v40 }
 0x377   : > { %9240 = vmatprep.mubr.bf16.mxu1 %v6350_v27  ;;  %v6363_v27 = vrot.slane %v12236_v46, 1 }
 0x378   : > { %v8666_v37 = vpop.f32.mrb[220].mxu0 }
 0x379   : > { %v8667_v54 = vpop.f32.mrb[221].mxu0  ;;  %v6365_v47 = vsel %vm694_vm1, %v6363_v27, %v6364_v60 }
 0x37a   : > { %v12323_v51 = vadd.f32 %v8667_v54, %v8666_v37  ;;  %v8669_v25 = vpop.f32.mrb[222].mxu0  ;;  %v6366_v54 = vrot.slane %v12249_v9, 1 }
 0x37b   : > { %v8670_v21 = vpop.f32.mrb[223].mxu0 }
 0x37c   : > { %v12327_v42 = vadd.f32 %v8670_v21, %v8669_v25  ;;  %v6367_v25 = vrot.slane %v12256_v22, 1 }
 0x37e   : > { %9241 = vmatmul.mubr.bf16.gmra.mrb[112].mxu1 %v6353_v33  ;;  %v6368_v3 = vsel %vm694_vm1, %v6366_v54, %v6367_v25 }
 0x37f   : > { %9244 = vmatprep.mubr.bf16.mxu1 %v6356_v49 }
 0x380   : > { %v8712_v26 = vpop.f32.mrb[224].mxu0 }
 0x381   : > { %v8713_v10 = vpop.f32.mrb[225].mxu0 }
 0x382   : > { %v8714_v38 = vadd.f32 %v8713_v10, %v8712_v26  ;;  %v8715_v1 = vpop.f32.mrb[226].mxu0 }
 0x383   : > { %v8716_v61 = vpop.f32.mrb[227].mxu0 }
 0x384   : > { %v12336_v6 = vadd.f32 %v8714_v38, %v12113_v16  ;;  %v8717_v19 = vadd.f32 %v8716_v61, %v8715_v1 }
 0x386   : > { %v12341_v20 = vadd.f32 %v8717_v19, %v12118_v5  ;;  %9245 = vmatmul.mubr.bf16.gmra.mrb[116].mxu1 %v6359_v30 }
 0x387   : > { %9248 = vmatprep.mubr.bf16.mxu1 %v6362_v35 }
 0x388   : > { %v8718_v23 = vpop.f32.mrb[228].mxu0 }
 0x389   : > { %v8719_v12 = vpop.f32.mrb[229].mxu0 }
 0x38a   : > { %v8720_v63 = vadd.f32 %v8719_v12, %v8718_v23  ;;  %v8721_v37 = vpop.f32.mrb[230].mxu0 }
 0x38b   : > { %v8722_v16 = vpop.f32.mrb[231].mxu0 }
 0x38c   : > { %v12348_v58 = vadd.f32 %v8720_v63, %v12134_v28  ;;  %v8723_v5 = vadd.f32 %v8722_v16, %v8721_v37  ;;  %v6370_v28 = vrot.slane %v12266_v41, 1 }
 0x38e   : > { %v12353_v21 = vadd.f32 %v8723_v5, %v12140_v17  ;;  %9249 = vmatmul.mubr.bf16.gmra.mrb[120].mxu1 %v6365_v47  ;;  %v6371_v26 = vsel %vm694_vm1, %v6369_v36, %v6370_v28 }
 0x38f   : > { %9252 = vmatprep.mubr.bf16.mxu1 %v6368_v3 }
 0x390   : > { %v8724_v7 = vpop.f32.mrb[232].mxu0 }
 0x391   : > { %v8725_v46 = vpop.f32.mrb[233].mxu0 }
 0x392   : > { %v8726_v8 = vadd.f32 %v8725_v46, %v8724_v7  ;;  %v8727_v33 = vpop.f32.mrb[234].mxu0 }
 0x393   : > { %v8728_v9 = vpop.f32.mrb[235].mxu0 }
 0x394   : > { %v12360_v22 = vadd.f32 %v8726_v8, %v12157_v2  ;;  %v8729_v17 = vadd.f32 %v8728_v9, %v8727_v33 }
 0x396   : > { %v12364_v49 = vadd.f32 %v8729_v17, %v12163_v4  ;;  %9253 = vmatmul.mubr.bf16.gmra.mrb[124].mxu1 %v6371_v26 }
 0x398   : > { %v8730_v10 = vpop.f32.mrb[236].mxu0 }
 0x399   : > { %v8731_v38 = vpop.f32.mrb[237].mxu0 }
 0x39a   : > { %v8732_v1 = vadd.f32 %v8731_v38, %v8730_v10  ;;  %v8733_v61 = vpop.f32.mrb[238].mxu0 }
 0x39b   : > { %v8734_v32 = vpop.f32.mrb[239].mxu0 }
 0x39c   : > { %v12367_v41 = vadd.f32 %v8732_v1, %v12178_v59  ;;  %v8735_v53 = vadd.f32 %v8734_v32, %v8733_v61 }
 0x39e   : > { %v12370_v56 = vadd.f32 %v8735_v53, %v12183_v45 }
 0x3a0   : > { %v8736_v2 = vpop.f32.mrb[240].mxu0 }
 0x3a1   : > { %v8737_v19 = vpop.f32.mrb[241].mxu0 }
 0x3a2   : > { %v8738_v50 = vadd.f32 %v8737_v19, %v8736_v2  ;;  %v8739_v40 = vpop.f32.mrb[242].mxu0  ;;  %v12916_v2 = vld [vmem:[#allocation19_spill] sm:$0xff] }
 0x3a3   : > { %v8740_v30 = vpop.f32.mrb[243].mxu0 }
 0x3a4   : > { %v12373_v4 = vadd.f32 %v8738_v50, %v12196_v43  ;;  %v8741_v23 = vadd.f32 %v8740_v30, %v8739_v40 }
 0x3a6   : > { %v12376_v35 = vadd.f32 %v8741_v23, %v12200_v15 }
 0x3a8   : > { %v8742_v12 = vpop.f32.mrb[244].mxu0 }
 0x3a9   : > { %v8743_v63 = vpop.f32.mrb[245].mxu0 }
 0x3aa   : > { %v8744_v59 = vadd.f32 %v8743_v63, %v8742_v12  ;;  %v8745_v37 = vpop.f32.mrb[246].mxu0 }
 0x3ab   : > { %v8746_v16 = vpop.f32.mrb[247].mxu0 }
 0x3ac   : > { %v12379_v45 = vadd.f32 %v8744_v59, %v12213_v14  ;;  %v8747_v27 = vadd.f32 %v8746_v16, %v8745_v37 }
 0x3ae   : > { %v12382_v60 = vadd.f32 %v8747_v27, %v12217_v0 }
 0x3b0   : > { %v8748_v5 = vpop.f32.mrb[248].mxu0 }
 0x3b1   : > { %v8749_v54 = vpop.f32.mrb[249].mxu0  ;;  %v8848_v7 = vpop.f32.mrb[128].mxu1 }
 0x3b2   : > { %v8750_v43 = vadd.f32 %v8749_v54, %v8748_v5  ;;  %v8751_v25 = vpop.f32.mrb[250].mxu0  ;;  %v8849_v46 = vpop.f32.mrb[129].mxu1  ;;  %v12917_v5 = vld [vmem:[#allocation20_spill] sm:$0xff] }
 0x3b3   : > { %v8752_v47 = vpop.f32.mrb[251].mxu0  ;;  %v8850_v36 = vadd.f32 %v8849_v46, %v8848_v7  ;;  %v8851_v28 = vpop.f32.mrb[130].mxu1 }
 0x3b4   : > { %v12385_v15 = vadd.f32 %v8750_v43, %v12227_v57  ;;  %v8753_v3 = vadd.f32 %v8752_v47, %v8751_v25  ;;  %v8852_v8 = vpop.f32.mrb[131].mxu1  ;;  %v12918_v47 = vld [vmem:[#allocation21_spill] sm:$0xff] }
 0x3b5   : > { %v8853_v33 = vadd.f32 %v8852_v8, %v8851_v28  ;;  %v12397_v50 = vadd.f32 %v12336_v6, %v8850_v36 }
 0x3b6   : > { %v12388_v14 = vadd.f32 %v8753_v3, %v12230_v13 }
 0x3b7   : > { %v12403_v12 = vadd.f32 %v12341_v20, %v8853_v33 }
 0x3b8   : > { %v8754_v0 = vpop.f32.mrb[252].mxu0 }
 0x3b9   : > { %v8755_v9 = vpop.f32.mrb[253].mxu0  ;;  %v8854_v38 = vpop.f32.mrb[132].mxu1 }
 0x3ba   : > { %v8756_v17 = vadd.f32 %v8755_v9, %v8754_v0  ;;  %v8757_v26 = vpop.f32.mrb[254].mxu0  ;;  %v8855_v61 = vpop.f32.mrb[133].mxu1 }
 0x3bb   : > { %v8758_v10 = vpop.f32.mrb[255].mxu0  ;;  %v8856_v32 = vadd.f32 %v8855_v61, %v8854_v38  ;;  %v8857_v53 = vpop.f32.mrb[134].mxu1 }
 0x3bc   : > { %v12391_v1 = vadd.f32 %v8756_v17, %v12241_v29  ;;  %v8759_v57 = vadd.f32 %v8758_v10, %v8757_v26  ;;  %v8858_v13 = vpop.f32.mrb[135].mxu1  ;;  %v12919_v17 = vld [vmem:[#allocation10_spill] sm:$0xff] }
 0x3bd   : > { %v8859_v40 = vadd.f32 %v8858_v13, %v8857_v53  ;;  %v12400_v30 = vadd.f32 %v12348_v58, %v8856_v32 }
 0x3be   : > { %v12394_v19 = vadd.f32 %v8759_v57, %v12916_v2 }
 0x3bf   : > { %v12406_v63 = vadd.f32 %v12353_v21, %v8859_v40 }
 0x3c0   : > { %v8760_v23 = vpop.f32.mrb[0].mxu0 }
 0x3c1   : > { %v8761_v29 = vpop.f32.mrb[1].mxu0  ;;  %v8860_v27 = vpop.f32.mrb[136].mxu1 }
 0x3c2   : > { %v8762_v59 = vadd.f32 %v8761_v29, %v8760_v23  ;;  %v8763_v37 = vpop.f32.mrb[2].mxu0  ;;  %v8861_v43 = vpop.f32.mrb[137].mxu1 }
 0x3c3   : > { %v8764_v16 = vpop.f32.mrb[3].mxu0  ;;  %v8862_v25 = vadd.f32 %v8861_v43, %v8860_v27  ;;  %v8863_v58 = vpop.f32.mrb[138].mxu1 }
 0x3c4   : > { %v12409_v54 = vadd.f32 %v8762_v59, %v12917_v5  ;;  %v8765_v6 = vadd.f32 %v8764_v16, %v8763_v37  ;;  %v8864_v20 = vpop.f32.mrb[139].mxu1 }
 0x3c5   : > { %v8865_v3 = vadd.f32 %v8864_v20, %v8863_v58  ;;  %v12415_v46 = vadd.f32 %v12360_v22, %v8862_v25 }
 0x3c6   : > { %v12412_v7 = vadd.f32 %v8765_v6, %v12918_v47 }
 0x3c7   : > { %v12418_v28 = vadd.f32 %v12364_v49, %v8865_v3 }
 0x3c8   : > { %v8766_v21 = vpop.f32.mrb[4].mxu0 }
 0x3c9   : > { %v8767_v36 = vpop.f32.mrb[5].mxu0  ;;  %v8866_v9 = vpop.f32.mrb[140].mxu1 }
 0x3ca   : > { %v8768_v8 = vadd.f32 %v8767_v36, %v8766_v21  ;;  %v8769_v33 = vpop.f32.mrb[6].mxu0  ;;  %v8867_v38 = vpop.f32.mrb[141].mxu1 }
 0x3cb   : > { %v8770_v0 = vpop.f32.mrb[7].mxu0  ;;  %v8868_v57 = vadd.f32 %v8867_v38, %v8866_v9  ;;  %v8869_v61 = vpop.f32.mrb[142].mxu1 }
 0x3cc   : > { %v12421_v26 = vadd.f32 %v8768_v8, %v12919_v17  ;;  %v8771_v10 = vadd.f32 %v8770_v0, %v8769_v33  ;;  %v8870_v22 = vpop.f32.mrb[143].mxu1 }
 0x3cd   : > { %v8871_v53 = vadd.f32 %v8870_v22, %v8869_v61  ;;  %v12427_v2 = vadd.f32 %v12367_v41, %v8868_v57 }
 0x3ce   : > { %v12424_v32 = vadd.f32 %v8771_v10, %v12275_v39 }
 0x3cf   : > { %v12430_v40 = vadd.f32 %v12370_v56, %v8871_v53 }
 0x3d0   : > { %v8772_v49 = vpop.f32.mrb[8].mxu0 }
 0x3d1   : > { %v8773_v13 = vpop.f32.mrb[9].mxu0  ;;  %v8872_v37 = vpop.f32.mrb[144].mxu1 }
 0x3d2   : > { %v8774_v23 = vadd.f32 %v8773_v13, %v8772_v49  ;;  %v8775_v29 = vpop.f32.mrb[10].mxu0  ;;  %v8873_v39 = vpop.f32.mrb[145].mxu1 }
 0x3d3   : > { %v8776_v59 = vpop.f32.mrb[11].mxu0  ;;  %v8874_v5 = vadd.f32 %v8873_v39, %v8872_v37  ;;  %v8875_v6 = vpop.f32.mrb[146].mxu1 }
 0x3d4   : > { %v12433_v16 = vadd.f32 %v8774_v23, %v12279_v34  ;;  %v8777_v27 = vadd.f32 %v8776_v59, %v8775_v29  ;;  %v8876_v41 = vpop.f32.mrb[147].mxu1 }
 0x3d5   : > { %v8877_v25 = vadd.f32 %v8876_v41, %v8875_v6  ;;  %v12439_v58 = vadd.f32 %v12373_v4, %v8874_v5 }
 0x3d6   : > { %v12436_v43 = vadd.f32 %v8777_v27, %v12281_v62 }
 0x3d7   : > { %v12442_v20 = vadd.f32 %v12376_v35, %v8877_v25 }
 0x3d8   : > { %v8778_v56 = vpop.f32.mrb[12].mxu0 }
 0x3d9   : > { %v8779_v47 = vpop.f32.mrb[13].mxu0  ;;  %v8878_v36 = vpop.f32.mrb[148].mxu1 }
 0x3da   : > { %v8780_v3 = vadd.f32 %v8779_v47, %v8778_v56  ;;  %v8781_v34 = vpop.f32.mrb[14].mxu0  ;;  %v8879_v62 = vpop.f32.mrb[149].mxu1 }
 0x3db   : > { %v8782_v21 = vpop.f32.mrb[15].mxu0  ;;  %v8880_v0 = vadd.f32 %v8879_v62, %v8878_v36  ;;  %v8881_v9 = vpop.f32.mrb[150].mxu1 }
 0x3dc   : > { %v12445_v8 = vadd.f32 %v8780_v3, %v12285_v44  ;;  %v8783_v33 = vadd.f32 %v8782_v21, %v8781_v34  ;;  %v8882_v4 = vpop.f32.mrb[151].mxu1 }
 0x3dd   : > { %v8883_v10 = vadd.f32 %v8882_v4, %v8881_v9  ;;  %v12451_v38 = vadd.f32 %v12379_v45, %v8880_v0 }
 0x3de   : > { %v12448_v17 = vadd.f32 %v8783_v33, %v12287_v55 }
 0x3df   : > { %v12454_v61 = vadd.f32 %v12382_v60, %v8883_v10 }
 0x3e0   : > { %v8784_v35 = vpop.f32.mrb[16].mxu0 }
 0x3e1   : > { %v8785_v57 = vpop.f32.mrb[17].mxu0  ;;  %v8884_v49 = vpop.f32.mrb[152].mxu1 }
 0x3e2   : > { %v8786_v22 = vadd.f32 %v8785_v57, %v8784_v35  ;;  %v8787_v44 = vpop.f32.mrb[18].mxu0  ;;  %v8885_v55 = vpop.f32.mrb[153].mxu1 }
 0x3e3   : > { %v8788_v53 = vpop.f32.mrb[19].mxu0  ;;  %v8886_v29 = vadd.f32 %v8885_v55, %v8884_v49  ;;  %v8887_v59 = vpop.f32.mrb[154].mxu1 }
 0x3e4   : > { %v12457_v13 = vadd.f32 %v8786_v22, %v12293_v11  ;;  %v8789_v23 = vadd.f32 %v8788_v53, %v8787_v44  ;;  %v8888_v45 = vpop.f32.mrb[155].mxu1 }
 0x3e5   : > { %v8889_v27 = vadd.f32 %v8888_v45, %v8887_v59  ;;  %v12463_v39 = vadd.f32 %v12385_v15, %v8886_v29 }
 0x3e6   : > { %v12460_v37 = vadd.f32 %v8789_v23, %v12297_v31 }
 0x3e7   : > { %v12466_v6 = vadd.f32 %v12388_v14, %v8889_v27 }
 0x3e8   : > { %v8790_v60 = vpop.f32.mrb[20].mxu0 }
 0x3e9   : > { %v8791_v5 = vpop.f32.mrb[21].mxu0  ;;  %v8890_v56 = vpop.f32.mrb[156].mxu1 }
 0x3ea   : > { %v8792_v41 = vadd.f32 %v8791_v5, %v8790_v60  ;;  %v8793_v11 = vpop.f32.mrb[22].mxu0  ;;  %v8891_v31 = vpop.f32.mrb[157].mxu1 }
 0x3eb   : > { %v8794_v25 = vpop.f32.mrb[23].mxu0  ;;  %v8892_v34 = vadd.f32 %v8891_v31, %v8890_v56  ;;  %v8893_v21 = vpop.f32.mrb[158].mxu1 }
 0x3ec   : > { %v12469_v47 = vadd.f32 %v8792_v41, %v12303_v48  ;;  %v8795_v3 = vadd.f32 %v8794_v25, %v8793_v11  ;;  %v8894_v15 = vpop.f32.mrb[159].mxu1 }
 0x3ed   : > { %v8895_v33 = vadd.f32 %v8894_v15, %v8893_v21  ;;  %v12475_v62 = vadd.f32 %v12391_v1, %v8892_v34 }
 0x3ee   : > { %v12472_v36 = vadd.f32 %v8795_v3, %v12307_v24 }
 0x3ef   : > { %v12478_v9 = vadd.f32 %v12394_v19, %v8895_v33 }
 0x3f0   : > { %v8796_v14 = vpop.f32.mrb[24].mxu0 }
 0x3f1   : > { %v8797_v0 = vpop.f32.mrb[25].mxu0  ;;  %v8896_v35 = vpop.f32.mrb[160].mxu1 }
 0x3f2   : > { %v8798_v4 = vadd.f32 %v8797_v0, %v8796_v14  ;;  %v8799_v48 = vpop.f32.mrb[26].mxu0  ;;  %v8897_v24 = vpop.f32.mrb[161].mxu1 }
 0x3f3   : > { %v8800_v10 = vpop.f32.mrb[27].mxu0  ;;  %v8898_v44 = vadd.f32 %v8897_v24, %v8896_v35  ;;  %v8899_v53 = vpop.f32.mrb[162].mxu1 }
 0x3f4   : > { %v12481_v57 = vadd.f32 %v8798_v4, %v12313_v52  ;;  %v8801_v22 = vadd.f32 %v8800_v10, %v8799_v48  ;;  %v8900_v1 = vpop.f32.mrb[163].mxu1 }
 0x3f5   : > { %v8901_v23 = vadd.f32 %v8900_v1, %v8899_v53  ;;  %v12487_v55 = vadd.f32 %v12409_v54, %v8898_v44 }
 0x3f6   : > { %v12484_v49 = vadd.f32 %v8801_v22, %v12317_v18 }
 0x3f7   : > { %v12490_v59 = vadd.f32 %v12412_v7, %v8901_v23 }
 0x3f8   : > { %v8802_v19 = vpop.f32.mrb[28].mxu0 }
 0x3f9   : > { %v8803_v29 = vpop.f32.mrb[29].mxu0  ;;  %v8902_v60 = vpop.f32.mrb[164].mxu1 }
 0x3fa   : > { %v8804_v45 = vadd.f32 %v8803_v29, %v8802_v19  ;;  %v8805_v52 = vpop.f32.mrb[30].mxu0  ;;  %v8903_v18 = vpop.f32.mrb[165].mxu1 }
 0x3fb   : > { %v8806_v27 = vpop.f32.mrb[31].mxu0  ;;  %v8904_v11 = vadd.f32 %v8903_v18, %v8902_v60  ;;  %v8905_v25 = vpop.f32.mrb[166].mxu1 }
 0x3fc   : > { %v12493_v5 = vadd.f32 %v8804_v45, %v12323_v51  ;;  %v8807_v41 = vadd.f32 %v8806_v27, %v8805_v52  ;;  %v8906_v54 = vpop.f32.mrb[167].mxu1 }
 0x3fd   : > { %v8907_v3 = vadd.f32 %v8906_v54, %v8905_v25  ;;  %v12499_v31 = vadd.f32 %v12421_v26, %v8904_v11  ;;  %v8144_v54 = vld [vmem:[%s10322_s8 + $0x18] sm:$0xff]  }
 0x3fe   : > { %v12496_v56 = vadd.f32 %v8807_v41, %v12327_v42 }
 0x3ff   : > { %v12502_v7 = vadd.f32 %v12424_v32, %v8907_v3 }
 0x401   : > { %v8908_v34 = vpop.f32.mrb[168].mxu1 }
 0x402   : > { %v8909_v21 = vpop.f32.mrb[169].mxu1 }
 0x403   : > { %v8910_v15 = vadd.f32 %v8909_v21, %v8908_v34  ;;  %v8911_v51 = vpop.f32.mrb[170].mxu1  ;;  %v8024_v21 = vld [vmem:[%s10322_s8 + $0xc] sm:$0xff]  }
 0x404   : > { %v8912_v33 = vpop.f32.mrb[171].mxu1 }
 0x405   : > { %v8913_v14 = vadd.f32 %v8912_v33, %v8911_v51  ;;  %v12505_v0 = vadd.f32 %v12433_v16, %v8910_v15  ;;  %v8114_v51 = vunpack.c.l.bf16 %v8144_v54  ;;  %v8115_v33 = vunpack.c.h.bf16 %v8144_v54 }
 0x407   : > { %v12508_v42 = vadd.f32 %v12436_v43, %v8913_v14  ;;  %v8029_v14 = vld [vmem:[%s10322_s8 + $0x20] sm:$0x1] }
 0x409   : > { %v8914_v4 = vpop.f32.mrb[172].mxu1 }
 0x40a   : > { %v8915_v48 = vpop.f32.mrb[173].mxu1 }
 0x40b   : > { %v8916_v10 = vadd.f32 %v8915_v48, %v8914_v4  ;;  %v8917_v26 = vpop.f32.mrb[174].mxu1  ;;  %v8145_v4 = vld [vmem:[%s10322_s8 + $0x30] sm:$0xff]   ;;  %v6983_v48 = vunpack.c.l.bf16 %v8024_v21 }
 0x40c   : > { %v8918_v35 = vpop.f32.mrb[175].mxu1 }
 0x40d   : > { %v8919_v22 = vadd.f32 %v8918_v35, %v8917_v26  ;;  %v12511_v32 = vadd.f32 %v12445_v8, %v8916_v10  ;;  %v6984_v10 = vunpack.c.h.bf16 %v8024_v21  ;;  %v6988_v35 = vunpack.c.l.bf16 %v8029_v14 }
 0x40f   : > { %v12514_v24 = vadd.f32 %v12448_v17, %v8919_v22 }
 0x411   : > { %v8920_v44 = vpop.f32.mrb[176].mxu1 }
 0x412   : > { %v8921_v53 = vpop.f32.mrb[177].mxu1 }
 0x413   : > { %v8922_v1 = vadd.f32 %v8921_v53, %v8920_v44  ;;  %v8923_v16 = vpop.f32.mrb[178].mxu1  ;;  %v8030_v44 = vld [vmem:[%s10322_s8 + $0x24] sm:$0xff]  }
 0x414   : > { %v8924_v23 = vpop.f32.mrb[179].mxu1 }
 0x415   : > { %v8925_v43 = vadd.f32 %v8924_v23, %v8923_v16  ;;  %v12517_v19 = vadd.f32 %v12457_v13, %v8922_v1  ;;  %v7086_v1 = vrot.slane %v8115_v33, 1  ;;  %v8118_v16 = vunpack.c.l.bf16 %v8145_v4 }
 0x416   : > { %v8119_v23 = vunpack.c.h.bf16 %v8145_v4 }
 0x417   : > { %v12520_v29 = vadd.f32 %v12460_v37, %v8925_v43 }
 0x418   : > { %v7096_v33 = vrot.slane %v8119_v23, 1 }
 0x419   : > { %v8926_v45 = vpop.f32.mrb[180].mxu1 }
 0x41a   : > { %v8927_v8 = vpop.f32.mrb[181].mxu1 }
 0x41b   : > { %v8928_v52 = vadd.f32 %v8927_v8, %v8926_v45  ;;  %v8929_v27 = vpop.f32.mrb[182].mxu1  ;;  %v8035_v8 = vld [vmem:[%s10322_s8 + $0x38] sm:$0x1] }
 0x41c   : > { %v8930_v17 = vpop.f32.mrb[183].mxu1  ;;  %v6994_v14 = vunpack.c.l.bf16 %v8035_v8 }
 0x41d   : > { %v8931_v60 = vadd.f32 %v8930_v17, %v8929_v27  ;;  %v12523_v41 = vadd.f32 %v12469_v47, %v8928_v52  ;;  %v8026_v47 = vld [vmem:[%s10322_s8 + $0x14] sm:$0x1]  ;;  %v7081_v27 = vrot.slane %v6984_v10, 1  ;;  %v6989_v17 = vunpack.c.l.bf16 %v8030_v44 }
 0x41e   : > { %v6985_v22 = vunpack.c.l.bf16 %v8026_v47  ;;  %v8041_v47 = vld [vmem:[%s10322_s8 + $0x50] sm:$0x1] }
 0x41f   : > { %v12526_v18 = vadd.f32 %v12472_v36, %v8931_v60  ;;  %v6990_v60 = vunpack.c.h.bf16 %v8030_v44  ;;  %v7000_v8 = vunpack.c.l.bf16 %v8041_v47 }
 0x420   : > { %v7083_v54 = vrot.slane %v6985_v22, 1  ;;  %v7090_v22 = vrot.slane %v6989_v17, 1  ;;  %v7098_v17 = vrot.slane %v6994_v14, 1 }
 0x421   : > { %v8932_v13 = vpop.f32.mrb[184].mxu1 }
 0x422   : > { %v8933_v11 = vpop.f32.mrb[185].mxu1  ;;  %v7084_v23 = vsel %vm694_vm1, %v7081_v27, %v7083_v54 }
 0x423   : > { %v8934_v37 = vadd.f32 %v8933_v11, %v8932_v13  ;;  %v8935_v25 = vpop.f32.mrb[186].mxu1  ;;  %v8032_v13 = vld [vmem:[%s10322_s8 + $0x2c] sm:$0x1] }
 0x424   : > { %v8936_v3 = vpop.f32.mrb[187].mxu1  ;;  %v8146_v11 = vld [vmem:[%s10322_s8 + $0x48] sm:$0xff]   ;;  %v6991_v4 = vunpack.c.l.bf16 %v8032_v13  ;;  %v12569_v13 = vld [vmem:[%s12848_s6] ss:$0 sm:$0xff] }
 0x425   : > { %v8937_v34 = vadd.f32 %v8936_v3, %v8935_v25  ;;  %v12531_v15 = vadd.f32 %v12481_v57, %v8934_v37  ;;  %v7085_v57 = vrot.slane %v8114_v51, 1  ;;  %v7088_v25 = vrot.slane %v6988_v35, 1  ;;  %v8036_v3 = vld [vmem:[%s10322_s8 + $0x3c] sm:$0xff]  }
 0x426   : > { %v7095_v51 = vrot.slane %v8118_v16, 1  ;;  %v8123_v10 = vunpack.c.h.bf16 %v8146_v11 }
 0x427   : > { %v12537_v36 = vadd.f32 %v12484_v49, %v8937_v34  ;;  %v7080_v49 = vrot.slane %v6983_v48, 1  ;;  %v7087_v21 = vsel %vm694_vm1, %v7085_v57, %v7086_v1  ;;  %v8122_v48 = vunpack.c.l.bf16 %v8146_v11  ;;  %v12557_v57 = vld [vmem:[%s12847_s5] ss:$0 sm:$0xff] }
 0x428   : > { %v7089_v16 = vsel %vm694_vm1, %v7086_v1, %v7088_v25  ;;  %v7093_v11 = vrot.slane %v6991_v4, 1  ;;  %v7106_v25 = vrot.slane %v8123_v10, 1 }
 0x429   : > { %v8938_v26 = vpop.f32.mrb[188].mxu1  ;;  %v7082_v35 = vsel %vm694_vm1, %v7080_v49, %v7081_v27  ;;  %v12564_v49 = vsel %vm694_vm1, %v7095_v51, %v7096_v33 }
 0x42a   : > { %v8939_v53 = vpop.f32.mrb[189].mxu1 }
 0x42b   : > { %v8940_v43 = vadd.f32 %v8939_v53, %v8938_v26  ;;  %v8941_v45 = vpop.f32.mrb[190].mxu1  ;;  %v8038_v26 = vld [vmem:[%s10322_s8 + $0x44] sm:$0x1]  ;;  %v7091_v53 = vrot.slane %v6990_v60, 1 }
 0x42c   : > { %v8942_v52 = vpop.f32.mrb[191].mxu1  ;;  %v6997_v60 = vunpack.c.l.bf16 %v8038_v26 }
 0x42d   : > { %v8943_v37 = vadd.f32 %v8942_v52, %v8941_v45  ;;  %v12545_v34 = vadd.f32 %v12493_v5, %v8940_v43  ;;  %v6995_v5 = vunpack.c.l.bf16 %v8036_v3  ;;  %v6996_v45 = vunpack.c.h.bf16 %v8036_v3 }
 0x42e   : > { %v12575_v51 = vsel %vm694_vm1, %v7090_v22, %v7091_v53  ;;  %v7103_v10 = vrot.slane %v6997_v60, 1 }
 0x42f   : > { %v12551_v44 = vadd.f32 %v12496_v56, %v8943_v37  ;;  %v7105_v37 = vrot.slane %v8122_v48, 1  ;;  %v7100_v14 = vrot.slane %v6995_v5, 1  ;;  %v7099_v48 = vsel %vm694_vm1, %v7096_v33, %v7098_v17 }
 0x431   : > { %v9226_v43 = vpop.f32.mrb[96].mxu1 }
 0x432   : > { %v9386_v56 = vadd.f32 %v12400_v30, %v9226_v43  ;;  %v6776_v52 = vpop.f32.mrb[97].mxu1  ;;  %v7101_v43 = vrot.slane %v6996_v45, 1  ;;  %v12593_v45 = vsel %vm694_vm1, %v7105_v37, %v7106_v25 }
 0x433   : > { %v9389_v1 = vadd.f32 %v12397_v50, %v6776_v52  ;;  %v9227_v27 = vpop.f32.mrb[98].mxu1  ;;  %v7108_v50 = vrot.slane %v7000_v8, 1  ;;  %v8147_v52 = vld [vmem:[%s10322_s8 + $0x60] sm:$0xff]  }
 0x434   : > { %v7201_v30 = vmul.f32 %v9386_v56, %v12557_v57  ;;  %v9392_v54 = vadd.f32 %v12406_v63, %v9227_v27  ;;  %v6779_v3 = vpop.f32.mrb[99].mxu1  ;;  %v8127_v27 = vunpack.c.h.bf16 %v8147_v52  ;;  %v12599_v60 = vsel %vm694_vm1, %v7100_v14, %v7101_v43 }
 0x435   : > { %v7199_v47 = vmul.f32 %v9389_v1, %v12557_v57  ;;  %v9395_v26 = vadd.f32 %v12403_v12, %v6779_v3  ;;  %v12590_v12 = vsel %vm694_vm1, %v7091_v53, %v7093_v11  ;;  %v8126_v1 = vunpack.c.l.bf16 %v8147_v52 }
 0x436   : > { %v7240_v4 = vadd.f32 %v12569_v13, %v7201_v30  ;;  %v7202_v63 = vmul.f32 %v9392_v54, %v12557_v57  ;;  %v8042_v30 = vld [vmem:[%s10322_s8 + $0x54] sm:$0xff]   ;;  %v12602_v53 = vsel %vm694_vm1, %v7106_v25, %v7108_v50 }
 0x437   : > { %v7238_v22 = vadd.f32 %v12569_v13, %v7199_v47  ;;  %v7200_v5 = vmul.f32 %v9395_v26, %v12557_v57  ;;  %v12606_v47 = vsel %vm694_vm1, %v7101_v43, %v7103_v10  ;;  %v7001_v14 = vunpack.c.l.bf16 %v8042_v30 }
 0x438   : > { %v7272_v8 = vadd.f32 %v7240_v4, %v7087_v21  ;;  %v7241_v56 = vadd.f32 %v12569_v13, %v7202_v63  ;;  %v7002_v50 = vunpack.c.h.bf16 %v8042_v30 }
 0x439   : > { %v7270_v54 = vadd.f32 %v7238_v22, %v7082_v35  ;;  %v7239_v33 = vadd.f32 %v12569_v13, %v7200_v5  ;;  %v9230_v17 = vpop.f32.mrb[100].mxu1  ;;  %v8047_v35 = vld [vmem:[%s10322_s8 + $0x68] sm:$0x1]  ;;  %v8044_v22 = vld [vmem:[%s10322_s8 + $0x5c] sm:$0x1] }
 0x43a   : > { %v7304_v11 = vmax.f32 %v7272_v8, 0.0  ;;  %v7273_v37 = vadd.f32 %v7241_v56, %v7089_v16  ;;  %v9398_v21 = vadd.f32 %v12427_v2, %v9230_v17  ;;  %v6792_v3 = vpop.f32.mrb[101].mxu1  ;;  %v7006_v8 = vunpack.c.l.bf16 %v8047_v35 }
 0x43b   : > { %v7302_v26 = vmax.f32 %v7270_v54, 0.0  ;;  %v7271_v52 = vadd.f32 %v7239_v33, %v7084_v23  ;;  %v9401_v4 = vadd.f32 %v12415_v46, %v6792_v3  ;;  %v9231_v63 = vpop.f32.mrb[102].mxu1  ;;  %v8148_v23 = vld [vmem:[%s10322_s8 + $0x78] sm:$0xff]   ;;  %v7115_v33 = vrot.slane %v8126_v1, 1 }
 0x43c   : > { %7336 = vst [vmem:[%s12612_s20 + $0x10] sm:$0xff] %v7304_v11  ;;  %v7305_v2 = vmax.f32 %v7273_v37, 0.0  ;;  %v7205_v16 = vmul.f32 %v9398_v21, %v12557_v57  ;;  %v9404_v25 = vadd.f32 %v12430_v40, %v9231_v63  ;;  %v6795_v43 = vpop.f32.mrb[103].mxu1  ;;  %v7003_v17 = vunpack.c.l.bf16 %v8044_v22 }
 0x43d   : > { %7334 = vst [vmem:[%s12612_s20] sm:$0xff] %v7302_v26  ;;  %v7303_v46 = vmax.f32 %v7271_v52, 0.0  ;;  %v7203_v10 = vmul.f32 %v9401_v4, %v12557_v57  ;;  %v9407_v5 = vadd.f32 %v12418_v28, %v6795_v43  ;;  %v7116_v11 = vrot.slane %v8127_v27, 1 }
 0x43e   : > { %7337 = vst [vmem:[%s12612_s20 + $0x18] sm:$0xff] %v7305_v2  ;;  %v7244_v56 = vadd.f32 %v12569_v13, %v7205_v16  ;;  %v7206_v54 = vmul.f32 %v9404_v25, %v12557_v57  ;;  %v8130_v37 = vunpack.c.l.bf16 %v8148_v23  ;;  %v7110_v3 = vrot.slane %v7001_v14, 1 }
 0x43f   : > { %7335 = vst [vmem:[%s12612_s20 + $0x8] sm:$0xff] %v7303_v46  ;;  %v7242_v40 = vadd.f32 %v12569_v13, %v7203_v10  ;;  %v7204_v30 = vmul.f32 %v9407_v5, %v12557_v57  ;;  %v8131_v35 = vunpack.c.h.bf16 %v8148_v23  ;;  %v7111_v4 = vrot.slane %v7002_v50, 1 }
 0x440   : > { %v7276_v21 = vadd.f32 %v7244_v56, %v12564_v49  ;;  %v7245_v28 = vadd.f32 %v12569_v13, %v7206_v54  ;;  %v7118_v63 = vrot.slane %v7006_v8, 1  ;;  %v7113_v25 = vrot.slane %v7003_v17, 1  ;;  %v8048_v49 = vld [vmem:[%s10322_s8 + $0x6c] sm:$0xff]  }
 0x441   : > { %v7274_v26 = vadd.f32 %v7242_v40, %v12575_v51  ;;  %v7243_v1 = vadd.f32 %v12569_v13, %v7204_v30  ;;  %v9234_v52 = vpop.f32.mrb[104].mxu1  ;;  %v7125_v46 = vrot.slane %v8130_v37, 1  ;;  %v12638_v5 = vrot.slane %v8131_v35, 1  ;;  %v8053_v30 = vld [vmem:[%s10322_s8 + $0x80] sm:$0x1] }
 0x442   : > { %v7308_v22 = vmax.f32 %v7276_v21, 0.0  ;;  %v7277_v2 = vadd.f32 %v7245_v28, %v7099_v48  ;;  %v9410_v27 = vadd.f32 %v12451_v38, %v9234_v52  ;;  %v6808_v16 = vpop.f32.mrb[105].mxu1  ;;  %v7007_v56 = vunpack.c.l.bf16 %v8048_v49  ;;  %v8050_v35 = vld [vmem:[%s10322_s8 + $0x74] sm:$0x1] }
 0x443   : > { %v7306_v43 = vmax.f32 %v7274_v26, 0.0  ;;  %v7275_v14 = vadd.f32 %v7243_v1, %v12590_v12  ;;  %v9413_v51 = vadd.f32 %v12439_v58, %v6808_v16  ;;  %v9235_v23 = vpop.f32.mrb[106].mxu1  ;;  %v7117_v40 = vsel %vm694_vm1, %v7115_v33, %v7116_v11 }
 0x444   : > { %7340 = vst [vmem:[%s12612_s20 + $0x30] sm:$0xff] %v7308_v22  ;;  %v7309_v50 = vmax.f32 %v7277_v2, 0.0  ;;  %v7209_v48 = vmul.f32 %v9410_v27, %v12557_v57  ;;  %v9416_v10 = vadd.f32 %v12454_v61, %v9235_v23  ;;  %v6811_v38 = vpop.f32.mrb[107].mxu1  ;;  %v7112_v61 = vsel %vm694_vm1, %v7110_v3, %v7111_v4  ;;  %v8149_v27 = vld [vmem:[%s10322_s8 + $0x90] sm:$0xff]  }
 0x445   : > { %7338 = vst [vmem:[%s12612_s20 + $0x20] sm:$0xff] %v7306_v43  ;;  %v7307_v8 = vmax.f32 %v7275_v14, 0.0  ;;  %v7207_v12 = vmul.f32 %v9413_v51, %v12557_v57  ;;  %v9419_v58 = vadd.f32 %v12442_v20, %v6811_v38  ;;  %v7119_v28 = vsel %vm694_vm1, %v7116_v11, %v7118_v63 }
 0x446   : > { %7341 = vst [vmem:[%s12612_s20 + $0x38] sm:$0xff] %v7309_v50  ;;  %v7248_v54 = vadd.f32 %v12569_v13, %v7209_v48  ;;  %v7210_v17 = vmul.f32 %v9416_v10, %v12557_v57  ;;  %v7008_v20 = vunpack.c.h.bf16 %v8048_v49  ;;  %v7114_v52 = vsel %vm694_vm1, %v7111_v4, %v7113_v25 }
 0x447   : > { %7339 = vst [vmem:[%s12612_s20 + $0x28] sm:$0xff] %v7307_v8  ;;  %v7246_v37 = vadd.f32 %v12569_v13, %v7207_v12  ;;  %v7208_v21 = vmul.f32 %v9419_v58, %v12557_v57  ;;  %v12659_v33 = vsel %vm694_vm1, %v7125_v46, %v12638_v5  ;;  %v7120_v11 = vrot.slane %v7007_v56, 1  ;;  %v8054_v46 = vld [vmem:[%s10322_s8 + $0x84] sm:$0xff]  }
 0x448   : > { %v7280_v26 = vadd.f32 %v7248_v54, %v12593_v45  ;;  %v7249_v1 = vadd.f32 %v12569_v13, %v7210_v17  ;;  %v7012_v63 = vunpack.c.l.bf16 %v8053_v30  ;;  %v7009_v49 = vunpack.c.l.bf16 %v8050_v35  ;;  %v8059_v17 = vld [vmem:[%s10322_s8 + $0x98] sm:$0x1] }
 0x449   : > { %v7278_v3 = vadd.f32 %v7246_v37, %v12599_v60  ;;  %v7247_v22 = vadd.f32 %v12569_v13, %v7208_v21  ;;  %v9238_v2 = vpop.f32.mrb[108].mxu1  ;;  %v12668_v23 = vrot.slane %v7008_v20, 1  ;;  %v8134_v10 = vunpack.c.l.bf16 %v8149_v27 }
 0x44a   : > { %v7312_v16 = vmax.f32 %v7280_v26, 0.0  ;;  %v7281_v45 = vadd.f32 %v7249_v1, %v12602_v53  ;;  %v9422_v4 = vadd.f32 %v12475_v62, %v9238_v2  ;;  %v6824_v25 = vpop.f32.mrb[109].mxu1  ;;  %v8135_v8 = vunpack.c.h.bf16 %v8149_v27  ;;  %v8056_v1 = vld [vmem:[%s10322_s8 + $0x8c] sm:$0x1] }
 0x44b   : > { %v7310_v43 = vmax.f32 %v7278_v3, 0.0  ;;  %v7279_v14 = vadd.f32 %v7247_v22, %v12606_v47  ;;  %v9425_v60 = vadd.f32 %v12463_v39, %v6824_v25  ;;  %v9239_v51 = vpop.f32.mrb[110].mxu1  ;;  %v7128_v56 = vrot.slane %v7012_v63, 1  ;;  %v8150_v25 = vld [vmem:[%s10322_s8 + $0xa8] sm:$0xff]  }
 0x44c   : > { %7344 = vst [vmem:[%s12612_s20 + $0x50] sm:$0xff] %v7312_v16  ;;  %v7313_v50 = vmax.f32 %v7281_v45, 0.0  ;;  %v7213_v53 = vmul.f32 %v9422_v4, %v12557_v57  ;;  %v9428_v62 = vadd.f32 %v12478_v9, %v9239_v51  ;;  %v6827_v48 = vpop.f32.mrb[111].mxu1  ;;  %v7013_v54 = vunpack.c.l.bf16 %v8054_v46 }
 0x44d   : > { %7342 = vst [vmem:[%s12612_s20 + $0x40] sm:$0xff] %v7310_v43  ;;  %v7311_v38 = vmax.f32 %v7279_v14, 0.0  ;;  %v7211_v47 = vmul.f32 %v9425_v60, %v12557_v57  ;;  %v9431_v39 = vadd.f32 %v12466_v6, %v6827_v48  ;;  %v7122_v37 = vsel %vm694_vm1, %v7120_v11, %v12668_v23 }
 0x44e   : > { %7345 = vst [vmem:[%s12612_s20 + $0x58] sm:$0xff] %v7313_v50  ;;  %v7252_v12 = vadd.f32 %v12569_v13, %v7213_v53  ;;  %v7214_v58 = vmul.f32 %v9428_v62, %v12557_v57  ;;  %v7123_v21 = vrot.slane %v7009_v49, 1  ;;  %v7135_v35 = vrot.slane %v8134_v10, 1 }
 0x44f   : > { %7343 = vst [vmem:[%s12612_s20 + $0x48] sm:$0xff] %v7311_v38  ;;  %v7250_v9 = vadd.f32 %v12569_v13, %v7211_v47  ;;  %v7212_v30 = vmul.f32 %v9431_v39, %v12557_v57  ;;  %v7014_v26 = vunpack.c.h.bf16 %v8054_v46  ;;  %v12689_v63 = vrot.slane %v8135_v8, 1 }
 0x450   : > { %v7284_v6 = vadd.f32 %v7252_v12, %v7117_v40  ;;  %v7253_v20 = vadd.f32 %v12569_v13, %v7214_v58  ;;  %v7018_v27 = vunpack.c.l.bf16 %v8059_v17  ;;  %v7130_v40 = vrot.slane %v7013_v54, 1  ;;  %v8060_v54 = vld [vmem:[%s10322_s8 + $0x9c] sm:$0xff]  }
 0x451   : > { %v7282_v3 = vadd.f32 %v7250_v9, %v7112_v61  ;;  %v7251_v22 = vadd.f32 %v12569_v13, %v7212_v30  ;;  %v9242_v2 = vpop.f32.mrb[112].mxu1  ;;  %v7015_v60 = vunpack.c.l.bf16 %v8056_v1  ;;  %v7131_v53 = vrot.slane %v7014_v26, 1  ;;  %v8065_v1 = vld [vmem:[%s10322_s8 + $0xb0] sm:$0x1] }
 0x452   : > { %v7316_v16 = vmax.f32 %v7284_v6, 0.0  ;;  %v7285_v45 = vadd.f32 %v7253_v20, %v7119_v28  ;;  %v9434_v11 = vadd.f32 %v12499_v31, %v9242_v2  ;;  %v6840_v4 = vpop.f32.mrb[113].mxu1  ;;  %v7129_v10 = vsel %vm694_vm1, %v12638_v5, %v7128_v56 }
 0x453   : > { %v7314_v49 = vmax.f32 %v7282_v3, 0.0  ;;  %v7283_v43 = vadd.f32 %v7251_v22, %v7114_v52  ;;  %v9437_v61 = vadd.f32 %v12487_v55, %v6840_v4  ;;  %v9243_v14 = vpop.f32.mrb[114].mxu1  ;;  %v8138_v52 = vunpack.c.l.bf16 %v8150_v25 }
 0x454   : > { %7348 = vst [vmem:[%s12612_s20 + $0x70] sm:$0xff] %v7316_v16  ;;  %v7317_v51 = vmax.f32 %v7285_v45, 0.0  ;;  %v7217_v46 = vmul.f32 %v9434_v11, %v12557_v57  ;;  %v9440_v28 = vadd.f32 %v12502_v7, %v9243_v14  ;;  %v6843_v50 = vpop.f32.mrb[115].mxu1  ;;  %v8139_v47 = vunpack.c.h.bf16 %v8150_v25  ;;  %v8062_v16 = vld [vmem:[%s10322_s8 + $0xa4] sm:$0x1] }
 0x455   : > { %7346 = vst [vmem:[%s12612_s20 + $0x60] sm:$0xff] %v7314_v49  ;;  %v7315_v31 = vmax.f32 %v7283_v43, 0.0  ;;  %v7215_v62 = vmul.f32 %v9437_v61, %v12557_v57  ;;  %v9443_v48 = vadd.f32 %v12490_v59, %v6843_v50  ;;  %v7124_v39 = vsel %vm694_vm1, %v12668_v23, %v7123_v21 }
 0x456   : > { %7349 = vst [vmem:[%s12612_s20 + $0x78] sm:$0xff] %v7317_v51  ;;  %v7256_v55 = vadd.f32 %v12569_v13, %v7217_v46  ;;  %v7218_v38 = vmul.f32 %v9440_v28, %v12557_v57  ;;  %v7137_v59 = vsel %vm694_vm1, %v7135_v35, %v12689_v63  ;;  %v7138_v5 = vrot.slane %v7018_v27, 1  ;;  %v8151_v46 = vld [vmem:[%s10322_s8 + $0xc0] sm:$0xff]  }
 0x457   : > { %7347 = vst [vmem:[%s12612_s20 + $0x68] sm:$0xff] %v7315_v31  ;;  %v7254_v7 = vadd.f32 %v12569_v13, %v7215_v62  ;;  %v7216_v8 = vmul.f32 %v9443_v48, %v12557_v57  ;;  %v7133_v56 = vrot.slane %v7015_v60, 1  ;;  %v7132_v23 = vsel %vm694_vm1, %v7130_v40, %v7131_v53 }
 0x458   : > { %v7288_v12 = vadd.f32 %v7256_v55, %v12659_v33  ;;  %v7257_v58 = vadd.f32 %v12569_v13, %v7218_v38  ;;  %v7145_v21 = vrot.slane %v8138_v52, 1  ;;  %v12718_v26 = vrot.slane %v8139_v47, 1 }
 0x459   : > { %v7286_v17 = vadd.f32 %v7254_v7, %v7122_v37  ;;  %v7255_v9 = vadd.f32 %v12569_v13, %v7216_v8  ;;  %v9246_v30 = vpop.f32.mrb[116].mxu1  ;;  %v7019_v27 = vunpack.c.l.bf16 %v8060_v54  ;;  %v7020_v40 = vunpack.c.h.bf16 %v8060_v54 }
 0x45a   : > { %v7320_v6 = vmax.f32 %v7288_v12, 0.0  ;;  %v7289_v20 = vadd.f32 %v7257_v58, %v7129_v10  ;;  %v9446_v35 = vadd.f32 %v12511_v32, %v9246_v30  ;;  %v6856_v33 = vpop.f32.mrb[117].mxu1  ;;  %v7139_v14 = vsel %vm694_vm1, %v12689_v63, %v7138_v5 }
 0x45b   : > { %v7318_v3 = vmax.f32 %v7286_v17, 0.0  ;;  %v7287_v22 = vadd.f32 %v7255_v9, %v7124_v39  ;;  %v9449_v37 = vadd.f32 %v12505_v0, %v6856_v33  ;;  %v9247_v2 = vpop.f32.mrb[118].mxu1  ;;  %v7024_v0 = vunpack.c.l.bf16 %v8065_v1  ;;  %v8068_v1 = vld [vmem:[%s10322_s8 + $0xbc] sm:$0x1] }
 0x45c   : > { %7352 = vst [vmem:[%s12612_s20 + $0x90] sm:$0xff] %v7320_v6  ;;  %v7321_v45 = vmax.f32 %v7289_v20, 0.0  ;;  %v7221_v11 = vmul.f32 %v9446_v35, %v12557_v57  ;;  %v9452_v32 = vadd.f32 %v12514_v24, %v9247_v2  ;;  %v6859_v4 = vpop.f32.mrb[119].mxu1  ;;  %v7021_v51 = vunpack.c.l.bf16 %v8062_v16  ;;  %v8071_v6 = vld [vmem:[%s10322_s8 + $0xc8] sm:$0x1] }
 0x45d   : > { %7350 = vst [vmem:[%s12612_s20 + $0x80] sm:$0xff] %v7318_v3  ;;  %v7319_v25 = vmax.f32 %v7287_v22, 0.0  ;;  %v7219_v49 = vmul.f32 %v9449_v37, %v12557_v57  ;;  %v9455_v43 = vadd.f32 %v12508_v42, %v6859_v4  ;;  %v7134_v28 = vsel %vm694_vm1, %v7131_v53, %v7133_v56 }
 0x45e   : > { %7353 = vst [vmem:[%s12612_s20 + $0x98] sm:$0xff] %v7321_v45  ;;  %v7260_v61 = vadd.f32 %v12569_v13, %v7221_v11  ;;  %v7222_v60 = vmul.f32 %v9452_v32, %v12557_v57  ;;  %v7147_v42 = vsel %vm694_vm1, %v7145_v21, %v12718_v26  ;;  %v7140_v48 = vrot.slane %v7019_v27, 1 }
 0x45f   : > { %7351 = vst [vmem:[%s12612_s20 + $0x88] sm:$0xff] %v7319_v25  ;;  %v7258_v24 = vadd.f32 %v12569_v13, %v7219_v49  ;;  %v7220_v50 = vmul.f32 %v9455_v43, %v12557_v57  ;;  %v7141_v63 = vrot.slane %v7020_v40, 1  ;;  %v7148_v38 = vrot.slane %v7024_v0, 1 }
 0x460   : > { %v7292_v31 = vadd.f32 %v7260_v61, %v7137_v59  ;;  %v7261_v62 = vadd.f32 %v12569_v13, %v7222_v60  ;;  %v8142_v47 = vunpack.c.l.bf16 %v8151_v46  ;;  %v7143_v12 = vrot.slane %v7021_v51, 1  ;;  %v8066_v59 = vld [vmem:[%s10322_s8 + $0xb4] sm:$0xff]   ;;  %s8111_s8 = sshll.u32 %s10162_s28, 12  ;;  %s12801_s28 = scalar_lea.sflag [#allocation5], %s284_s14 }
 0x461   : > { %v7290_v52 = vadd.f32 %v7258_v24, %v7132_v23  ;;  %v7259_v55 = vadd.f32 %v12569_v13, %v7220_v50  ;;  %v9250_v10 = vpop.f32.mrb[120].mxu1  ;;  %v8143_v17 = vunpack.c.h.bf16 %v8151_v46  ;;  %v7142_v23 = vsel %vm694_vm1, %v7140_v48, %v7141_v63  ;;  %s12792_s22 = scalar_lea.hbm %s12849_s7, %s8111_s8 }
 0x462   : > { %v7324_v7 = vmax.f32 %v7292_v31, 0.0  ;;  %v7293_v53 = vadd.f32 %v7261_v62, %v7139_v14  ;;  %v9458_v39 = vadd.f32 %v12523_v41, %v9250_v10  ;;  %v6872_v8 = vpop.f32.mrb[121].mxu1  ;;  %v7025_v33 = vunpack.c.l.bf16 %v8066_v59 }
 0x463   : > { %v7322_v58 = vmax.f32 %v7290_v52, 0.0  ;;  %v7291_v5 = vadd.f32 %v7259_v55, %v7134_v28  ;;  %v9461_v56 = vadd.f32 %v12517_v19, %v6872_v8  ;;  %v9251_v54 = vpop.f32.mrb[122].mxu1  ;;  %v7149_v22 = vsel %vm694_vm1, %v12718_v26, %v7148_v38 }
 0x464   : > { %7356 = vst [vmem:[%s12612_s20 + $0xb0] sm:$0xff] %v7324_v7  ;;  %v7325_v9 = vmax.f32 %v7293_v53, 0.0  ;;  %v7225_v30 = vmul.f32 %v9458_v39, %v12557_v57  ;;  %v9464_v41 = vadd.f32 %v12526_v18, %v9251_v54  ;;  %v6875_v21 = vpop.f32.mrb[123].mxu1  ;;  %v7026_v2 = vunpack.c.h.bf16 %v8066_v59 }
 0x465   : > { %7354 = vst [vmem:[%s12612_s20 + $0xa0] sm:$0xff] %v7322_v58  ;;  %v7323_v20 = vmax.f32 %v7291_v5, 0.0  ;;  %v7223_v35 = vmul.f32 %v9461_v56, %v12557_v57  ;;  %v9467_v19 = vadd.f32 %v12520_v29, %v6875_v21  ;;  %v7144_v27 = vsel %vm694_vm1, %v7141_v63, %v7143_v12 }
 0x466   : > { %7357 = vst [vmem:[%s12612_s20 + $0xb8] sm:$0xff] %v7325_v9  ;;  %v7264_v3 = vadd.f32 %v12569_v13, %v7225_v30  ;;  %v7226_v37 = vmul.f32 %v9464_v41, %v12557_v57  ;;  %v7030_v45 = vunpack.c.l.bf16 %v8071_v6  ;;  %v7155_v32 = vrot.slane %v8142_v47, 1 }
 0x467   : > { %7355 = vst [vmem:[%s12612_s20 + $0xa8] sm:$0xff] %v7323_v20  ;;  %v7262_v18 = vadd.f32 %v12569_v13, %v7223_v35  ;;  %v7224_v16 = vmul.f32 %v9467_v19, %v12557_v57  ;;  %v7027_v4 = vunpack.c.l.bf16 %v8068_v1  ;;  %v7156_v49 = vrot.slane %v8143_v17, 1 }
 0x468   : > { %v7296_v29 = vadd.f32 %v7264_v3, %v7147_v42  ;;  %v7265_v11 = vadd.f32 %v12569_v13, %v7226_v37  ;;  %v7150_v43 = vrot.slane %v7025_v33, 1  ;;  %v7151_v51 = vrot.slane %v7026_v2, 1 }
 0x469   : > { %v7294_v40 = vadd.f32 %v7262_v18, %v7142_v23  ;;  %v7263_v26 = vadd.f32 %v12569_v13, %v7224_v16  ;;  %v9254_v25 = vpop.f32.mrb[124].mxu1  ;;  %v7158_v42 = vrot.slane %v7030_v45, 1  ;;  %v7153_v52 = vrot.slane %v7027_v4, 1 }
 0x46a   : > { %v7328_v0 = vmax.f32 %v7296_v29, 0.0  ;;  %v7297_v61 = vadd.f32 %v7265_v11, %v7149_v22  ;;  %v9470_v14 = vadd.f32 %v12545_v34, %v9254_v25  ;;  %v6888_v60 = vpop.f32.mrb[125].mxu1  ;;  %v7157_v55 = vsel %vm694_vm1, %v7155_v32, %v7156_v49 }
 0x46b   : > { %v7326_v46 = vmax.f32 %v7294_v40, 0.0  ;;  %v7295_v24 = vadd.f32 %v7263_v26, %v7144_v27  ;;  %v9473_v28 = vadd.f32 %v12531_v15, %v6888_v60  ;;  %v9255_v50 = vpop.f32.mrb[126].mxu1  ;;  %v7152_v47 = vsel %vm694_vm1, %v7150_v43, %v7151_v51 }
 0x46c   : > { %7360 = vst [vmem:[%s12612_s20 + $0xd0] sm:$0xff] %v7328_v0  ;;  %v7329_v31 = vmax.f32 %v7297_v61, 0.0  ;;  %v7229_v62 = vmul.f32 %v9470_v14, %v12557_v57  ;;  %v9476_v48 = vadd.f32 %v12551_v44, %v9255_v50  ;;  %v6891_v63 = vpop.f32.mrb[127].mxu1  ;;  %v7159_v53 = vsel %vm694_vm1, %v7156_v49, %v7158_v42 }
 0x46d   : > { %7358 = vst [vmem:[%s12612_s20 + $0xc0] sm:$0xff] %v7326_v46  ;;  %v7327_v34 = vmax.f32 %v7295_v24, 0.0  ;;  %v7227_v10 = vmul.f32 %v9473_v28, %v12557_v57  ;;  %v9479_v15 = vadd.f32 %v12537_v36, %v6891_v63  ;;  %v7154_v36 = vsel %vm694_vm1, %v7151_v51, %v7153_v52 }
 0x46e   : > { %7361 = vst [vmem:[%s12612_s20 + $0xd8] sm:$0xff] %v7329_v31  ;;  %v7268_v38 = vadd.f32 %v12569_v13, %v7229_v62  ;;  %v7230_v7 = vmul.f32 %v9476_v48, %v12557_v57 }
 0x46f   : > { %7359 = vst [vmem:[%s12612_s20 + $0xc8] sm:$0xff] %v7327_v34  ;;  %v7266_v44 = vadd.f32 %v12569_v13, %v7227_v10  ;;  %v7228_v39 = vmul.f32 %v9479_v15, %v12557_v57 }
 0x470   : > { %v7300_v8 = vadd.f32 %v7268_v38, %v7157_v55  ;;  %v7269_v12 = vadd.f32 %v12569_v13, %v7230_v7 }
 0x471   : > { %v7298_v59 = vadd.f32 %v7266_v44, %v7152_v47  ;;  %v7267_v58 = vadd.f32 %v12569_v13, %v7228_v39 }
 0x472   : > { %v7332_v5 = vmax.f32 %v7300_v8, 0.0  ;;  %v7301_v56 = vadd.f32 %v7269_v12, %v7159_v53 }
 0x473   : > { %v7330_v54 = vmax.f32 %v7298_v59, 0.0  ;;  %v7299_v17 = vadd.f32 %v7267_v58, %v7154_v36 }
 0x474   : > { %7364 = vst [vmem:[%s12612_s20 + $0xf0] sm:$0xff] %v7332_v5  ;;  %v7333_v57 = vmax.f32 %v7301_v56, 0.0 }
 0x475   : > { %7362 = vst [vmem:[%s12612_s20 + $0xe0] sm:$0xff] %v7330_v54  ;;  %v7331_v13 = vmax.f32 %v7299_v17, 0.0 }
 0x476   : > { %7365 = vst [vmem:[%s12612_s20 + $0xf8] sm:$0xff] %v7333_v57 }
 0x477   : > { %7363 = vst [vmem:[%s12612_s20 + $0xe8] sm:$0xff] %v7331_v13 }
 0x478   : > { %10039 = shalt.err (!%p10036_p7)
}
 0x479   : > { %s10040_s14 = scalar_lea.hbm %s12792_s22, 4096  ;;  %s10044_s17 = scalar_lea.hbm %s12849_s7, 8192 }
 0x47a   : > { %p10041_p8 = scmp.ne.s32.totalorder %s12792_s22, %s10040_s14  ;;  %p10045_p1 = scmp.lt.u32.totalorder %s12792_s22, %s12849_s7 }
 0x47b   : > { %p10046_p0 = scmp.lt.u32.totalorder %s10044_s17, %s10040_s14  ;;  %p10048_p6 = scmp.lt.u32.totalorder %s10040_s14, %s12792_s22 }
 0x47c   : > { %p10042_p11 = pnand %p10041_p8, %p12920_p9 }
 0x47d   : > { %p10047_p5 = por %p10046_p0, %p10045_p1 }
 0x47e   : > { %p10043_p13 = pneg %p10042_p11 }
 0x47f   : > { %p10049_p10 = por %p10048_p6, %p10047_p5 }
 0x481   : > { %p10050_p12 = pnand %p10049_p10, %p10043_p13 }
 0x483   : > { %10053 = shalt.err (!%p10050_p12)
}
 0x484   : > { %s10099_s15 = smov 128   ;;  %s10100_s13 = smov 8  }
 0x485   : > { %9581 = dma.vmem_to_hbm [thread:$0]  (%p12920_p9), %s12794_s21, 4096, %s12792_s22, %s12801_s28, %s10099_s15, %s10099_s15, %s10100_s13  }
 0x486 PF: > { %p9593_p2 = scmp.ge.s32.totalorder %s10092_s27, 2  ;;  %s7395_s23 = sand.u32 1, %s10080_s24  }
 0x487   : > { %p12921_p3 = scmp.ne.s32.totalorder %s12854_s12, 0  ;;  %s7396_s16 = scalar_lea.sflag [#allocation5], %s7395_s23 }
 0x489   : > { %p9588_p4 = pnand %p9593_p2, %p12921_p3 }
 0x48b   : > { %10075 = dma.done.wait (!%p9588_p4), %s7396_s16, 4096  }
 0x48c   : > { %10077 = vsyncadd (!%p9588_p4), %s7396_s16, 4294963200  ;;  %p18_p7 = scmp.ge.s32.totalorder %s10166_s30, 4   ;;  %s12922_s24 = smov %s10084_s25 }
 0x48d   : > { %s12923_s25 = smov %s10088_s26  ;;  %s12924_s26 = smov %s10177_s10 }
 0x48e   : > { %s12925_s27 = smov %s10166_s30  ;;  %20 = sbr.rel (!%p18_p7) target bundleno = 4 (0x4), region = 96 }
 0x495   :  { %7401 = vsyncpa [#allocation4], 1 }
 0x496   :  { %7403 = vsyncpa [#allocation4 + $0x1], 1 }
 0x497   :  { %7404 = vsyncpa [#allocation5], 1 }
 0x498   :  { %7406 = vsyncpa [#allocation5 + $0x1], 1 }

</bundles_post_ra>
